<compile_context>
chip_gen: v7x
topology: tpu7x:2x2x1
jax: 0.10.0
libtpu: 0.0.40
codegen_flags: <defaults>
</compile_context>

<pallas_src>
import functools
import math

import jax
import jax.numpy as jnp
import numpy as np
from jax.experimental import pallas as pl
from jax.experimental.pallas import tpu as pltpu


def _sigmoid(z):
    return 1.0 / (1.0 + jnp.exp(-z))


def _cbam_kernel(x_ref, w1m_ref, b1_ref, w2a_ref, b2a_ref, w2b_ref, b2b_ref,
                 w3am_ref, b3a_ref, w3bT_ref, b3b_ref, out_ref, pad_ref, *, H, W):
    """Fused CBAM forward for one batch element, (C, H*W) layout."""
    f32 = jnp.float32
    HW = H * W
    OFF = W + 1                       # left zero border of the flat pad buffer
    C = x_ref.shape[1]                # input / conv1 channels
    C16 = w3am_ref.shape[0]           # conv3 hidden channels (16)

    # Zero the padded scratch once; stores below only touch cols [OFF, OFF+HW),
    # so the borders stay zero for all three 3x3 convolutions.
    pad_ref[...] = jnp.zeros(pad_ref.shape, f32)

    # Column-edge masks shared by every 3x3 conv (flat-index shifting aliases
    # across row boundaries only in the column direction).
    col = jax.lax.broadcasted_iota(jnp.int32, (1, HW), 1) % W
    mask_l = (col >= 1).astype(f32)          # taps reading column-1 (dw == 0)
    mask_r = (col <= W - 2).astype(f32)      # taps reading column+1 (dw == 2)

    def taps():
        for k in range(9):
            dh, dw = divmod(k, 3)
            yield k, dw, OFF + (dh - 1) * W + (dw - 1)

    def edge_mask(contrib, dw):
        if dw == 0:
            return contrib * mask_l
        if dw == 2:
            return contrib * mask_r
        return contrib

    # ---------------- conv1: 3x3, C -> C (VPU rank-1 FMAs) ----------------
    pad_ref[0:C, OFF:OFF + HW] = x_ref[0]
    acc1 = jnp.broadcast_to(b1_ref[...], (C, HW))
    for k, dw, st in taps():
        contrib = None
        for ci in range(C):
            row = pad_ref[ci:ci + 1, st:st + HW]                      # (1, HW)
            term = w1m_ref[:, k * C + ci:k * C + ci + 1] * row        # (C, HW)
            contrib = term if contrib is None else contrib + term
        acc1 = acc1 + edge_mask(contrib, dw)
    x1 = acc1                                                         # (C, HW)

    # ---------------- channel attention (fused avg/max MLP) ---------------
    avg = jnp.mean(x1, axis=1, keepdims=True)                         # (C, 1)
    mx = jnp.max(x1, axis=1, keepdims=True)                           # (C, 1)
    sel = jax.lax.broadcasted_iota(jnp.int32, (C, 2), 1) == 0
    pooled = jnp.where(sel, avg, mx)                                  # (C, 2)
    h = jnp.maximum(
        jnp.dot(w2a_ref[...], pooled, preferred_element_type=f32) + b2a_ref[...],
        0.0)
    y = jnp.dot(w2b_ref[...], h, preferred_element_type=f32) + b2b_ref[...]
    c_att = _sigmoid(y[:, 0:1] + y[:, 1:2])                           # (C, 1)
    x2 = x1 * c_att                                                   # (C, HW)

    # ---------------- spatial attention: conv3[0] 3x3, 2 -> 16 -------------
    sp_mean = jnp.mean(x2, axis=0, keepdims=True)                     # (1, HW)
    sp_max = jnp.max(x2, axis=0, keepdims=True)                       # (1, HW)
    pad_ref[0:1, OFF:OFF + HW] = sp_mean                              # ch 0 = mean
    pad_ref[1:2, OFF:OFF + HW] = sp_max                               # ch 1 = max
    acc3 = jnp.broadcast_to(b3a_ref[...], (C16, HW))
    for k, dw, st in taps():
        r0 = pad_ref[0:1, st:st + HW]
        r1 = pad_ref[1:2, st:st + HW]
        contrib = (w3am_ref[:, 2 * k:2 * k + 1] * r0
                   + w3am_ref[:, 2 * k + 1:2 * k + 2] * r1)           # (16, HW)
        acc3 = acc3 + edge_mask(contrib, dw)
    m = jnp.maximum(acc3, 0.0)                                        # (16, HW)

    # ---------------- conv3[1]: 3x3, 16 -> 1 + sigmoid + final mul ---------
    pad_ref[0:C16, OFF:OFF + HW] = m
    acc4 = jnp.broadcast_to(b3b_ref[...], (1, HW))
    for k, dw, st in taps():
        blk = pad_ref[0:C16, st:st + HW]                              # (16, HW)
        contrib = jnp.sum(w3bT_ref[:, k:k + 1] * blk, axis=0, keepdims=True)
        acc4 = acc4 + edge_mask(contrib, dw)
    s_att = _sigmoid(acc4)                                            # (1, HW)

    out_ref[0] = x2 * s_att                                           # (C, HW)


def _const_spec(shape):
    nd = len(shape)
    return pl.BlockSpec(shape, lambda b, _nd=nd: (0,) * _nd)


def cbam_forward(x_nchw, params):
    (w1, b1, w2a, b2a, w2b, b2b, w3a, b3a, w3b, b3b) = params
    B, C, H, W = x_nchw.shape
    HW = H * W
    C16 = w3a.shape[2]

    # Free view: NCHW -> (B, C, H*W); no transposes anywhere.
    x_flat = x_nchw.reshape(B, C, HW).astype(jnp.float32)

    # Tiny one-time weight re-layouts (kernel-friendly orientations).
    w1m = jnp.transpose(w1, (2, 0, 1)).reshape(C, 9 * C)        # [co, k*Cin+ci]
    w2aT = jnp.transpose(w2a)                                   # (Cout, Cin)
    w2bT = jnp.transpose(w2b)
    w3am = jnp.transpose(w3a, (2, 0, 1)).reshape(C16, 9 * 2)    # [co, k*2+ci]
    w3bT = jnp.transpose(w3b)                                   # (Cin=16, k=9)
    b1c = b1.reshape(C, 1)
    b2ac = b2a.reshape(C, 1)
    b2bc = b2b.reshape(C, 1)
    b3ac = b3a.reshape(C16, 1)
    b3bc = b3b.reshape(1, 1)

    kernel = functools.partial(_cbam_kernel, H=H, W=W)
    pad_rows = max(C, C16, 2)
    pad_cols = HW + 2 * (W + 1)

    out = pl.pallas_call(
        kernel,
        out_shape=jax.ShapeDtypeStruct((B, C, HW), jnp.float32),
        grid=(B,),
        in_specs=[
            pl.BlockSpec((1, C, HW), lambda b: (b, 0, 0)),
            _const_spec((C, 9 * C)), _const_spec((C, 1)),
            _const_spec((C, C)), _const_spec((C, 1)),
            _const_spec((C, C)), _const_spec((C, 1)),
            _const_spec((C16, 9 * 2)), _const_spec((C16, 1)),
            _const_spec((C16, 9)), _const_spec((1, 1)),
        ],
        out_specs=pl.BlockSpec((1, C, HW), lambda b: (b, 0, 0)),
        scratch_shapes=[pltpu.VMEM((pad_rows, pad_cols), jnp.float32)],
        compiler_params=pltpu.CompilerParams(
            dimension_semantics=("parallel",)),
    )(x_flat, w1m, b1c, w2aT, b2ac, w2bT, b2bc, w3am, b3ac, w3bT, b3bc)

    return out.reshape(B, C, H, W)


# ---------------------------- plain-JAX reference ---------------------------
def _conv3x3_ref(x_nhwc, w_kio, b):
    Hh, Ww = x_nhwc.shape[1], x_nhwc.shape[2]
    xp = jnp.pad(x_nhwc, ((0, 0), (1, 1), (1, 1), (0, 0)))
    out = 0.0
    for k in range(9):
        dh, dw = divmod(k, 3)
        out = out + jnp.einsum('bhwc,cd->bhwd',
                               xp[:, dh:dh + Hh, dw:dw + Ww, :], w_kio[k])
    return out + b.reshape(1, 1, 1, -1)


def cbam_reference(x_nchw, params):
    (w1, b1, w2a, b2a, w2b, b2b, w3a, b3a, w3b, b3b) = params
    x = jnp.transpose(x_nchw, (0, 2, 3, 1)).astype(jnp.float32)
    x1 = _conv3x3_ref(x, w1, b1)
    avg = jnp.mean(x1, axis=(1, 2), keepdims=True)
    mx = jnp.max(x1, axis=(1, 2), keepdims=True)

    def mlp(v):
        h = jax.nn.relu(jnp.einsum('bijc,cd->bijd', v, w2a) + b2a.reshape(1, 1, 1, -1))
        return jnp.einsum('bijc,cd->bijd', h, w2b) + b2b.reshape(1, 1, 1, -1)

    c = 1.0 / (1.0 + jnp.exp(-(mlp(avg) + mlp(mx))))
    x2 = x1 * c
    sp = jnp.concatenate([jnp.mean(x2, axis=-1, keepdims=True),
                          jnp.max(x2, axis=-1, keepdims=True)], axis=-1)
    m = jax.nn.relu(_conv3x3_ref(sp, w3a, b3a))
    s = 1.0 / (1.0 + jnp.exp(-_conv3x3_ref(m, w3b[:, :, None], b3b)))
    return jnp.transpose(x2 * s, (0, 3, 1, 2))


if __name__ == "__main__":
    B, C, H, W = 2, 4, 16, 16
    key = jax.random.PRNGKey(0)
    kx, k1, k2a, k2b, k3a, k3b = jax.random.split(key, 6)

    def kaiming_uniform(k, shape, fan_in):
        bound = math.sqrt(6.0 / fan_in)      # matches nn.init.kaiming_uniform_ scale
        return jax.random.uniform(k, shape, jnp.float32, -bound, bound)

    params = (
        kaiming_uniform(k1, (9, C, C), fan_in=C * 9),      # conv1 weight (k, Cin, Cout)
        jnp.zeros((C,), jnp.float32),                      # conv1 bias (init 0)
        kaiming_uniform(k2a, (C, C), fan_in=C),            # conv2[0] 1x1 (Cin, Cout)
        jnp.zeros((C,), jnp.float32),
        kaiming_uniform(k2b, (C, C), fan_in=C),            # conv2[1] 1x1 (Cin, Cout)
        jnp.zeros((C,), jnp.float32),
        kaiming_uniform(k3a, (9, 2, 16), fan_in=2 * 9),    # conv3[0] (k, Cin, Cout)
        jnp.zeros((16,), jnp.float32),
        kaiming_uniform(k3b, (9, 16), fan_in=16 * 9),      # conv3[1] (k, Cin), Cout=1
        jnp.zeros((1,), jnp.float32),
    )

    x = jax.random.normal(kx, (B, C, H, W), jnp.float32)   # PyTorch-style NCHW input

    out = jax.block_until_ready(jax.jit(cbam_forward)(x, params))
    ref = jax.block_until_ready(cbam_reference(x, params))

    assert out.shape == (B, C, H, W)
    # Loose tolerance: reference einsums (and the tiny in-kernel channel-MLP
    # dots) run on the MXU at default (reduced) precision.
    if not np.allclose(np.asarray(out), np.asarray(ref), rtol=2e-2, atol=3e-3):
        raise AssertionError("Pallas CBAM output mismatch vs JAX reference")
    print("KERNEL_OK")
</pallas_src>

<mosaic_0001>
module attributes {stable_mosaic.version = 11 : i64} {
  func.func @_cbam_kernel(%arg0: i32, %arg1: memref<1x4x256xf32, #tpu.memory_space<vmem>>, %arg2: memref<4x36xf32, #tpu.memory_space<vmem>>, %arg3: memref<4x1xf32, #tpu.memory_space<vmem>>, %arg4: memref<4x4xf32, #tpu.memory_space<vmem>>, %arg5: memref<4x1xf32, #tpu.memory_space<vmem>>, %arg6: memref<4x4xf32, #tpu.memory_space<vmem>>, %arg7: memref<4x1xf32, #tpu.memory_space<vmem>>, %arg8: memref<16x18xf32, #tpu.memory_space<vmem>>, %arg9: memref<16x1xf32, #tpu.memory_space<vmem>>, %arg10: memref<16x9xf32, #tpu.memory_space<vmem>>, %arg11: memref<1x1xf32, #tpu.memory_space<vmem>>, %arg12: memref<1x4x256xf32, #tpu.memory_space<vmem>>, %arg13: memref<16x290xf32, #tpu.memory_space<vmem>>) attributes {dimension_semantics = [#tpu.dimension_semantics<parallel>], iteration_bounds = array<i64: 2>, scalar_prefetch = 0 : i64, scratch_operands = 1 : i64, tpu.core_type = #tpu.core_type<tc>, window_params = [{transform_indices = @transform_0, window_bounds = array<i64: 1, 4, 256>}, {pipeline_mode = #tpu.pipeline_mode<synchronous>, transform_indices = @transform_1, window_bounds = array<i64: 4, 36>}, {pipeline_mode = #tpu.pipeline_mode<synchronous>, transform_indices = @transform_2, window_bounds = array<i64: 4, 1>}, {pipeline_mode = #tpu.pipeline_mode<synchronous>, transform_indices = @transform_3, window_bounds = array<i64: 4, 4>}, {pipeline_mode = #tpu.pipeline_mode<synchronous>, transform_indices = @transform_4, window_bounds = array<i64: 4, 1>}, {pipeline_mode = #tpu.pipeline_mode<synchronous>, transform_indices = @transform_5, window_bounds = array<i64: 4, 4>}, {pipeline_mode = #tpu.pipeline_mode<synchronous>, transform_indices = @transform_6, window_bounds = array<i64: 4, 1>}, {pipeline_mode = #tpu.pipeline_mode<synchronous>, transform_indices = @transform_7, window_bounds = array<i64: 16, 18>}, {pipeline_mode = #tpu.pipeline_mode<synchronous>, transform_indices = @transform_8, window_bounds = array<i64: 16, 1>}, {pipeline_mode = #tpu.pipeline_mode<synchronous>, transform_indices = @transform_9, window_bounds = array<i64: 16, 9>}, {pipeline_mode = #tpu.pipeline_mode<synchronous>, transform_indices = @transform_10, window_bounds = array<i64: 1, 1>}, {transform_indices = @transform_11, window_bounds = array<i64: 1, 4, 256>}]} {
    %cst = arith.constant 0.000000e+00 : f32
    %0 = vector.broadcast %cst : f32 to vector<16x290xf32>
    %c0 = arith.constant 0 : index
    %c0_0 = arith.constant 0 : index
    %1 = vector.load %arg13[%c0, %c0_0] : memref<16x290xf32, #tpu.memory_space<vmem>>, vector<16x290xf32>
    tpu.vector_store %arg13[%c0, %c0_0], %0 {strides = array<i32>} : memref<16x290xf32, #tpu.memory_space<vmem>>, vector<16x290xf32>,
    %2 = tpu.iota {dimensions = array<i32: 1>} : vector<1x256xi32>
    %c16_i32 = arith.constant 16 : i32
    %c0_i32 = arith.constant 0 : i32
    %3 = arith.cmpi eq, %c16_i32, %c0_i32 : i32
    %c1_i32 = arith.constant 1 : i32
    %4 = arith.select %3, %c1_i32, %c16_i32 : i32
    %5 = vector.broadcast %4 : i32 to vector<1x256xi32>
    %6 = arith.remsi %2, %5 : vector<1x256xi32>
    %c0_i32_1 = arith.constant 0 : i32
    %7 = vector.broadcast %c0_i32_1 : i32 to vector<1x256xi32>
    %8 = arith.cmpi ne, %6, %7 : vector<1x256xi32>
    %c0_i32_2 = arith.constant 0 : i32
    %9 = vector.broadcast %c0_i32_2 : i32 to vector<1x256xi32>
    %10 = arith.cmpi slt, %6, %9 : vector<1x256xi32>
    %c0_i32_3 = arith.constant 0 : i32
    %11 = arith.cmpi slt, %4, %c0_i32_3 : i32
    %12 = vector.broadcast %11 : i1 to vector<1x256xi1>
    %13 = vector.broadcast %12 : vector<1x256xi1> to vector<1x256xi1>
    %14 = arith.xori %10, %13 : vector<1x256xi1>
    %15 = arith.andi %14, %8 : vector<1x256xi1>
    %16 = vector.broadcast %4 : i32 to vector<1x256xi32>
    %17 = arith.addi %6, %16 : vector<1x256xi32>
    %18 = arith.select %15, %17, %6 : vector<1x256xi1>, vector<1x256xi32>
    %c1_i32_4 = arith.constant 1 : i32
    %19 = vector.broadcast %c1_i32_4 : i32 to vector<1x256xi32>
    %20 = arith.cmpi sge, %18, %19 : vector<1x256xi32>
    %21 = arith.extui %20 : vector<1x256xi1> to vector<1x256xi32>
    %22 = arith.sitofp %21 : vector<1x256xi32> to vector<1x256xf32>
    %c14_i32 = arith.constant 14 : i32
    %23 = vector.broadcast %c14_i32 : i32 to vector<1x256xi32>
    %24 = arith.cmpi sle, %18, %23 : vector<1x256xi32>
    %25 = arith.extui %24 : vector<1x256xi1> to vector<1x256xi32>
    %26 = arith.sitofp %25 : vector<1x256xi32> to vector<1x256xf32>
    %c0_5 = arith.constant 0 : index
    %c0_6 = arith.constant 0 : index
    %c0_7 = arith.constant 0 : index
    %27 = vector.load %arg1[%c0_5, %c0_6, %c0_7] : memref<1x4x256xf32, #tpu.memory_space<vmem>>, vector<1x4x256xf32>
    %28 = vector.shape_cast %27 : vector<1x4x256xf32> to vector<4x256xf32>
    %c0_8 = arith.constant 0 : index
    %c17 = arith.constant 17 : index
    %29 = vector.load %arg13[%c0_8, %c17] : memref<16x290xf32, #tpu.memory_space<vmem>>, vector<4x256xf32>
    tpu.vector_store %arg13[%c0_8, %c17], %28 {strides = array<i32>} : memref<16x290xf32, #tpu.memory_space<vmem>>, vector<4x256xf32>,
    %c0_9 = arith.constant 0 : index
    %c0_10 = arith.constant 0 : index
    %30 = vector.load %arg3[%c0_9, %c0_10] : memref<4x1xf32, #tpu.memory_space<vmem>>, vector<4x1xf32>
    %31 = vector.shape_cast %30 : vector<4x1xf32> to vector<4x1xf32>
    %32 = vector.broadcast %31 : vector<4x1xf32> to vector<4x256xf32>
    %c0_11 = arith.constant 0 : index
    %c0_12 = arith.constant 0 : index
    %33 = vector.load %arg13[%c0_11, %c0_12] : memref<16x290xf32, #tpu.memory_space<vmem>>, vector<1x256xf32>
    %c0_13 = arith.constant 0 : index
    %c0_14 = arith.constant 0 : index
    %34 = vector.load %arg2[%c0_13, %c0_14] : memref<4x36xf32, #tpu.memory_space<vmem>>, vector<4x1xf32>
    %35 = vector.broadcast %34 : vector<4x1xf32> to vector<4x256xf32>
    %36 = vector.broadcast %33 : vector<1x256xf32> to vector<4x256xf32>
    %37 = arith.mulf %35, %36 : vector<4x256xf32>
    %c1 = arith.constant 1 : index
    %c0_15 = arith.constant 0 : index
    %38 = vector.load %arg13[%c1, %c0_15] : memref<16x290xf32, #tpu.memory_space<vmem>>, vector<1x256xf32>
    %c0_16 = arith.constant 0 : index
    %c1_17 = arith.constant 1 : index
    %39 = vector.load %arg2[%c0_16, %c1_17] : memref<4x36xf32, #tpu.memory_space<vmem>>, vector<4x1xf32>
    %40 = vector.broadcast %39 : vector<4x1xf32> to vector<4x256xf32>
    %41 = vector.broadcast %38 : vector<1x256xf32> to vector<4x256xf32>
    %42 = arith.mulf %40, %41 : vector<4x256xf32>
    %43 = arith.addf %37, %42 : vector<4x256xf32>
    %c2 = arith.constant 2 : index
    %c0_18 = arith.constant 0 : index
    %44 = vector.load %arg13[%c2, %c0_18] : memref<16x290xf32, #tpu.memory_space<vmem>>, vector<1x256xf32>
    %c0_19 = arith.constant 0 : index
    %c2_20 = arith.constant 2 : index
    %45 = vector.load %arg2[%c0_19, %c2_20] : memref<4x36xf32, #tpu.memory_space<vmem>>, vector<4x1xf32>
    %46 = vector.broadcast %45 : vector<4x1xf32> to vector<4x256xf32>
    %47 = vector.broadcast %44 : vector<1x256xf32> to vector<4x256xf32>
    %48 = arith.mulf %46, %47 : vector<4x256xf32>
    %49 = arith.addf %43, %48 : vector<4x256xf32>
    %c3 = arith.constant 3 : index
    %c0_21 = arith.constant 0 : index
    %50 = vector.load %arg13[%c3, %c0_21] : memref<16x290xf32, #tpu.memory_space<vmem>>, vector<1x256xf32>
    %c0_22 = arith.constant 0 : index
    %c3_23 = arith.constant 3 : index
    %51 = vector.load %arg2[%c0_22, %c3_23] : memref<4x36xf32, #tpu.memory_space<vmem>>, vector<4x1xf32>
    %52 = vector.broadcast %51 : vector<4x1xf32> to vector<4x256xf32>
    %53 = vector.broadcast %50 : vector<1x256xf32> to vector<4x256xf32>
    %54 = arith.mulf %52, %53 : vector<4x256xf32>
    %55 = arith.addf %49, %54 : vector<4x256xf32>
    %56 = vector.broadcast %22 : vector<1x256xf32> to vector<4x256xf32>
    %57 = arith.mulf %55, %56 : vector<4x256xf32>
    %58 = arith.addf %32, %57 : vector<4x256xf32>
    %c0_24 = arith.constant 0 : index
    %c1_25 = arith.constant 1 : index
    %59 = vector.load %arg13[%c0_24, %c1_25] : memref<16x290xf32, #tpu.memory_space<vmem>>, vector<1x256xf32>
    %c0_26 = arith.constant 0 : index
    %c4 = arith.constant 4 : index
    %60 = vector.load %arg2[%c0_26, %c4] : memref<4x36xf32, #tpu.memory_space<vmem>>, vector<4x1xf32>
    %61 = vector.broadcast %60 : vector<4x1xf32> to vector<4x256xf32>
    %62 = vector.broadcast %59 : vector<1x256xf32> to vector<4x256xf32>
    %63 = arith.mulf %61, %62 : vector<4x256xf32>
    %c1_27 = arith.constant 1 : index
    %c1_28 = arith.constant 1 : index
    %64 = vector.load %arg13[%c1_27, %c1_28] : memref<16x290xf32, #tpu.memory_space<vmem>>, vector<1x256xf32>
    %c0_29 = arith.constant 0 : index
    %c5 = arith.constant 5 : index
    %65 = vector.load %arg2[%c0_29, %c5] : memref<4x36xf32, #tpu.memory_space<vmem>>, vector<4x1xf32>
    %66 = vector.broadcast %65 : vector<4x1xf32> to vector<4x256xf32>
    %67 = vector.broadcast %64 : vector<1x256xf32> to vector<4x256xf32>
    %68 = arith.mulf %66, %67 : vector<4x256xf32>
    %69 = arith.addf %63, %68 : vector<4x256xf32>
    %c2_30 = arith.constant 2 : index
    %c1_31 = arith.constant 1 : index
    %70 = vector.load %arg13[%c2_30, %c1_31] : memref<16x290xf32, #tpu.memory_space<vmem>>, vector<1x256xf32>
    %c0_32 = arith.constant 0 : index
    %c6 = arith.constant 6 : index
    %71 = vector.load %arg2[%c0_32, %c6] : memref<4x36xf32, #tpu.memory_space<vmem>>, vector<4x1xf32>
    %72 = vector.broadcast %71 : vector<4x1xf32> to vector<4x256xf32>
    %73 = vector.broadcast %70 : vector<1x256xf32> to vector<4x256xf32>
    %74 = arith.mulf %72, %73 : vector<4x256xf32>
    %75 = arith.addf %69, %74 : vector<4x256xf32>
    %c3_33 = arith.constant 3 : index
    %c1_34 = arith.constant 1 : index
    %76 = vector.load %arg13[%c3_33, %c1_34] : memref<16x290xf32, #tpu.memory_space<vmem>>, vector<1x256xf32>
    %c0_35 = arith.constant 0 : index
    %c7 = arith.constant 7 : index
    %77 = vector.load %arg2[%c0_35, %c7] : memref<4x36xf32, #tpu.memory_space<vmem>>, vector<4x1xf32>
    %78 = vector.broadcast %77 : vector<4x1xf32> to vector<4x256xf32>
    %79 = vector.broadcast %76 : vector<1x256xf32> to vector<4x256xf32>
    %80 = arith.mulf %78, %79 : vector<4x256xf32>
    %81 = arith.addf %75, %80 : vector<4x256xf32>
    %82 = arith.addf %58, %81 : vector<4x256xf32>
    %c0_36 = arith.constant 0 : index
    %c2_37 = arith.constant 2 : index
    %83 = vector.load %arg13[%c0_36, %c2_37] : memref<16x290xf32, #tpu.memory_space<vmem>>, vector<1x256xf32>
    %c0_38 = arith.constant 0 : index
    %c8 = arith.constant 8 : index
    %84 = vector.load %arg2[%c0_38, %c8] : memref<4x36xf32, #tpu.memory_space<vmem>>, vector<4x1xf32>
    %85 = vector.broadcast %84 : vector<4x1xf32> to vector<4x256xf32>
    %86 = vector.broadcast %83 : vector<1x256xf32> to vector<4x256xf32>
    %87 = arith.mulf %85, %86 : vector<4x256xf32>
    %c1_39 = arith.constant 1 : index
    %c2_40 = arith.constant 2 : index
    %88 = vector.load %arg13[%c1_39, %c2_40] : memref<16x290xf32, #tpu.memory_space<vmem>>, vector<1x256xf32>
    %c0_41 = arith.constant 0 : index
    %c9 = arith.constant 9 : index
    %89 = vector.load %arg2[%c0_41, %c9] : memref<4x36xf32, #tpu.memory_space<vmem>>, vector<4x1xf32>
    %90 = vector.broadcast %89 : vector<4x1xf32> to vector<4x256xf32>
    %91 = vector.broadcast %88 : vector<1x256xf32> to vector<4x256xf32>
    %92 = arith.mulf %90, %91 : vector<4x256xf32>
    %93 = arith.addf %87, %92 : vector<4x256xf32>
    %c2_42 = arith.constant 2 : index
    %c2_43 = arith.constant 2 : index
    %94 = vector.load %arg13[%c2_42, %c2_43] : memref<16x290xf32, #tpu.memory_space<vmem>>, vector<1x256xf32>
    %c0_44 = arith.constant 0 : index
    %c10 = arith.constant 10 : index
    %95 = vector.load %arg2[%c0_44, %c10] : memref<4x36xf32, #tpu.memory_space<vmem>>, vector<4x1xf32>
    %96 = vector.broadcast %95 : vector<4x1xf32> to vector<4x256xf32>
    %97 = vector.broadcast %94 : vector<1x256xf32> to vector<4x256xf32>
    %98 = arith.mulf %96, %97 : vector<4x256xf32>
    %99 = arith.addf %93, %98 : vector<4x256xf32>
    %c3_45 = arith.constant 3 : index
    %c2_46 = arith.constant 2 : index
    %100 = vector.load %arg13[%c3_45, %c2_46] : memref<16x290xf32, #tpu.memory_space<vmem>>, vector<1x256xf32>
    %c0_47 = arith.constant 0 : index
    %c11 = arith.constant 11 : index
    %101 = vector.load %arg2[%c0_47, %c11] : memref<4x36xf32, #tpu.memory_space<vmem>>, vector<4x1xf32>
    %102 = vector.broadcast %101 : vector<4x1xf32> to vector<4x256xf32>
    %103 = vector.broadcast %100 : vector<1x256xf32> to vector<4x256xf32>
    %104 = arith.mulf %102, %103 : vector<4x256xf32>
    %105 = arith.addf %99, %104 : vector<4x256xf32>
    %106 = vector.broadcast %26 : vector<1x256xf32> to vector<4x256xf32>
    %107 = arith.mulf %105, %106 : vector<4x256xf32>
    %108 = arith.addf %82, %107 : vector<4x256xf32>
    %c0_48 = arith.constant 0 : index
    %c16 = arith.constant 16 : index
    %109 = vector.load %arg13[%c0_48, %c16] : memref<16x290xf32, #tpu.memory_space<vmem>>, vector<1x256xf32>
    %c0_49 = arith.constant 0 : index
    %c12 = arith.constant 12 : index
    %110 = vector.load %arg2[%c0_49, %c12] : memref<4x36xf32, #tpu.memory_space<vmem>>, vector<4x1xf32>
    %111 = vector.broadcast %110 : vector<4x1xf32> to vector<4x256xf32>
    %112 = vector.broadcast %109 : vector<1x256xf32> to vector<4x256xf32>
    %113 = arith.mulf %111, %112 : vector<4x256xf32>
    %c1_50 = arith.constant 1 : index
    %c16_51 = arith.constant 16 : index
    %114 = vector.load %arg13[%c1_50, %c16_51] : memref<16x290xf32, #tpu.memory_space<vmem>>, vector<1x256xf32>
    %c0_52 = arith.constant 0 : index
    %c13 = arith.constant 13 : index
    %115 = vector.load %arg2[%c0_52, %c13] : memref<4x36xf32, #tpu.memory_space<vmem>>, vector<4x1xf32>
    %116 = vector.broadcast %115 : vector<4x1xf32> to vector<4x256xf32>
    %117 = vector.broadcast %114 : vector<1x256xf32> to vector<4x256xf32>
    %118 = arith.mulf %116, %117 : vector<4x256xf32>
    %119 = arith.addf %113, %118 : vector<4x256xf32>
    %c2_53 = arith.constant 2 : index
    %c16_54 = arith.constant 16 : index
    %120 = vector.load %arg13[%c2_53, %c16_54] : memref<16x290xf32, #tpu.memory_space<vmem>>, vector<1x256xf32>
    %c0_55 = arith.constant 0 : index
    %c14 = arith.constant 14 : index
    %121 = vector.load %arg2[%c0_55, %c14] : memref<4x36xf32, #tpu.memory_space<vmem>>, vector<4x1xf32>
    %122 = vector.broadcast %121 : vector<4x1xf32> to vector<4x256xf32>
    %123 = vector.broadcast %120 : vector<1x256xf32> to vector<4x256xf32>
    %124 = arith.mulf %122, %123 : vector<4x256xf32>
    %125 = arith.addf %119, %124 : vector<4x256xf32>
    %c3_56 = arith.constant 3 : index
    %c16_57 = arith.constant 16 : index
    %126 = vector.load %arg13[%c3_56, %c16_57] : memref<16x290xf32, #tpu.memory_space<vmem>>, vector<1x256xf32>
    %c0_58 = arith.constant 0 : index
    %c15 = arith.constant 15 : index
    %127 = vector.load %arg2[%c0_58, %c15] : memref<4x36xf32, #tpu.memory_space<vmem>>, vector<4x1xf32>
    %128 = vector.broadcast %127 : vector<4x1xf32> to vector<4x256xf32>
    %129 = vector.broadcast %126 : vector<1x256xf32> to vector<4x256xf32>
    %130 = arith.mulf %128, %129 : vector<4x256xf32>
    %131 = arith.addf %125, %130 : vector<4x256xf32>
    %132 = vector.broadcast %22 : vector<1x256xf32> to vector<4x256xf32>
    %133 = arith.mulf %131, %132 : vector<4x256xf32>
    %134 = arith.addf %108, %133 : vector<4x256xf32>
    %c0_59 = arith.constant 0 : index
    %c17_60 = arith.constant 17 : index
    %135 = vector.load %arg13[%c0_59, %c17_60] : memref<16x290xf32, #tpu.memory_space<vmem>>, vector<1x256xf32>
    %c0_61 = arith.constant 0 : index
    %c16_62 = arith.constant 16 : index
    %136 = vector.load %arg2[%c0_61, %c16_62] : memref<4x36xf32, #tpu.memory_space<vmem>>, vector<4x1xf32>
    %137 = vector.broadcast %136 : vector<4x1xf32> to vector<4x256xf32>
    %138 = vector.broadcast %135 : vector<1x256xf32> to vector<4x256xf32>
    %139 = arith.mulf %137, %138 : vector<4x256xf32>
    %c1_63 = arith.constant 1 : index
    %c17_64 = arith.constant 17 : index
    %140 = vector.load %arg13[%c1_63, %c17_64] : memref<16x290xf32, #tpu.memory_space<vmem>>, vector<1x256xf32>
    %c0_65 = arith.constant 0 : index
    %c17_66 = arith.constant 17 : index
    %141 = vector.load %arg2[%c0_65, %c17_66] : memref<4x36xf32, #tpu.memory_space<vmem>>, vector<4x1xf32>
    %142 = vector.broadcast %141 : vector<4x1xf32> to vector<4x256xf32>
    %143 = vector.broadcast %140 : vector<1x256xf32> to vector<4x256xf32>
    %144 = arith.mulf %142, %143 : vector<4x256xf32>
    %145 = arith.addf %139, %144 : vector<4x256xf32>
    %c2_67 = arith.constant 2 : index
    %c17_68 = arith.constant 17 : index
    %146 = vector.load %arg13[%c2_67, %c17_68] : memref<16x290xf32, #tpu.memory_space<vmem>>, vector<1x256xf32>
    %c0_69 = arith.constant 0 : index
    %c18 = arith.constant 18 : index
    %147 = vector.load %arg2[%c0_69, %c18] : memref<4x36xf32, #tpu.memory_space<vmem>>, vector<4x1xf32>
    %148 = vector.broadcast %147 : vector<4x1xf32> to vector<4x256xf32>
    %149 = vector.broadcast %146 : vector<1x256xf32> to vector<4x256xf32>
    %150 = arith.mulf %148, %149 : vector<4x256xf32>
    %151 = arith.addf %145, %150 : vector<4x256xf32>
    %c3_70 = arith.constant 3 : index
    %c17_71 = arith.constant 17 : index
    %152 = vector.load %arg13[%c3_70, %c17_71] : memref<16x290xf32, #tpu.memory_space<vmem>>, vector<1x256xf32>
    %c0_72 = arith.constant 0 : index
    %c19 = arith.constant 19 : index
    %153 = vector.load %arg2[%c0_72, %c19] : memref<4x36xf32, #tpu.memory_space<vmem>>, vector<4x1xf32>
    %154 = vector.broadcast %153 : vector<4x1xf32> to vector<4x256xf32>
    %155 = vector.broadcast %152 : vector<1x256xf32> to vector<4x256xf32>
    %156 = arith.mulf %154, %155 : vector<4x256xf32>
    %157 = arith.addf %151, %156 : vector<4x256xf32>
    %158 = arith.addf %134, %157 : vector<4x256xf32>
    %c0_73 = arith.constant 0 : index
    %c18_74 = arith.constant 18 : index
    %159 = vector.load %arg13[%c0_73, %c18_74] : memref<16x290xf32, #tpu.memory_space<vmem>>, vector<1x256xf32>
    %c0_75 = arith.constant 0 : index
    %c20 = arith.constant 20 : index
    %160 = vector.load %arg2[%c0_75, %c20] : memref<4x36xf32, #tpu.memory_space<vmem>>, vector<4x1xf32>
    %161 = vector.broadcast %160 : vector<4x1xf32> to vector<4x256xf32>
    %162 = vector.broadcast %159 : vector<1x256xf32> to vector<4x256xf32>
    %163 = arith.mulf %161, %162 : vector<4x256xf32>
    %c1_76 = arith.constant 1 : index
    %c18_77 = arith.constant 18 : index
    %164 = vector.load %arg13[%c1_76, %c18_77] : memref<16x290xf32, #tpu.memory_space<vmem>>, vector<1x256xf32>
    %c0_78 = arith.constant 0 : index
    %c21 = arith.constant 21 : index
    %165 = vector.load %arg2[%c0_78, %c21] : memref<4x36xf32, #tpu.memory_space<vmem>>, vector<4x1xf32>
    %166 = vector.broadcast %165 : vector<4x1xf32> to vector<4x256xf32>
    %167 = vector.broadcast %164 : vector<1x256xf32> to vector<4x256xf32>
    %168 = arith.mulf %166, %167 : vector<4x256xf32>
    %169 = arith.addf %163, %168 : vector<4x256xf32>
    %c2_79 = arith.constant 2 : index
    %c18_80 = arith.constant 18 : index
    %170 = vector.load %arg13[%c2_79, %c18_80] : memref<16x290xf32, #tpu.memory_space<vmem>>, vector<1x256xf32>
    %c0_81 = arith.constant 0 : index
    %c22 = arith.constant 22 : index
    %171 = vector.load %arg2[%c0_81, %c22] : memref<4x36xf32, #tpu.memory_space<vmem>>, vector<4x1xf32>
    %172 = vector.broadcast %171 : vector<4x1xf32> to vector<4x256xf32>
    %173 = vector.broadcast %170 : vector<1x256xf32> to vector<4x256xf32>
    %174 = arith.mulf %172, %173 : vector<4x256xf32>
    %175 = arith.addf %169, %174 : vector<4x256xf32>
    %c3_82 = arith.constant 3 : index
    %c18_83 = arith.constant 18 : index
    %176 = vector.load %arg13[%c3_82, %c18_83] : memref<16x290xf32, #tpu.memory_space<vmem>>, vector<1x256xf32>
    %c0_84 = arith.constant 0 : index
    %c23 = arith.constant 23 : index
    %177 = vector.load %arg2[%c0_84, %c23] : memref<4x36xf32, #tpu.memory_space<vmem>>, vector<4x1xf32>
    %178 = vector.broadcast %177 : vector<4x1xf32> to vector<4x256xf32>
    %179 = vector.broadcast %176 : vector<1x256xf32> to vector<4x256xf32>
    %180 = arith.mulf %178, %179 : vector<4x256xf32>
    %181 = arith.addf %175, %180 : vector<4x256xf32>
    %182 = vector.broadcast %26 : vector<1x256xf32> to vector<4x256xf32>
    %183 = arith.mulf %181, %182 : vector<4x256xf32>
    %184 = arith.addf %158, %183 : vector<4x256xf32>
    %c0_85 = arith.constant 0 : index
    %c32 = arith.constant 32 : index
    %185 = vector.load %arg13[%c0_85, %c32] : memref<16x290xf32, #tpu.memory_space<vmem>>, vector<1x256xf32>
    %c0_86 = arith.constant 0 : index
    %c24 = arith.constant 24 : index
    %186 = vector.load %arg2[%c0_86, %c24] : memref<4x36xf32, #tpu.memory_space<vmem>>, vector<4x1xf32>
    %187 = vector.broadcast %186 : vector<4x1xf32> to vector<4x256xf32>
    %188 = vector.broadcast %185 : vector<1x256xf32> to vector<4x256xf32>
    %189 = arith.mulf %187, %188 : vector<4x256xf32>
    %c1_87 = arith.constant 1 : index
    %c32_88 = arith.constant 32 : index
    %190 = vector.load %arg13[%c1_87, %c32_88] : memref<16x290xf32, #tpu.memory_space<vmem>>, vector<1x256xf32>
    %c0_89 = arith.constant 0 : index
    %c25 = arith.constant 25 : index
    %191 = vector.load %arg2[%c0_89, %c25] : memref<4x36xf32, #tpu.memory_space<vmem>>, vector<4x1xf32>
    %192 = vector.broadcast %191 : vector<4x1xf32> to vector<4x256xf32>
    %193 = vector.broadcast %190 : vector<1x256xf32> to vector<4x256xf32>
    %194 = arith.mulf %192, %193 : vector<4x256xf32>
    %195 = arith.addf %189, %194 : vector<4x256xf32>
    %c2_90 = arith.constant 2 : index
    %c32_91 = arith.constant 32 : index
    %196 = vector.load %arg13[%c2_90, %c32_91] : memref<16x290xf32, #tpu.memory_space<vmem>>, vector<1x256xf32>
    %c0_92 = arith.constant 0 : index
    %c26 = arith.constant 26 : index
    %197 = vector.load %arg2[%c0_92, %c26] : memref<4x36xf32, #tpu.memory_space<vmem>>, vector<4x1xf32>
    %198 = vector.broadcast %197 : vector<4x1xf32> to vector<4x256xf32>
    %199 = vector.broadcast %196 : vector<1x256xf32> to vector<4x256xf32>
    %200 = arith.mulf %198, %199 : vector<4x256xf32>
    %201 = arith.addf %195, %200 : vector<4x256xf32>
    %c3_93 = arith.constant 3 : index
    %c32_94 = arith.constant 32 : index
    %202 = vector.load %arg13[%c3_93, %c32_94] : memref<16x290xf32, #tpu.memory_space<vmem>>, vector<1x256xf32>
    %c0_95 = arith.constant 0 : index
    %c27 = arith.constant 27 : index
    %203 = vector.load %arg2[%c0_95, %c27] : memref<4x36xf32, #tpu.memory_space<vmem>>, vector<4x1xf32>
    %204 = vector.broadcast %203 : vector<4x1xf32> to vector<4x256xf32>
    %205 = vector.broadcast %202 : vector<1x256xf32> to vector<4x256xf32>
    %206 = arith.mulf %204, %205 : vector<4x256xf32>
    %207 = arith.addf %201, %206 : vector<4x256xf32>
    %208 = vector.broadcast %22 : vector<1x256xf32> to vector<4x256xf32>
    %209 = arith.mulf %207, %208 : vector<4x256xf32>
    %210 = arith.addf %184, %209 : vector<4x256xf32>
    %c0_96 = arith.constant 0 : index
    %c33 = arith.constant 33 : index
    %211 = vector.load %arg13[%c0_96, %c33] : memref<16x290xf32, #tpu.memory_space<vmem>>, vector<1x256xf32>
    %c0_97 = arith.constant 0 : index
    %c28 = arith.constant 28 : index
    %212 = vector.load %arg2[%c0_97, %c28] : memref<4x36xf32, #tpu.memory_space<vmem>>, vector<4x1xf32>
    %213 = vector.broadcast %212 : vector<4x1xf32> to vector<4x256xf32>
    %214 = vector.broadcast %211 : vector<1x256xf32> to vector<4x256xf32>
    %215 = arith.mulf %213, %214 : vector<4x256xf32>
    %c1_98 = arith.constant 1 : index
    %c33_99 = arith.constant 33 : index
    %216 = vector.load %arg13[%c1_98, %c33_99] : memref<16x290xf32, #tpu.memory_space<vmem>>, vector<1x256xf32>
    %c0_100 = arith.constant 0 : index
    %c29 = arith.constant 29 : index
    %217 = vector.load %arg2[%c0_100, %c29] : memref<4x36xf32, #tpu.memory_space<vmem>>, vector<4x1xf32>
    %218 = vector.broadcast %217 : vector<4x1xf32> to vector<4x256xf32>
    %219 = vector.broadcast %216 : vector<1x256xf32> to vector<4x256xf32>
    %220 = arith.mulf %218, %219 : vector<4x256xf32>
    %221 = arith.addf %215, %220 : vector<4x256xf32>
    %c2_101 = arith.constant 2 : index
    %c33_102 = arith.constant 33 : index
    %222 = vector.load %arg13[%c2_101, %c33_102] : memref<16x290xf32, #tpu.memory_space<vmem>>, vector<1x256xf32>
    %c0_103 = arith.constant 0 : index
    %c30 = arith.constant 30 : index
    %223 = vector.load %arg2[%c0_103, %c30] : memref<4x36xf32, #tpu.memory_space<vmem>>, vector<4x1xf32>
    %224 = vector.broadcast %223 : vector<4x1xf32> to vector<4x256xf32>
    %225 = vector.broadcast %222 : vector<1x256xf32> to vector<4x256xf32>
    %226 = arith.mulf %224, %225 : vector<4x256xf32>
    %227 = arith.addf %221, %226 : vector<4x256xf32>
    %c3_104 = arith.constant 3 : index
    %c33_105 = arith.constant 33 : index
    %228 = vector.load %arg13[%c3_104, %c33_105] : memref<16x290xf32, #tpu.memory_space<vmem>>, vector<1x256xf32>
    %c0_106 = arith.constant 0 : index
    %c31 = arith.constant 31 : index
    %229 = vector.load %arg2[%c0_106, %c31] : memref<4x36xf32, #tpu.memory_space<vmem>>, vector<4x1xf32>
    %230 = vector.broadcast %229 : vector<4x1xf32> to vector<4x256xf32>
    %231 = vector.broadcast %228 : vector<1x256xf32> to vector<4x256xf32>
    %232 = arith.mulf %230, %231 : vector<4x256xf32>
    %233 = arith.addf %227, %232 : vector<4x256xf32>
    %234 = arith.addf %210, %233 : vector<4x256xf32>
    %c0_107 = arith.constant 0 : index
    %c34 = arith.constant 34 : index
    %235 = vector.load %arg13[%c0_107, %c34] : memref<16x290xf32, #tpu.memory_space<vmem>>, vector<1x256xf32>
    %c0_108 = arith.constant 0 : index
    %c32_109 = arith.constant 32 : index
    %236 = vector.load %arg2[%c0_108, %c32_109] : memref<4x36xf32, #tpu.memory_space<vmem>>, vector<4x1xf32>
    %237 = vector.broadcast %236 : vector<4x1xf32> to vector<4x256xf32>
    %238 = vector.broadcast %235 : vector<1x256xf32> to vector<4x256xf32>
    %239 = arith.mulf %237, %238 : vector<4x256xf32>
    %c1_110 = arith.constant 1 : index
    %c34_111 = arith.constant 34 : index
    %240 = vector.load %arg13[%c1_110, %c34_111] : memref<16x290xf32, #tpu.memory_space<vmem>>, vector<1x256xf32>
    %c0_112 = arith.constant 0 : index
    %c33_113 = arith.constant 33 : index
    %241 = vector.load %arg2[%c0_112, %c33_113] : memref<4x36xf32, #tpu.memory_space<vmem>>, vector<4x1xf32>
    %242 = vector.broadcast %241 : vector<4x1xf32> to vector<4x256xf32>
    %243 = vector.broadcast %240 : vector<1x256xf32> to vector<4x256xf32>
    %244 = arith.mulf %242, %243 : vector<4x256xf32>
    %245 = arith.addf %239, %244 : vector<4x256xf32>
    %c2_114 = arith.constant 2 : index
    %c34_115 = arith.constant 34 : index
    %246 = vector.load %arg13[%c2_114, %c34_115] : memref<16x290xf32, #tpu.memory_space<vmem>>, vector<1x256xf32>
    %c0_116 = arith.constant 0 : index
    %c34_117 = arith.constant 34 : index
    %247 = vector.load %arg2[%c0_116, %c34_117] : memref<4x36xf32, #tpu.memory_space<vmem>>, vector<4x1xf32>
    %248 = vector.broadcast %247 : vector<4x1xf32> to vector<4x256xf32>
    %249 = vector.broadcast %246 : vector<1x256xf32> to vector<4x256xf32>
    %250 = arith.mulf %248, %249 : vector<4x256xf32>
    %251 = arith.addf %245, %250 : vector<4x256xf32>
    %c3_118 = arith.constant 3 : index
    %c34_119 = arith.constant 34 : index
    %252 = vector.load %arg13[%c3_118, %c34_119] : memref<16x290xf32, #tpu.memory_space<vmem>>, vector<1x256xf32>
    %c0_120 = arith.constant 0 : index
    %c35 = arith.constant 35 : index
    %253 = vector.load %arg2[%c0_120, %c35] : memref<4x36xf32, #tpu.memory_space<vmem>>, vector<4x1xf32>
    %254 = vector.broadcast %253 : vector<4x1xf32> to vector<4x256xf32>
    %255 = vector.broadcast %252 : vector<1x256xf32> to vector<4x256xf32>
    %256 = arith.mulf %254, %255 : vector<4x256xf32>
    %257 = arith.addf %251, %256 : vector<4x256xf32>
    %258 = vector.broadcast %26 : vector<1x256xf32> to vector<4x256xf32>
    %259 = arith.mulf %257, %258 : vector<4x256xf32>
    %260 = arith.addf %234, %259 : vector<4x256xf32>
    %cst_121 = arith.constant dense<0.000000e+00> : vector<4xf32>
    %261 = vector.multi_reduction <add>, %260, %cst_121 [1] : vector<4x256xf32> to vector<4xf32>
    %262 = vector.shape_cast %261 : vector<4xf32> to vector<4x1xf32>
    %cst_122 = arith.constant 2.560000e+02 : f32
    %263 = vector.broadcast %cst_122 : f32 to vector<4x1xf32>
    %264 = arith.divf %262, %263 : vector<4x1xf32>
    %cst_123 = arith.constant dense<0xFF800000> : vector<4xf32>
    %265 = vector.multi_reduction <maximumf>, %260, %cst_123 [1] : vector<4x256xf32> to vector<4xf32>
    %266 = vector.shape_cast %265 : vector<4xf32> to vector<4x1xf32>
    %267 = tpu.iota {dimensions = array<i32: 1>} : vector<4x2xi32>
    %c0_i32_124 = arith.constant 0 : i32
    %268 = vector.broadcast %c0_i32_124 : i32 to vector<4x2xi32>
    %269 = arith.cmpi eq, %267, %268 : vector<4x2xi32>
    %270 = vector.shape_cast %264 : vector<4x1xf32> to vector<4x1xf32>
    %271 = vector.broadcast %270 : vector<4x1xf32> to vector<4x2xf32>
    %272 = vector.shape_cast %266 : vector<4x1xf32> to vector<4x1xf32>
    %273 = vector.broadcast %272 : vector<4x1xf32> to vector<4x2xf32>
    %274 = arith.select %269, %271, %273 : vector<4x2xi1>, vector<4x2xf32>
    %c0_125 = arith.constant 0 : index
    %c0_126 = arith.constant 0 : index
    %275 = vector.load %arg4[%c0_125, %c0_126] : memref<4x4xf32, #tpu.memory_space<vmem>>, vector<4x4xf32>
    %cst_127 = arith.constant dense<0.000000e+00> : vector<4x2xf32>
    %276 = tpu.matmul %275, %274, %cst_127 {dimension_numbers = #tpu.dot_dimension_numbers<[1], [0], [0], [1], [0, 0, 1, 1], [], []>} : vector<4x4xf32>, vector<4x2xf32>, vector<4x2xf32> -> vector<4x2xf32>
    %c0_128 = arith.constant 0 : index
    %c0_129 = arith.constant 0 : index
    %277 = vector.load %arg5[%c0_128, %c0_129] : memref<4x1xf32, #tpu.memory_space<vmem>>, vector<4x1xf32>
    %278 = vector.broadcast %277 : vector<4x1xf32> to vector<4x2xf32>
    %279 = arith.addf %276, %278 : vector<4x2xf32>
    %cst_130 = arith.constant 0.000000e+00 : f32
    %280 = vector.broadcast %cst_130 : f32 to vector<4x2xf32>
    %281 = arith.maximumf %279, %280 : vector<4x2xf32>
    %c0_131 = arith.constant 0 : index
    %c0_132 = arith.constant 0 : index
    %282 = vector.load %arg6[%c0_131, %c0_132] : memref<4x4xf32, #tpu.memory_space<vmem>>, vector<4x4xf32>
    %cst_133 = arith.constant dense<0.000000e+00> : vector<4x2xf32>
    %283 = tpu.matmul %282, %281, %cst_133 {dimension_numbers = #tpu.dot_dimension_numbers<[1], [0], [0], [1], [0, 0, 1, 1], [], []>} : vector<4x4xf32>, vector<4x2xf32>, vector<4x2xf32> -> vector<4x2xf32>
    %c0_134 = arith.constant 0 : index
    %c0_135 = arith.constant 0 : index
    %284 = vector.load %arg7[%c0_134, %c0_135] : memref<4x1xf32, #tpu.memory_space<vmem>>, vector<4x1xf32>
    %285 = vector.broadcast %284 : vector<4x1xf32> to vector<4x2xf32>
    %286 = arith.addf %283, %285 : vector<4x2xf32>
    %287 = vector.extract_strided_slice %286 {offsets = [0, 0], sizes = [4, 1], strides = [1, 1]} : vector<4x2xf32> to vector<4x1xf32>
    %288 = vector.extract_strided_slice %286 {offsets = [0, 1], sizes = [4, 1], strides = [1, 1]} : vector<4x2xf32> to vector<4x1xf32>
    %289 = arith.addf %287, %288 : vector<4x1xf32>
    %cst_136 = arith.constant 0.000000e+00 : f32
    %290 = vector.broadcast %cst_136 : f32 to vector<4x1xf32>
    %291 = arith.subf %290, %289 : vector<4x1xf32>
    %292 = math.exp %291 : vector<4x1xf32>
    %cst_137 = arith.constant 1.000000e+00 : f32
    %293 = vector.broadcast %cst_137 : f32 to vector<4x1xf32>
    %294 = arith.addf %293, %292 : vector<4x1xf32>
    %cst_138 = arith.constant 1.000000e+00 : f32
    %295 = vector.broadcast %cst_138 : f32 to vector<4x1xf32>
    %296 = arith.divf %295, %294 : vector<4x1xf32>
    %297 = vector.broadcast %296 : vector<4x1xf32> to vector<4x256xf32>
    %298 = arith.mulf %260, %297 : vector<4x256xf32>
    %cst_139 = arith.constant dense<0.000000e+00> : vector<256xf32>
    %299 = vector.multi_reduction <add>, %298, %cst_139 [0] : vector<4x256xf32> to vector<256xf32>
    %300 = vector.shape_cast %299 : vector<256xf32> to vector<1x256xf32>
    %cst_140 = arith.constant 4.000000e+00 : f32
    %301 = vector.broadcast %cst_140 : f32 to vector<1x256xf32>
    %302 = arith.divf %300, %301 : vector<1x256xf32>
    %cst_141 = arith.constant dense<0xFF800000> : vector<256xf32>
    %303 = vector.multi_reduction <maximumf>, %298, %cst_141 [0] : vector<4x256xf32> to vector<256xf32>
    %304 = vector.shape_cast %303 : vector<256xf32> to vector<1x256xf32>
    %c0_142 = arith.constant 0 : index
    %c17_143 = arith.constant 17 : index
    %305 = vector.load %arg13[%c0_142, %c17_143] : memref<16x290xf32, #tpu.memory_space<vmem>>, vector<1x256xf32>
    tpu.vector_store %arg13[%c0_142, %c17_143], %302 {strides = array<i32>} : memref<16x290xf32, #tpu.memory_space<vmem>>, vector<1x256xf32>,
    %c1_144 = arith.constant 1 : index
    %c17_145 = arith.constant 17 : index
    %306 = vector.load %arg13[%c1_144, %c17_145] : memref<16x290xf32, #tpu.memory_space<vmem>>, vector<1x256xf32>
    tpu.vector_store %arg13[%c1_144, %c17_145], %304 {strides = array<i32>} : memref<16x290xf32, #tpu.memory_space<vmem>>, vector<1x256xf32>,
    %c0_146 = arith.constant 0 : index
    %c0_147 = arith.constant 0 : index
    %307 = vector.load %arg9[%c0_146, %c0_147] : memref<16x1xf32, #tpu.memory_space<vmem>>, vector<16x1xf32>
    %308 = vector.shape_cast %307 : vector<16x1xf32> to vector<16x1xf32>
    %309 = vector.broadcast %308 : vector<16x1xf32> to vector<16x256xf32>
    %c0_148 = arith.constant 0 : index
    %c0_149 = arith.constant 0 : index
    %310 = vector.load %arg13[%c0_148, %c0_149] : memref<16x290xf32, #tpu.memory_space<vmem>>, vector<1x256xf32>
    %c1_150 = arith.constant 1 : index
    %c0_151 = arith.constant 0 : index
    %311 = vector.load %arg13[%c1_150, %c0_151] : memref<16x290xf32, #tpu.memory_space<vmem>>, vector<1x256xf32>
    %c0_152 = arith.constant 0 : index
    %c0_153 = arith.constant 0 : index
    %312 = vector.load %arg8[%c0_152, %c0_153] : memref<16x18xf32, #tpu.memory_space<vmem>>, vector<16x1xf32>
    %313 = vector.broadcast %312 : vector<16x1xf32> to vector<16x256xf32>
    %314 = vector.broadcast %310 : vector<1x256xf32> to vector<16x256xf32>
    %315 = arith.mulf %313, %314 : vector<16x256xf32>
    %c0_154 = arith.constant 0 : index
    %c1_155 = arith.constant 1 : index
    %316 = vector.load %arg8[%c0_154, %c1_155] : memref<16x18xf32, #tpu.memory_space<vmem>>, vector<16x1xf32>
    %317 = vector.broadcast %316 : vector<16x1xf32> to vector<16x256xf32>
    %318 = vector.broadcast %311 : vector<1x256xf32> to vector<16x256xf32>
    %319 = arith.mulf %317, %318 : vector<16x256xf32>
    %320 = arith.addf %315, %319 : vector<16x256xf32>
    %321 = vector.broadcast %22 : vector<1x256xf32> to vector<16x256xf32>
    %322 = arith.mulf %320, %321 : vector<16x256xf32>
    %323 = arith.addf %309, %322 : vector<16x256xf32>
    %c0_156 = arith.constant 0 : index
    %c1_157 = arith.constant 1 : index
    %324 = vector.load %arg13[%c0_156, %c1_157] : memref<16x290xf32, #tpu.memory_space<vmem>>, vector<1x256xf32>
    %c1_158 = arith.constant 1 : index
    %c1_159 = arith.constant 1 : index
    %325 = vector.load %arg13[%c1_158, %c1_159] : memref<16x290xf32, #tpu.memory_space<vmem>>, vector<1x256xf32>
    %c0_160 = arith.constant 0 : index
    %c2_161 = arith.constant 2 : index
    %326 = vector.load %arg8[%c0_160, %c2_161] : memref<16x18xf32, #tpu.memory_space<vmem>>, vector<16x1xf32>
    %327 = vector.broadcast %326 : vector<16x1xf32> to vector<16x256xf32>
    %328 = vector.broadcast %324 : vector<1x256xf32> to vector<16x256xf32>
    %329 = arith.mulf %327, %328 : vector<16x256xf32>
    %c0_162 = arith.constant 0 : index
    %c3_163 = arith.constant 3 : index
    %330 = vector.load %arg8[%c0_162, %c3_163] : memref<16x18xf32, #tpu.memory_space<vmem>>, vector<16x1xf32>
    %331 = vector.broadcast %330 : vector<16x1xf32> to vector<16x256xf32>
    %332 = vector.broadcast %325 : vector<1x256xf32> to vector<16x256xf32>
    %333 = arith.mulf %331, %332 : vector<16x256xf32>
    %334 = arith.addf %329, %333 : vector<16x256xf32>
    %335 = arith.addf %323, %334 : vector<16x256xf32>
    %c0_164 = arith.constant 0 : index
    %c2_165 = arith.constant 2 : index
    %336 = vector.load %arg13[%c0_164, %c2_165] : memref<16x290xf32, #tpu.memory_space<vmem>>, vector<1x256xf32>
    %c1_166 = arith.constant 1 : index
    %c2_167 = arith.constant 2 : index
    %337 = vector.load %arg13[%c1_166, %c2_167] : memref<16x290xf32, #tpu.memory_space<vmem>>, vector<1x256xf32>
    %c0_168 = arith.constant 0 : index
    %c4_169 = arith.constant 4 : index
    %338 = vector.load %arg8[%c0_168, %c4_169] : memref<16x18xf32, #tpu.memory_space<vmem>>, vector<16x1xf32>
    %339 = vector.broadcast %338 : vector<16x1xf32> to vector<16x256xf32>
    %340 = vector.broadcast %336 : vector<1x256xf32> to vector<16x256xf32>
    %341 = arith.mulf %339, %340 : vector<16x256xf32>
    %c0_170 = arith.constant 0 : index
    %c5_171 = arith.constant 5 : index
    %342 = vector.load %arg8[%c0_170, %c5_171] : memref<16x18xf32, #tpu.memory_space<vmem>>, vector<16x1xf32>
    %343 = vector.broadcast %342 : vector<16x1xf32> to vector<16x256xf32>
    %344 = vector.broadcast %337 : vector<1x256xf32> to vector<16x256xf32>
    %345 = arith.mulf %343, %344 : vector<16x256xf32>
    %346 = arith.addf %341, %345 : vector<16x256xf32>
    %347 = vector.broadcast %26 : vector<1x256xf32> to vector<16x256xf32>
    %348 = arith.mulf %346, %347 : vector<16x256xf32>
    %349 = arith.addf %335, %348 : vector<16x256xf32>
    %c0_172 = arith.constant 0 : index
    %c16_173 = arith.constant 16 : index
    %350 = vector.load %arg13[%c0_172, %c16_173] : memref<16x290xf32, #tpu.memory_space<vmem>>, vector<1x256xf32>
    %c1_174 = arith.constant 1 : index
    %c16_175 = arith.constant 16 : index
    %351 = vector.load %arg13[%c1_174, %c16_175] : memref<16x290xf32, #tpu.memory_space<vmem>>, vector<1x256xf32>
    %c0_176 = arith.constant 0 : index
    %c6_177 = arith.constant 6 : index
    %352 = vector.load %arg8[%c0_176, %c6_177] : memref<16x18xf32, #tpu.memory_space<vmem>>, vector<16x1xf32>
    %353 = vector.broadcast %352 : vector<16x1xf32> to vector<16x256xf32>
    %354 = vector.broadcast %350 : vector<1x256xf32> to vector<16x256xf32>
    %355 = arith.mulf %353, %354 : vector<16x256xf32>
    %c0_178 = arith.constant 0 : index
    %c7_179 = arith.constant 7 : index
    %356 = vector.load %arg8[%c0_178, %c7_179] : memref<16x18xf32, #tpu.memory_space<vmem>>, vector<16x1xf32>
    %357 = vector.broadcast %356 : vector<16x1xf32> to vector<16x256xf32>
    %358 = vector.broadcast %351 : vector<1x256xf32> to vector<16x256xf32>
    %359 = arith.mulf %357, %358 : vector<16x256xf32>
    %360 = arith.addf %355, %359 : vector<16x256xf32>
    %361 = vector.broadcast %22 : vector<1x256xf32> to vector<16x256xf32>
    %362 = arith.mulf %360, %361 : vector<16x256xf32>
    %363 = arith.addf %349, %362 : vector<16x256xf32>
    %c0_180 = arith.constant 0 : index
    %c17_181 = arith.constant 17 : index
    %364 = vector.load %arg13[%c0_180, %c17_181] : memref<16x290xf32, #tpu.memory_space<vmem>>, vector<1x256xf32>
    %c1_182 = arith.constant 1 : index
    %c17_183 = arith.constant 17 : index
    %365 = vector.load %arg13[%c1_182, %c17_183] : memref<16x290xf32, #tpu.memory_space<vmem>>, vector<1x256xf32>
    %c0_184 = arith.constant 0 : index
    %c8_185 = arith.constant 8 : index
    %366 = vector.load %arg8[%c0_184, %c8_185] : memref<16x18xf32, #tpu.memory_space<vmem>>, vector<16x1xf32>
    %367 = vector.broadcast %366 : vector<16x1xf32> to vector<16x256xf32>
    %368 = vector.broadcast %364 : vector<1x256xf32> to vector<16x256xf32>
    %369 = arith.mulf %367, %368 : vector<16x256xf32>
    %c0_186 = arith.constant 0 : index
    %c9_187 = arith.constant 9 : index
    %370 = vector.load %arg8[%c0_186, %c9_187] : memref<16x18xf32, #tpu.memory_space<vmem>>, vector<16x1xf32>
    %371 = vector.broadcast %370 : vector<16x1xf32> to vector<16x256xf32>
    %372 = vector.broadcast %365 : vector<1x256xf32> to vector<16x256xf32>
    %373 = arith.mulf %371, %372 : vector<16x256xf32>
    %374 = arith.addf %369, %373 : vector<16x256xf32>
    %375 = arith.addf %363, %374 : vector<16x256xf32>
    %c0_188 = arith.constant 0 : index
    %c18_189 = arith.constant 18 : index
    %376 = vector.load %arg13[%c0_188, %c18_189] : memref<16x290xf32, #tpu.memory_space<vmem>>, vector<1x256xf32>
    %c1_190 = arith.constant 1 : index
    %c18_191 = arith.constant 18 : index
    %377 = vector.load %arg13[%c1_190, %c18_191] : memref<16x290xf32, #tpu.memory_space<vmem>>, vector<1x256xf32>
    %c0_192 = arith.constant 0 : index
    %c10_193 = arith.constant 10 : index
    %378 = vector.load %arg8[%c0_192, %c10_193] : memref<16x18xf32, #tpu.memory_space<vmem>>, vector<16x1xf32>
    %379 = vector.broadcast %378 : vector<16x1xf32> to vector<16x256xf32>
    %380 = vector.broadcast %376 : vector<1x256xf32> to vector<16x256xf32>
    %381 = arith.mulf %379, %380 : vector<16x256xf32>
    %c0_194 = arith.constant 0 : index
    %c11_195 = arith.constant 11 : index
    %382 = vector.load %arg8[%c0_194, %c11_195] : memref<16x18xf32, #tpu.memory_space<vmem>>, vector<16x1xf32>
    %383 = vector.broadcast %382 : vector<16x1xf32> to vector<16x256xf32>
    %384 = vector.broadcast %377 : vector<1x256xf32> to vector<16x256xf32>
    %385 = arith.mulf %383, %384 : vector<16x256xf32>
    %386 = arith.addf %381, %385 : vector<16x256xf32>
    %387 = vector.broadcast %26 : vector<1x256xf32> to vector<16x256xf32>
    %388 = arith.mulf %386, %387 : vector<16x256xf32>
    %389 = arith.addf %375, %388 : vector<16x256xf32>
    %c0_196 = arith.constant 0 : index
    %c32_197 = arith.constant 32 : index
    %390 = vector.load %arg13[%c0_196, %c32_197] : memref<16x290xf32, #tpu.memory_space<vmem>>, vector<1x256xf32>
    %c1_198 = arith.constant 1 : index
    %c32_199 = arith.constant 32 : index
    %391 = vector.load %arg13[%c1_198, %c32_199] : memref<16x290xf32, #tpu.memory_space<vmem>>, vector<1x256xf32>
    %c0_200 = arith.constant 0 : index
    %c12_201 = arith.constant 12 : index
    %392 = vector.load %arg8[%c0_200, %c12_201] : memref<16x18xf32, #tpu.memory_space<vmem>>, vector<16x1xf32>
    %393 = vector.broadcast %392 : vector<16x1xf32> to vector<16x256xf32>
    %394 = vector.broadcast %390 : vector<1x256xf32> to vector<16x256xf32>
    %395 = arith.mulf %393, %394 : vector<16x256xf32>
    %c0_202 = arith.constant 0 : index
    %c13_203 = arith.constant 13 : index
    %396 = vector.load %arg8[%c0_202, %c13_203] : memref<16x18xf32, #tpu.memory_space<vmem>>, vector<16x1xf32>
    %397 = vector.broadcast %396 : vector<16x1xf32> to vector<16x256xf32>
    %398 = vector.broadcast %391 : vector<1x256xf32> to vector<16x256xf32>
    %399 = arith.mulf %397, %398 : vector<16x256xf32>
    %400 = arith.addf %395, %399 : vector<16x256xf32>
    %401 = vector.broadcast %22 : vector<1x256xf32> to vector<16x256xf32>
    %402 = arith.mulf %400, %401 : vector<16x256xf32>
    %403 = arith.addf %389, %402 : vector<16x256xf32>
    %c0_204 = arith.constant 0 : index
    %c33_205 = arith.constant 33 : index
    %404 = vector.load %arg13[%c0_204, %c33_205] : memref<16x290xf32, #tpu.memory_space<vmem>>, vector<1x256xf32>
    %c1_206 = arith.constant 1 : index
    %c33_207 = arith.constant 33 : index
    %405 = vector.load %arg13[%c1_206, %c33_207] : memref<16x290xf32, #tpu.memory_space<vmem>>, vector<1x256xf32>
    %c0_208 = arith.constant 0 : index
    %c14_209 = arith.constant 14 : index
    %406 = vector.load %arg8[%c0_208, %c14_209] : memref<16x18xf32, #tpu.memory_space<vmem>>, vector<16x1xf32>
    %407 = vector.broadcast %406 : vector<16x1xf32> to vector<16x256xf32>
    %408 = vector.broadcast %404 : vector<1x256xf32> to vector<16x256xf32>
    %409 = arith.mulf %407, %408 : vector<16x256xf32>
    %c0_210 = arith.constant 0 : index
    %c15_211 = arith.constant 15 : index
    %410 = vector.load %arg8[%c0_210, %c15_211] : memref<16x18xf32, #tpu.memory_space<vmem>>, vector<16x1xf32>
    %411 = vector.broadcast %410 : vector<16x1xf32> to vector<16x256xf32>
    %412 = vector.broadcast %405 : vector<1x256xf32> to vector<16x256xf32>
    %413 = arith.mulf %411, %412 : vector<16x256xf32>
    %414 = arith.addf %409, %413 : vector<16x256xf32>
    %415 = arith.addf %403, %414 : vector<16x256xf32>
    %c0_212 = arith.constant 0 : index
    %c34_213 = arith.constant 34 : index
    %416 = vector.load %arg13[%c0_212, %c34_213] : memref<16x290xf32, #tpu.memory_space<vmem>>, vector<1x256xf32>
    %c1_214 = arith.constant 1 : index
    %c34_215 = arith.constant 34 : index
    %417 = vector.load %arg13[%c1_214, %c34_215] : memref<16x290xf32, #tpu.memory_space<vmem>>, vector<1x256xf32>
    %c0_216 = arith.constant 0 : index
    %c16_217 = arith.constant 16 : index
    %418 = vector.load %arg8[%c0_216, %c16_217] : memref<16x18xf32, #tpu.memory_space<vmem>>, vector<16x1xf32>
    %419 = vector.broadcast %418 : vector<16x1xf32> to vector<16x256xf32>
    %420 = vector.broadcast %416 : vector<1x256xf32> to vector<16x256xf32>
    %421 = arith.mulf %419, %420 : vector<16x256xf32>
    %c0_218 = arith.constant 0 : index
    %c17_219 = arith.constant 17 : index
    %422 = vector.load %arg8[%c0_218, %c17_219] : memref<16x18xf32, #tpu.memory_space<vmem>>, vector<16x1xf32>
    %423 = vector.broadcast %422 : vector<16x1xf32> to vector<16x256xf32>
    %424 = vector.broadcast %417 : vector<1x256xf32> to vector<16x256xf32>
    %425 = arith.mulf %423, %424 : vector<16x256xf32>
    %426 = arith.addf %421, %425 : vector<16x256xf32>
    %427 = vector.broadcast %26 : vector<1x256xf32> to vector<16x256xf32>
    %428 = arith.mulf %426, %427 : vector<16x256xf32>
    %429 = arith.addf %415, %428 : vector<16x256xf32>
    %cst_220 = arith.constant 0.000000e+00 : f32
    %430 = vector.broadcast %cst_220 : f32 to vector<16x256xf32>
    %431 = arith.maximumf %429, %430 : vector<16x256xf32>
    %c0_221 = arith.constant 0 : index
    %c17_222 = arith.constant 17 : index
    %432 = vector.load %arg13[%c0_221, %c17_222] : memref<16x290xf32, #tpu.memory_space<vmem>>, vector<16x256xf32>
    tpu.vector_store %arg13[%c0_221, %c17_222], %431 {strides = array<i32>} : memref<16x290xf32, #tpu.memory_space<vmem>>, vector<16x256xf32>,
    %c0_223 = arith.constant 0 : index
    %c0_224 = arith.constant 0 : index
    %433 = vector.load %arg11[%c0_223, %c0_224] : memref<1x1xf32, #tpu.memory_space<vmem>>, vector<1x1xf32>
    %434 = vector.shape_cast %433 : vector<1x1xf32> to vector<1x1xf32>
    %435 = vector.broadcast %434 : vector<1x1xf32> to vector<1x256xf32>
    %c0_225 = arith.constant 0 : index
    %c0_226 = arith.constant 0 : index
    %436 = vector.load %arg13[%c0_225, %c0_226] : memref<16x290xf32, #tpu.memory_space<vmem>>, vector<16x256xf32>
    %c0_227 = arith.constant 0 : index
    %c0_228 = arith.constant 0 : index
    %437 = vector.load %arg10[%c0_227, %c0_228] : memref<16x9xf32, #tpu.memory_space<vmem>>, vector<16x1xf32>
    %438 = vector.broadcast %437 : vector<16x1xf32> to vector<16x256xf32>
    %439 = arith.mulf %438, %436 : vector<16x256xf32>
    %cst_229 = arith.constant dense<0.000000e+00> : vector<256xf32>
    %440 = vector.multi_reduction <add>, %439, %cst_229 [0] : vector<16x256xf32> to vector<256xf32>
    %441 = vector.shape_cast %440 : vector<256xf32> to vector<1x256xf32>
    %442 = arith.mulf %441, %22 : vector<1x256xf32>
    %443 = arith.addf %435, %442 : vector<1x256xf32>
    %c0_230 = arith.constant 0 : index
    %c1_231 = arith.constant 1 : index
    %444 = vector.load %arg13[%c0_230, %c1_231] : memref<16x290xf32, #tpu.memory_space<vmem>>, vector<16x256xf32>
    %c0_232 = arith.constant 0 : index
    %c1_233 = arith.constant 1 : index
    %445 = vector.load %arg10[%c0_232, %c1_233] : memref<16x9xf32, #tpu.memory_space<vmem>>, vector<16x1xf32>
    %446 = vector.broadcast %445 : vector<16x1xf32> to vector<16x256xf32>
    %447 = arith.mulf %446, %444 : vector<16x256xf32>
    %cst_234 = arith.constant dense<0.000000e+00> : vector<256xf32>
    %448 = vector.multi_reduction <add>, %447, %cst_234 [0] : vector<16x256xf32> to vector<256xf32>
    %449 = vector.shape_cast %448 : vector<256xf32> to vector<1x256xf32>
    %450 = arith.addf %443, %449 : vector<1x256xf32>
    %c0_235 = arith.constant 0 : index
    %c2_236 = arith.constant 2 : index
    %451 = vector.load %arg13[%c0_235, %c2_236] : memref<16x290xf32, #tpu.memory_space<vmem>>, vector<16x256xf32>
    %c0_237 = arith.constant 0 : index
    %c2_238 = arith.constant 2 : index
    %452 = vector.load %arg10[%c0_237, %c2_238] : memref<16x9xf32, #tpu.memory_space<vmem>>, vector<16x1xf32>
    %453 = vector.broadcast %452 : vector<16x1xf32> to vector<16x256xf32>
    %454 = arith.mulf %453, %451 : vector<16x256xf32>
    %cst_239 = arith.constant dense<0.000000e+00> : vector<256xf32>
    %455 = vector.multi_reduction <add>, %454, %cst_239 [0] : vector<16x256xf32> to vector<256xf32>
    %456 = vector.shape_cast %455 : vector<256xf32> to vector<1x256xf32>
    %457 = arith.mulf %456, %26 : vector<1x256xf32>
    %458 = arith.addf %450, %457 : vector<1x256xf32>
    %c0_240 = arith.constant 0 : index
    %c16_241 = arith.constant 16 : index
    %459 = vector.load %arg13[%c0_240, %c16_241] : memref<16x290xf32, #tpu.memory_space<vmem>>, vector<16x256xf32>
    %c0_242 = arith.constant 0 : index
    %c3_243 = arith.constant 3 : index
    %460 = vector.load %arg10[%c0_242, %c3_243] : memref<16x9xf32, #tpu.memory_space<vmem>>, vector<16x1xf32>
    %461 = vector.broadcast %460 : vector<16x1xf32> to vector<16x256xf32>
    %462 = arith.mulf %461, %459 : vector<16x256xf32>
    %cst_244 = arith.constant dense<0.000000e+00> : vector<256xf32>
    %463 = vector.multi_reduction <add>, %462, %cst_244 [0] : vector<16x256xf32> to vector<256xf32>
    %464 = vector.shape_cast %463 : vector<256xf32> to vector<1x256xf32>
    %465 = arith.mulf %464, %22 : vector<1x256xf32>
    %466 = arith.addf %458, %465 : vector<1x256xf32>
    %c0_245 = arith.constant 0 : index
    %c17_246 = arith.constant 17 : index
    %467 = vector.load %arg13[%c0_245, %c17_246] : memref<16x290xf32, #tpu.memory_space<vmem>>, vector<16x256xf32>
    %c0_247 = arith.constant 0 : index
    %c4_248 = arith.constant 4 : index
    %468 = vector.load %arg10[%c0_247, %c4_248] : memref<16x9xf32, #tpu.memory_space<vmem>>, vector<16x1xf32>
    %469 = vector.broadcast %468 : vector<16x1xf32> to vector<16x256xf32>
    %470 = arith.mulf %469, %467 : vector<16x256xf32>
    %cst_249 = arith.constant dense<0.000000e+00> : vector<256xf32>
    %471 = vector.multi_reduction <add>, %470, %cst_249 [0] : vector<16x256xf32> to vector<256xf32>
    %472 = vector.shape_cast %471 : vector<256xf32> to vector<1x256xf32>
    %473 = arith.addf %466, %472 : vector<1x256xf32>
    %c0_250 = arith.constant 0 : index
    %c18_251 = arith.constant 18 : index
    %474 = vector.load %arg13[%c0_250, %c18_251] : memref<16x290xf32, #tpu.memory_space<vmem>>, vector<16x256xf32>
    %c0_252 = arith.constant 0 : index
    %c5_253 = arith.constant 5 : index
    %475 = vector.load %arg10[%c0_252, %c5_253] : memref<16x9xf32, #tpu.memory_space<vmem>>, vector<16x1xf32>
    %476 = vector.broadcast %475 : vector<16x1xf32> to vector<16x256xf32>
    %477 = arith.mulf %476, %474 : vector<16x256xf32>
    %cst_254 = arith.constant dense<0.000000e+00> : vector<256xf32>
    %478 = vector.multi_reduction <add>, %477, %cst_254 [0] : vector<16x256xf32> to vector<256xf32>
    %479 = vector.shape_cast %478 : vector<256xf32> to vector<1x256xf32>
    %480 = arith.mulf %479, %26 : vector<1x256xf32>
    %481 = arith.addf %473, %480 : vector<1x256xf32>
    %c0_255 = arith.constant 0 : index
    %c32_256 = arith.constant 32 : index
    %482 = vector.load %arg13[%c0_255, %c32_256] : memref<16x290xf32, #tpu.memory_space<vmem>>, vector<16x256xf32>
    %c0_257 = arith.constant 0 : index
    %c6_258 = arith.constant 6 : index
    %483 = vector.load %arg10[%c0_257, %c6_258] : memref<16x9xf32, #tpu.memory_space<vmem>>, vector<16x1xf32>
    %484 = vector.broadcast %483 : vector<16x1xf32> to vector<16x256xf32>
    %485 = arith.mulf %484, %482 : vector<16x256xf32>
    %cst_259 = arith.constant dense<0.000000e+00> : vector<256xf32>
    %486 = vector.multi_reduction <add>, %485, %cst_259 [0] : vector<16x256xf32> to vector<256xf32>
    %487 = vector.shape_cast %486 : vector<256xf32> to vector<1x256xf32>
    %488 = arith.mulf %487, %22 : vector<1x256xf32>
    %489 = arith.addf %481, %488 : vector<1x256xf32>
    %c0_260 = arith.constant 0 : index
    %c33_261 = arith.constant 33 : index
    %490 = vector.load %arg13[%c0_260, %c33_261] : memref<16x290xf32, #tpu.memory_space<vmem>>, vector<16x256xf32>
    %c0_262 = arith.constant 0 : index
    %c7_263 = arith.constant 7 : index
    %491 = vector.load %arg10[%c0_262, %c7_263] : memref<16x9xf32, #tpu.memory_space<vmem>>, vector<16x1xf32>
    %492 = vector.broadcast %491 : vector<16x1xf32> to vector<16x256xf32>
    %493 = arith.mulf %492, %490 : vector<16x256xf32>
    %cst_264 = arith.constant dense<0.000000e+00> : vector<256xf32>
    %494 = vector.multi_reduction <add>, %493, %cst_264 [0] : vector<16x256xf32> to vector<256xf32>
    %495 = vector.shape_cast %494 : vector<256xf32> to vector<1x256xf32>
    %496 = arith.addf %489, %495 : vector<1x256xf32>
    %c0_265 = arith.constant 0 : index
    %c34_266 = arith.constant 34 : index
    %497 = vector.load %arg13[%c0_265, %c34_266] : memref<16x290xf32, #tpu.memory_space<vmem>>, vector<16x256xf32>
    %c0_267 = arith.constant 0 : index
    %c8_268 = arith.constant 8 : index
    %498 = vector.load %arg10[%c0_267, %c8_268] : memref<16x9xf32, #tpu.memory_space<vmem>>, vector<16x1xf32>
    %499 = vector.broadcast %498 : vector<16x1xf32> to vector<16x256xf32>
    %500 = arith.mulf %499, %497 : vector<16x256xf32>
    %cst_269 = arith.constant dense<0.000000e+00> : vector<256xf32>
    %501 = vector.multi_reduction <add>, %500, %cst_269 [0] : vector<16x256xf32> to vector<256xf32>
    %502 = vector.shape_cast %501 : vector<256xf32> to vector<1x256xf32>
    %503 = arith.mulf %502, %26 : vector<1x256xf32>
    %504 = arith.addf %496, %503 : vector<1x256xf32>
    %cst_270 = arith.constant 0.000000e+00 : f32
    %505 = vector.broadcast %cst_270 : f32 to vector<1x256xf32>
    %506 = arith.subf %505, %504 : vector<1x256xf32>
    %507 = math.exp %506 : vector<1x256xf32>
    %cst_271 = arith.constant 1.000000e+00 : f32
    %508 = vector.broadcast %cst_271 : f32 to vector<1x256xf32>
    %509 = arith.addf %508, %507 : vector<1x256xf32>
    %cst_272 = arith.constant 1.000000e+00 : f32
    %510 = vector.broadcast %cst_272 : f32 to vector<1x256xf32>
    %511 = arith.divf %510, %509 : vector<1x256xf32>
    %512 = vector.broadcast %511 : vector<1x256xf32> to vector<4x256xf32>
    %513 = arith.mulf %298, %512 : vector<4x256xf32>
    %c0_273 = arith.constant 0 : index
    %c0_274 = arith.constant 0 : index
    %c0_275 = arith.constant 0 : index
    %514 = vector.load %arg12[%c0_273, %c0_274, %c0_275] : memref<1x4x256xf32, #tpu.memory_space<vmem>>, vector<1x4x256xf32>
    %515 = vector.shape_cast %514 : vector<1x4x256xf32> to vector<4x256xf32>
    %516 = vector.shape_cast %513 : vector<4x256xf32> to vector<1x4x256xf32>
    tpu.vector_store %arg12[%c0_273, %c0_274, %c0_275], %516 {strides = array<i32>} : memref<1x4x256xf32, #tpu.memory_space<vmem>>, vector<1x4x256xf32>,
    return
  }
  func.func @transform_0(%arg0: i32) -> (i32, i32, i32) {
    %c0_i32 = arith.constant 0 : i32
    %c0_i32_0 = arith.constant 0 : i32
    %c0_i32_1 = arith.constant 0 : i32
    return %arg0, %c0_i32, %c0_i32_0 : i32, i32, i32
  }
  func.func @transform_1(%arg0: i32) -> (i32, i32) {
    %c0_i32 = arith.constant 0 : i32
    %c0_i32_0 = arith.constant 0 : i32
    %c0_i32_1 = arith.constant 0 : i32
    return %c0_i32, %c0_i32_0 : i32, i32
  }
  func.func @transform_2(%arg0: i32) -> (i32, i32) {
    %c0_i32 = arith.constant 0 : i32
    %c0_i32_0 = arith.constant 0 : i32
    %c0_i32_1 = arith.constant 0 : i32
    return %c0_i32, %c0_i32_0 : i32, i32
  }
  func.func @transform_3(%arg0: i32) -> (i32, i32) {
    %c0_i32 = arith.constant 0 : i32
    %c0_i32_0 = arith.constant 0 : i32
    %c0_i32_1 = arith.constant 0 : i32
    return %c0_i32, %c0_i32_0 : i32, i32
  }
  func.func @transform_4(%arg0: i32) -> (i32, i32) {
    %c0_i32 = arith.constant 0 : i32
    %c0_i32_0 = arith.constant 0 : i32
    %c0_i32_1 = arith.constant 0 : i32
    return %c0_i32, %c0_i32_0 : i32, i32
  }
  func.func @transform_5(%arg0: i32) -> (i32, i32) {
    %c0_i32 = arith.constant 0 : i32
    %c0_i32_0 = arith.constant 0 : i32
    %c0_i32_1 = arith.constant 0 : i32
    return %c0_i32, %c0_i32_0 : i32, i32
  }
  func.func @transform_6(%arg0: i32) -> (i32, i32) {
    %c0_i32 = arith.constant 0 : i32
    %c0_i32_0 = arith.constant 0 : i32
    %c0_i32_1 = arith.constant 0 : i32
    return %c0_i32, %c0_i32_0 : i32, i32
  }
  func.func @transform_7(%arg0: i32) -> (i32, i32) {
    %c0_i32 = arith.constant 0 : i32
    %c0_i32_0 = arith.constant 0 : i32
    %c0_i32_1 = arith.constant 0 : i32
    return %c0_i32, %c0_i32_0 : i32, i32
  }
  func.func @transform_8(%arg0: i32) -> (i32, i32) {
    %c0_i32 = arith.constant 0 : i32
    %c0_i32_0 = arith.constant 0 : i32
    %c0_i32_1 = arith.constant 0 : i32
    return %c0_i32, %c0_i32_0 : i32, i32
  }
  func.func @transform_9(%arg0: i32) -> (i32, i32) {
    %c0_i32 = arith.constant 0 : i32
    %c0_i32_0 = arith.constant 0 : i32
    %c0_i32_1 = arith.constant 0 : i32
    return %c0_i32, %c0_i32_0 : i32, i32
  }
  func.func @transform_10(%arg0: i32) -> (i32, i32) {
    %c0_i32 = arith.constant 0 : i32
    %c0_i32_0 = arith.constant 0 : i32
    %c0_i32_1 = arith.constant 0 : i32
    return %c0_i32, %c0_i32_0 : i32, i32
  }
  func.func @transform_11(%arg0: i32) -> (i32, i32, i32) {
    %c0_i32 = arith.constant 0 : i32
    %c0_i32_0 = arith.constant 0 : i32
    %c0_i32_1 = arith.constant 0 : i32
    return %arg0, %c0_i32, %c0_i32_0 : i32, i32, i32
  }
}

</mosaic_0001>

<bundles_post_ra>
// kernel: cbam_forward.1
= control target key start
LH: loop header
LB: loop body
LE: loop exit
PB: predicated region body
PF: predicated region fallthrough
CT: control target
= control target key end

     0   :  { %s3000_s19 = smov 0   ;;  %s4398_s0 = inlined_call_operand.vmem [shape: f32[2,4,256], index: 0, kind: input, shape index: {}]   ;;  %s4399_s1 = inlined_call_operand.vmem [shape: f32[4,36], index: 1, kind: input, shape index: {}]   ;;  %s4400_s2 = inlined_call_operand.vmem [shape: f32[4,1], index: 2, kind: input, shape index: {}]   ;;  %s4401_s3 = inlined_call_operand.vmem [shape: f32[4,4], index: 3, kind: input, shape index: {}]   ;;  %s4402_s4 = inlined_call_operand.vmem [shape: f32[4,1], index: 4, kind: input, shape index: {}]   ;;  %s4403_s5 = inlined_call_operand.vmem [shape: f32[4,4], index: 5, kind: input, shape index: {}]   ;;  %s4404_s6 = inlined_call_operand.vmem [shape: f32[4,1], index: 6, kind: input, shape index: {}]   ;;  %s4405_s7 = inlined_call_operand.vmem [shape: f32[16,18], index: 7, kind: input, shape index: {}]   ;;  %s4406_s8 = inlined_call_operand.vmem [shape: f32[16,1], index: 8, kind: input, shape index: {}]   ;;  %s4407_s9 = inlined_call_operand.vmem [shape: f32[16,9], index: 9, kind: input, shape index: {}]   ;;  %s4408_s10 = inlined_call_operand.<no memory space> [shape: f32[1,1], index: 10, kind: input, shape index: {}]   ;;  %s4409_s11 = inlined_call_operand.vmem [shape: f32[2,4,256], index: 11, kind: output, shape index: {}]  }
   0x1   :  { %v16_v0 = vstv %s4408_s10 }
   0x2   :  { %17 = vst [vmem:[#allocation3] sm:$0x1] %v16_v0 }
   0x3 LB: > { %s2659_s20 = sadd.s32 4294967295, %s2882_s19   ;;  %p2663_p0 = scmp.ge.s32.totalorder %s2882_s19, 1  ;;  %s2882_s19 = sphi %s3000_s19, %s23_s19  }
   0x4   : > { %p339_p1 = scmp.lt.s32.totalorder %s2882_s19, 3 }
   0x6   : > { %p340_p2 = pnand %p2663_p0, %p339_p1 }
   0x8   : > { %343 = sbr.rel (%p340_p2) target bundleno = 1985 (0x7c1), region = 64 }
   0xf   : > { %v3011_v1 = vld [vmem:[%s4399_s1] sm:$0xf]  ;;  %p379_p3 = scmp.lt.s32.totalorder %s2659_s20, 1  ;;  %v4441_v2 = vmov 4   ;;  %v4435_v3 = vmov 8   ;;  %v4439_v4 = vmov 5   ;;  %v4410_v20 = vlaneseq }
  0x10   : > { %2755 = vset.pattern.permute.xlu1 %v4441_v2  ;;  %2757 = vset.pattern.permute.xlu0 %v4435_v3  ;;  %s2887_s26 = smov 17   ;;  %v2888_v7 = vmov 0.0   ;;  %v4414_v8 = vmov 9   ;;  %vm391_vm0 = vcmask 277504   ;;  %v4415_v9 = vmov 6   ;;  %s2911_s27 = smov 32  }
  0x11   : > { %547 = vperm.xlu1 %2755, %v3011_v1   ;;  %s4560_s20 = smov (!%p379_p3, %s2659_s20), 1  ;;  %389 = vst [vmem:[#allocation2] sm:$0xff] %v2888_v7  ;;  %390 = vst [vmem:[#allocation2 + $0x8] sm:$0xff] %v2888_v7  ;;  %2684 = vmatprep.subr.mxu0 %v2888_v7  ;;  %v4433_v10 = vmov 10   ;;  %v4413_v11 = vmov 12   ;;  %v4437_v12 = vmov 7  }
  0x12   : > { %s2678_s10 = sshll.u32 %s4560_s20, 3  ;;  %393 = vst [vmem:[#allocation2 + $0x18] sm:$0xff] %v2888_v7  ;;  %2689 = vmatprep.subr.mxu1 %v2888_v7  ;;  %392 = vst.msk [vmem:[#allocation2 + $0x10] sm:$0xff] %vm391_vm0, %v2888_v7  ;;  %v4429_v13 = vmov 13   ;;  %v4412_v14 = vmov 15   ;;  %v4431_v15 = vmov 11  }
  0x13   : > { %s383_s25 = scalar_lea.vmem %s4398_s0, %s2678_s10  ;;  %395 = vst.msk [vmem:[#allocation2 + $0x28] sm:$0xff] %vm391_vm0, %v2888_v7  ;;  %v2897_v16 = vmov 20   ;;  %v4427_v17 = vmov 14   ;;  %v2899_v18 = vmov 22   ;;  %v4425_v19 = vmov 16   ;;  %s2919_s28 = smov 2  }
  0x14   : > { %v435_v5 = vld [vmem:[%s383_s25] sm:$0xff]  ;;  %v2901_v21 = vmov 19   ;;  %v4423_v22 = vmov 17   ;;  %v3064_v23 = vand.u32 127, %v4410_v20  ;;  %v2903_v24 = vmov 27   ;;  %s2921_s29 = smov 16  }
  0x15   : > { %2756 = vset.pattern.permute.xlu1 %v4439_v4  ;;  %438 = vrot.lane.b32.xlu0 %v435_v5, %s2887_s26  ;;  %v437_v6 = vcombine.high %v435_v5, %v435_v5  ;;  %v2904_v25 = vmov 21   ;;  %v2905_v27 = vmov 32   ;;  %v2906_v30 = vmov 18   ;;  %s2923_s30 = smov 18   ;;  %s2925_s12 = smov 34  }
  0x16   : > { %571 = vperm.xlu1 %2756, %v3011_v1   ;;  %v398_v26 = vadd.s32 128, %v3064_v23  ;;  %v403_v28 = vand.u32 15, %v3064_v23  ;;  %v2907_v31 = vmov 30   ;;  %v2908_v32 = vmov 24   ;;  %v452_v55 = vld [vmem:[%s4400_s2] sm:$0xf] }
  0x17   : > { %v2909_v35 = vmov 31   ;;  %v2910_v37 = vmov 25   ;;  %v4443_v38 = vmov 3   ;;  %v2913_v39 = vmov 23   ;;  %s2927_s15 = smov 127   ;;  %s2928_s16 = smov 111  }
  0x18   : > { %v410_v29 = vand.u32 15, %v398_v26  ;;  %vm423_vm1 = vcmp.ge.s32.totalorder %v403_v28, 1  ;;  %v2914_v40 = vmov 26   ;;  %v4417_v41 = vmov 0   ;;  %s2929_s17 = smov 126   ;;  %s2930_s18 = smov 112  }
  0x19   : > { %440 = vrot.lane.b32.xlu0 %v437_v6, %s2887_s26  ;;  %v3075_v33 = vsel %vm423_vm1, 1.0, %v2888_v7  ;;  %v2916_v42 = vmov 28   ;;  %v2917_v43 = vmov 29   ;;  %vm429_vm3 = vcmp.le.s32.totalorder %v403_v28, 14  ;;  %s2931_s21 = smov 110   ;;  %s2932_s22 = smov 96  }
  0x1a   : > { %2758 = vset.pattern.permute.xlu1 %v4414_v8  ;;  %vm424_vm2 = vcmp.ge.s32.totalorder %v410_v29, 1  ;;  %4485 = vst [vmem:[#allocation4_spill] sm:$0xff] %v3075_v33  ;;  %vm430_vm4 = vcmp.le.s32.totalorder %v410_v29, 14  ;;  %v2670_v44 = vsel %vm429_vm3, 1.0, %v2888_v7  ;;  %v2918_v46 = vmov 33   ;;  %s2933_s23 = smov 95  }
  0x1b   : > { %674 = vperm.xlu1 %2758, %v3011_v1   ;;  %v3078_v34 = vsel %vm424_vm2, 1.0, %v2888_v7  ;;  %v2671_v45 = vsel %vm430_vm4, 1.0, %v2888_v7  ;;  %v2920_v48 = vmov 34   ;;  %v2922_v49 = vmov 35   ;;  %s2934_s24 = smov 94  }
  0x1c   : > { %4486 = vst [vmem:[#allocation5_spill] sm:$0xff] %v3078_v34  ;;  %v2802_v36 = vpack.i.bf16 %v3078_v34, %v3075_v33  ;;  %v2783_v47 = vpack.i.bf16 %v2671_v45, %v2670_v44  ;;  %v4421_v50 = vmov 1   ;;  %vm447_vm5 = vcmask 1043592  }
  0x1d   : > { %667 = vperm.xlu0 %2757, %v3011_v1   ;;  %vm442_vm6 = vcmask 138240   ;;  %vm450_vm7 = vcmask 134144   ;;  %v4419_v52 = vmov 2   ;;  %v3107_v58 = vshrl.u32 %v4410_v20, 7 }
  0x1e   : > { %vm709_vm8 = vcmask 15360   ;;  %vm4451_vm9 = vcmask 130048   ;;  %vm894_vm10 = vcmask 146432   ;;  %vm959_vm11 = vcmask 261120  }
  0x1f   : > { %2759 = vset.pattern.permute.xlu1 %v4415_v9  ;;  %v3110_v59 = vsub.s32 0, %v3107_v58  ;;  %v3113_v60 = vsub.s32 1, %v3107_v58  ;;  %v3126_v7 = vsub.s32 2, %v3107_v58  ;;  %vm659_vm12 = vcmask 1039360  }
  0x20   : > { %598 = vperm.xlu1 %2759, %v3011_v1   ;;  %vm726_vm13 = vcmask 1031168   ;;  %vm793_vm14 = vcmask 916480   ;;  %vm846_vm15 = vcmask 908288   ;;  %vm911_vm1 = vcmask 900096  }
  0x21   : > { %2760 = vset.pattern.permute.xlu0 %v4433_v10  ;;  %4487 = vst [vmem:[#allocation6_spill] sm:$0xff] %v3110_v59  ;;  %4488 = vst [vmem:[#allocation7_spill] sm:$0xff] %v3113_v60  ;;  %vm976_vm2 = vcmask 785408   ;;  %vm1029_vm3 = vcmask 777216   ;;  %vm4484_vm4 = vcmask 769024  }
  0x22   : > { %684 = vperm.xlu0 %2760, %v3011_v1  }
  0x24   : > { %2761 = vset.pattern.permute.xlu1 %v4413_v11 }
  0x25   : > { %734 = vperm.xlu1 %2761, %v3011_v1  }
  0x26   : > { %2763 = vset.pattern.permute.xlu0 %v4437_v12 }
  0x27   : > { %625 = vperm.xlu0 %2763, %v3011_v1  }
  0x29   : > { %2762 = vset.pattern.permute.xlu1 %v4429_v13 }
  0x2a   : > { %741 = vperm.xlu1 %2762, %v3011_v1  }
  0x2b   : > { %2766 = vset.pattern.permute.xlu0 %v4412_v14 }
  0x2c   : > { %761 = vperm.xlu0 %2766, %v3011_v1  }
  0x2e   : > { %2764 = vset.pattern.permute.xlu1 %v4431_v15 }
  0x2f   : > { %694 = vperm.xlu1 %2764, %v3011_v1  }
  0x30   : > { %2769 = vset.pattern.permute.xlu0 %v2897_v16 }
  0x31   : > { %854 = vperm.xlu0 %2769, %v3011_v1  }
  0x33   : > { %2765 = vset.pattern.permute.xlu1 %v4427_v17 }
  0x34   : > { %751 = vperm.xlu1 %2765, %v3011_v1  }
  0x35   : > { %2772 = vset.pattern.permute.xlu0 %v2899_v18 }
  0x36   : > { %871 = vperm.xlu0 %2772, %v3011_v1  }
  0x38   : > { %2767 = vset.pattern.permute.xlu1 %v4425_v19 }
  0x39   : > { %801 = vperm.xlu1 %2767, %v3011_v1  }
  0x3a   : > { %2775 = vset.pattern.permute.xlu0 %v2901_v21 }
  0x3b   : > { %828 = vperm.xlu0 %2775, %v3011_v1  }
  0x3d   : > { %2768 = vset.pattern.permute.xlu1 %v4423_v22 }
  0x3e   : > { %808 = vperm.xlu1 %2768, %v3011_v1  }
  0x3f   : > { %2778 = vset.pattern.permute.xlu0 %v2903_v24 }
  0x40   : > { %946 = vperm.xlu0 %2778, %v3011_v1  }
  0x42   : > { %2770 = vset.pattern.permute.xlu1 %v2904_v25 }
  0x43   : > { %861 = vperm.xlu1 %2770, %v3011_v1  }
  0x44   : > { %2781 = vset.pattern.permute.xlu0 %v2905_v27 }
  0x45   : > { %1037 = vperm.xlu0 %2781, %v3011_v1  }
  0x47   : > { %2771 = vset.pattern.permute.xlu1 %v2906_v30 }
  0x48   : > { %818 = vperm.xlu1 %2771, %v3011_v1  }
  0x49   : > { %2788 = vset.pattern.permute.xlu0 %v2907_v31 }
  0x4a   : > { %1001 = vperm.xlu0 %2788, %v3011_v1  }
  0x4c   : > { %2773 = vset.pattern.permute.xlu1 %v2908_v32 }
  0x4d   : > { %919 = vperm.xlu1 %2773, %v3011_v1  }
  0x4e   : > { %2795 = vset.pattern.permute.xlu0 %v2909_v35 }
  0x4f   : > { %1011 = vperm.xlu0 %2795, %v3011_v1  }
  0x51   : > { %2774 = vset.pattern.permute.xlu1 %v2910_v37 }
  0x52   : > { %926 = vperm.xlu1 %2774, %v3011_v1  }
  0x53   : > { %2803 = vrot.lane.b32.xlu0 %v2802_v36, %s2911_s27 }
  0x54   : > { %2814 = vset.pattern.permute.xlu0 %v4443_v38 }
  0x56   : > { %2776 = vset.pattern.permute.xlu1 %v2913_v39 }
  0x57   : > { %881 = vperm.xlu1 %2776, %v3011_v1   ;;  %523 = vperm.xlu0 %2814, %v3011_v1  }
  0x5b   : > { %2777 = vset.pattern.permute.xlu1 %v2914_v40  ;;  %2815 = vset.pattern.permute.xlu0 %v4417_v41 }
  0x5c   : > { %936 = vperm.xlu1 %2777, %v3011_v1   ;;  %462 = vperm.xlu0 %2815, %v3011_v1  }
  0x60   : > { %2779 = vset.pattern.permute.xlu1 %v2916_v42 }
  0x61   : > { %984 = vperm.xlu1 %2779, %v3011_v1  }
  0x65   : > { %2780 = vset.pattern.permute.xlu1 %v2917_v43 }
  0x66   : > { %991 = vperm.xlu1 %2780, %v3011_v1  }
  0x6a   : > { %2782 = vset.pattern.permute.xlu1 %v2918_v46 }
  0x6b   : > { %1044 = vperm.xlu1 %2782, %v3011_v1  }
  0x6f   : > { %2784 = vrot.lane.b32.xlu1 %v2783_v47, %s2919_s28 }
  0x70   : > { %2789 = vset.pattern.permute.xlu1 %v2920_v48 }
  0x73   : > { %1054 = vperm.xlu1 %2789, %v3011_v1  }
  0x77   : > { %2791 = vrot.lane.b32.xlu1 %v2802_v36, %s2921_s29 }
  0x78   : > { %2796 = vset.pattern.permute.xlu1 %v2922_v49 }
  0x7b   : > { %1064 = vperm.xlu1 %2796, %v3011_v1  }
  0x7f   : > { %2798 = vrot.lane.b32.xlu1 %v2783_v47, %s2923_s30 }
  0x80   : > { %2812 = vset.pattern.permute.xlu1 %v4421_v50 }
  0x83   : > { %2808 = vrot.lane.b32.xlu1 %v2783_v47, %s2925_s12 }
  0x87   : > { %481 = vperm.xlu1 %2812, %v3011_v1   ;;  %v439_v51 = vpop.permute.xlu0 %438 }
  0x88   : > { %448 = vst.msk [vmem:[#allocation2] sm:$0xf] %vm447_vm5, %v439_v51  ;;  %vm1100_vm5 = vcmask 1043456  }
  0x8b   : > { %2813 = vset.pattern.permute.xlu1 %v4419_v52  ;;  %v441_v53 = vpop.permute.xlu0 %440 }
  0x8c   : > { %502 = vperm.xlu1 %2813, %v3011_v1   ;;  %v443_v54 = vsel %vm442_vm6, %v439_v51, %v441_v53  ;;  %451 = vst.msk [vmem:[#allocation2 + $0x10] sm:$0xf] %vm450_vm7, %v441_v53  ;;  %vm2935_vm7 = vmmov 0  }
  0x8d   : > { %449 = vst [vmem:[#allocation2 + $0x8] sm:$0xf] %v443_v54 }
  0x90   : > { %v548_v56 = vpop.permute.xlu1 %547  ;;  %2816 = vset.pattern.permute.xlu1 %v4417_v41 }
  0x91   : > { %455 = vperm.xlu1 %2816, %v452_v55  }
  0x94   : > { %v545_v62 = vld [vmem:[#allocation2] ss:$8 sm:$0x7]  ;;  %v569_v63 = vld [vmem:[#allocation2 + $0x1] ss:$8 sm:$0x7] }
  0x95   : > { %v572_v57 = vpop.permute.xlu1 %571  ;;  %v596_v0 = vld [vmem:[#allocation2 + $0x2] ss:$8 sm:$0x7]  ;;  %v3120_v5 = vrot.slane %v545_v62, %v3113_v60  ;;  %v3123_v6 = vrot.slane %v569_v63, %v3113_v60  ;;  %v3129_v16 = vrot.slane %v545_v62, %v3110_v59  ;;  %v3132_v18 = vrot.slane %v569_v63, %v3110_v59  ;;  %v623_v25 = vld [vmem:[#allocation2 + $0x3] ss:$8 sm:$0x7] }
  0x96   : > { %v3135_v24 = vrot.slane %v596_v0, %v3113_v60  ;;  %v3138_v26 = vrot.slane %v596_v0, %v3110_v59  ;;  %v3145_v30 = vrot.slane %v545_v62, %v3126_v7  ;;  %v3149_v32 = vrot.slane %v569_v63, %v3126_v7 }
  0x97   : > { %v567_v27 = vmul.f32 %v3120_v5, %v548_v56  ;;  %v591_v28 = vmul.f32 %v3123_v6, %v572_v57  ;;  %v566_v31 = vmul.f32 %v3129_v16, %v548_v56  ;;  %v590_v35 = vmul.f32 %v3132_v18, %v572_v57 }
  0x98   : > { %v3156_v39 = vrot.slane %v623_v25, %v3110_v59  ;;  %v3159_v40 = vrot.slane %v623_v25, %v3113_v60  ;;  %v3162_v42 = vrot.slane %v596_v0, %v3126_v7  ;;  %v568_v45 = vmul.f32 %v3145_v30, %v548_v56 }
  0x99   : > { %v594_v44 = vadd.f32 %v591_v28, %v567_v27  ;;  %v592_v46 = vmul.f32 %v3149_v32, %v572_v57  ;;  %v593_v47 = vadd.f32 %v590_v35, %v566_v31  ;;  %v3168_v48 = vrot.slane %v623_v25, %v3126_v7 }
  0x9a   : > { %v3115_v61 = vpop.permute.xlu1 %674 }
  0x9b   : > { %v595_v27 = vadd.f32 %v592_v46, %v568_v45 }
  0x9c   : > { %v3117_v1 = vpop.permute.xlu0 %667 }
  0x9f   : > { %v599_v21 = vpop.permute.xlu1 %598 }
  0xa0   : > { %v618_v36 = vmul.f32 %v3135_v24, %v599_v21  ;;  %v617_v43 = vmul.f32 %v3138_v26, %v599_v21  ;;  %v619_v55 = vmul.f32 %v3162_v42, %v599_v21 }
  0xa1   : > { %v3142_v29 = vpop.permute.xlu0 %684 }
  0xa2   : > { %v621_v54 = vadd.f32 %v618_v36, %v594_v44  ;;  %v620_v63 = vadd.f32 %v617_v43, %v593_v47  ;;  %v622_v25 = vadd.f32 %v619_v55, %v595_v27 }
  0xa4   : > { %v3153_v37 = vpop.permute.xlu1 %734 }
  0xa6   : > { %v626_v49 = vpop.permute.xlu0 %625 }
  0xa7   : > { %v644_v51 = vmul.f32 %v3156_v39, %v626_v49  ;;  %v645_v53 = vmul.f32 %v3159_v40, %v626_v49  ;;  %v646_v56 = vmul.f32 %v3168_v48, %v626_v49 }
  0xa9   : > { %v3173_v62 = vpop.permute.xlu1 %741  ;;  %v648_v0 = vadd.f32 %v645_v53, %v621_v54  ;;  %v647_v57 = vadd.f32 %v644_v51, %v620_v63  ;;  %v649_v31 = vadd.f32 %v646_v56, %v622_v25 }
  0xaa   : > { %v744_v22 = vmul.f32 %v3173_v62, %v3132_v18 }
  0xab   : > { %655 = vrot.lane.b32.xlu0 %v648_v0, %s2927_s15  ;;  %653 = vrot.lane.b32.xlu1 %v647_v57, %s2927_s15  ;;  %v3183_v35 = vpop.permute.xlu0 %761 }
  0xae   : > { %v3178_v28 = vpop.permute.xlu1 %694 }
  0xaf   : > { %657 = vrot.lane.b32.xlu1 %v649_v31, %s2927_s15  ;;  %v698_v52 = vmul.f32 %v3178_v28, %v3159_v40 }
  0xb0   : > { %v3185_v43 = vpop.permute.xlu0 %854 }
  0xb3   : > { %v3181_v21 = vpop.permute.xlu1 %751 }
  0xb5   : > { %v3187_v45 = vpop.permute.xlu0 %871 }
  0xb8   : > { %v802_v36 = vpop.permute.xlu1 %801 }
  0xb9   : > { %v804_v51 = vmul.f32 %v802_v36, %v3129_v16  ;;  %v805_v53 = vmul.f32 %v802_v36, %v3120_v5  ;;  %v806_v55 = vmul.f32 %v802_v36, %v3145_v30 }
  0xba   : > { %v829_v56 = vpop.permute.xlu0 %828 }
  0xbb   : > { %v831_v20 = vmul.f32 %v829_v56, %v3156_v39  ;;  %v832_v11 = vmul.f32 %v829_v56, %v3159_v40 }
  0xbd   : > { %v809_v44 = vpop.permute.xlu1 %808 }
  0xbe   : > { %v811_v47 = vmul.f32 %v809_v44, %v3132_v18  ;;  %v812_v49 = vmul.f32 %v809_v44, %v3123_v6  ;;  %v813_v54 = vmul.f32 %v809_v44, %v3149_v32 }
  0xc0   : > { %v814_v63 = vadd.f32 %v811_v47, %v804_v51  ;;  %v815_v27 = vadd.f32 %v812_v49, %v805_v53  ;;  %v816_v14 = vadd.f32 %v813_v54, %v806_v55  ;;  %v833_v49 = vmul.f32 %v829_v56, %v3168_v48 }
  0xc1   : > { %v687_v56 = vmul.f32 %v3142_v29, %v3138_v26 }
  0xc2   : > { %v3189_v46 = vpop.permute.xlu1 %861 }
  0xc7   : > { %v819_v0 = vpop.permute.xlu1 %818 }
  0xc8   : > { %v821_v57 = vmul.f32 %v819_v0, %v3138_v26  ;;  %v822_v25 = vmul.f32 %v819_v0, %v3135_v24  ;;  %v823_v31 = vmul.f32 %v819_v0, %v3162_v42 }
  0xca   : > { %v825_v8 = vadd.f32 %v822_v25, %v815_v27  ;;  %v824_v9 = vadd.f32 %v821_v57, %v814_v63  ;;  %v826_v51 = vadd.f32 %v823_v31, %v816_v14  ;;  %v672_v14 = vmul.f32 %v3117_v1, %v3145_v30 }
  0xcb   : > { %v677_v27 = vmul.f32 %v3115_v61, %v3132_v18  ;;  %v678_v57 = vmul.f32 %v3115_v61, %v3123_v6  ;;  %v679_v25 = vmul.f32 %v3115_v61, %v3149_v32  ;;  %v688_v31 = vmul.f32 %v3142_v29, %v3135_v24 }
  0xcc   : > { %v3202_v44 = vpop.permute.xlu1 %919  ;;  %v835_v36 = vadd.f32 %v832_v11, %v825_v8  ;;  %v834_v47 = vadd.f32 %v831_v20, %v824_v9  ;;  %v836_v53 = vadd.f32 %v833_v49, %v826_v51  ;;  %v670_v9 = vmul.f32 %v3117_v1, %v3129_v16  ;;  %v3224_v20 = vpop.permute.xlu0 %946 }
  0xcd   : > { %v671_v11 = vmul.f32 %v3117_v1, %v3120_v5  ;;  %v689_v1 = vmul.f32 %v3142_v29, %v3162_v42  ;;  %v682_v49 = vadd.f32 %v679_v25, %v672_v14  ;;  %v745_v29 = vmul.f32 %v3173_v62, %v3123_v6 }
  0xce   : > { %842 = vrot.lane.b32.xlu1 %v835_v36, %s2928_s16  ;;  %840 = vrot.lane.b32.xlu0 %v834_v47, %s2928_s16  ;;  %v680_v36 = vadd.f32 %v677_v27, %v670_v9  ;;  %v738_v14 = vmul.f32 %v3153_v37, %v3120_v5  ;;  %v746_v27 = vmul.f32 %v3173_v62, %v3149_v32 }
  0xcf   : > { %v681_v51 = vadd.f32 %v678_v57, %v671_v11  ;;  %v692_v50 = vadd.f32 %v689_v1, %v682_v49  ;;  %v737_v11 = vmul.f32 %v3153_v37, %v3129_v16  ;;  %v754_v25 = vmul.f32 %v3181_v21, %v3138_v26 }
  0xd0   : > { %v690_v41 = vadd.f32 %v687_v56, %v680_v36  ;;  %v3248_v9 = vpop.permute.xlu0 %1037  ;;  %v699_v56 = vmul.f32 %v3178_v28, %v3168_v48  ;;  %v755_v49 = vmul.f32 %v3181_v21, %v3135_v24  ;;  %v756_v62 = vmul.f32 %v3181_v21, %v3162_v42 }
  0xd1   : > { %v3207_v0 = vpop.permute.xlu1 %926  ;;  %v691_v61 = vadd.f32 %v688_v31, %v681_v51  ;;  %v739_v51 = vmul.f32 %v3153_v37, %v3145_v30  ;;  %v748_v17 = vadd.f32 %v745_v29, %v738_v14  ;;  %v764_v37 = vmul.f32 %v3183_v35, %v3156_v39 }
  0xd2   : > { %844 = vrot.lane.b32.xlu0 %v836_v53, %s2928_s16  ;;  %v697_v53 = vmul.f32 %v3178_v28, %v3156_v39  ;;  %v747_v28 = vadd.f32 %v744_v22, %v737_v11  ;;  %v766_v22 = vmul.f32 %v3183_v35, %v3168_v48  ;;  %v702_v11 = vadd.f32 %v699_v56, %v692_v50 }
  0xd3   : > { %v701_v19 = vadd.f32 %v698_v52, %v691_v61  ;;  %v857_v61 = vmul.f32 %v3185_v43, %v3129_v16  ;;  %v758_v14 = vadd.f32 %v755_v49, %v748_v17  ;;  %v874_v50 = vmul.f32 %v3187_v45, %v3138_v26 }
  0xd4   : > { %v700_v36 = vadd.f32 %v697_v53, %v690_v41  ;;  %v749_v41 = vadd.f32 %v746_v27, %v739_v51  ;;  %v765_v53 = vmul.f32 %v3183_v35, %v3159_v40  ;;  %v757_v21 = vadd.f32 %v754_v25, %v747_v28  ;;  %v3287_v29 = vpop.permute.xlu0 %1001 }
  0xd5   : > { %v859_v35 = vmul.f32 %v3185_v43, %v3145_v30  ;;  %v865_v25 = vmul.f32 %v3189_v46, %v3123_v6  ;;  %v875_v56 = vmul.f32 %v3187_v45, %v3135_v24 }
  0xd6   : > { %v3210_v54 = vpop.permute.xlu1 %881  ;;  %v759_v27 = vadd.f32 %v756_v62, %v749_v41  ;;  %v929_v41 = vmul.f32 %v3207_v0, %v3132_v18 }
  0xd8   : > { %v3315_v12 = vpop.permute.xlu0 %1011 }
  0xdb   : > { %v3212_v55 = vpop.permute.xlu1 %936 }
  0xe0   : > { %v3214_v63 = vpop.permute.xlu1 %984 }
  0xe5   : > { %v3216_v8 = vpop.permute.xlu1 %991 }
  0xea   : > { %v3238_v47 = vpop.permute.xlu1 %1044 }
  0xee   : > { %v2785_v57 = vpop.permute.xlu1 %2784 }
  0xef   : > { %v3260_v31 = vunpack.i.h.bf16 %v2785_v57  ;;  %v3262_v1 = vunpack.i.l.bf16 %v2785_v57 }
  0xf1   : > { %4489 = vst [vmem:[#allocation8_spill] sm:$0xff] %v3260_v31  ;;  %v714_v13 = vmul.f32 %v3262_v1, %v700_v36  ;;  %v3274_v57 = vsel %vm709_vm8, %v3262_v1, %v3260_v31  ;;  %v858_v36 = vmul.f32 %v3185_v43, %v3120_v5  ;;  %v716_v17 = vmul.f32 %v3260_v31, %v702_v11 }
  0xf2   : > { %v3280_v15 = vpop.permute.xlu1 %1054  ;;  %v715_v52 = vmul.f32 %v3274_v57, %v701_v19  ;;  %v864_v19 = vmul.f32 %v3189_v46, %v3132_v18  ;;  %v876_v43 = vmul.f32 %v3187_v45, %v3162_v42  ;;  %v769_v11 = vadd.f32 %v766_v22, %v759_v27 }
  0xf3   : > { %720 = vrot.lane.b32.xlu0 %v714_v13, %s2929_s17  ;;  %v866_v13 = vmul.f32 %v3189_v46, %v3149_v32  ;;  %v767_v46 = vadd.f32 %v764_v37, %v757_v21  ;;  %v868_v10 = vadd.f32 %v865_v25, %v858_v36  ;;  %v922_v37 = vmul.f32 %v3202_v44, %v3129_v16 }
  0xf4   : > { %722 = vrot.lane.b32.xlu1 %v715_v52, %s2929_s17  ;;  %v867_v28 = vadd.f32 %v864_v19, %v857_v61  ;;  %v768_v52 = vadd.f32 %v765_v53, %v758_v14  ;;  %v930_v21 = vmul.f32 %v3207_v0, %v3123_v6  ;;  %v939_v53 = vmul.f32 %v3212_v55, %v3138_v26 }
  0xf5   : > { %v869_v3 = vadd.f32 %v866_v13, %v859_v35  ;;  %v949_v14 = vmul.f32 %v3224_v20, %v3156_v39  ;;  %v950_v27 = vmul.f32 %v3224_v20, %v3159_v40  ;;  %v923_v36 = vmul.f32 %v3202_v44, %v3120_v5 }
  0xf6   : > { %v2792_v51 = vpop.permute.xlu1 %2791  ;;  %v884_v19 = vmul.f32 %v3210_v54, %v3156_v39  ;;  %v931_v35 = vmul.f32 %v3207_v0, %v3149_v32  ;;  %v932_v25 = vadd.f32 %v929_v41, %v922_v37  ;;  %v885_v13 = vmul.f32 %v3210_v54, %v3159_v40 }
  0xf7   : > { %v3308_v49 = vunpack.i.h.bf16 %v2792_v51  ;;  %v3310_v62 = vunpack.i.l.bf16 %v2792_v51  ;;  %724 = vrot.lane.b32.xlu0 %v716_v17, %s2929_s17  ;;  %v940_v17 = vmul.f32 %v3212_v55, %v3135_v24  ;;  %v879_v2 = vadd.f32 %v876_v43, %v869_v3 }
  0xf8   : > { %v933_v38 = vadd.f32 %v930_v21, %v923_v36  ;;  %v941_v0 = vmul.f32 %v3212_v55, %v3162_v42  ;;  %v942_v41 = vadd.f32 %v939_v53, %v932_v25  ;;  %v994_v55 = vmul.f32 %v3216_v8, %v3132_v18 }
  0xf9   : > { %4490 = vst [vmem:[#allocation9_spill] sm:$0xff] %v3310_v62  ;;  %v781_v4 = vmul.f32 %v3310_v62, %v767_v46  ;;  %v3321_v45 = vsel %vm4451_vm9, %v3310_v62, %v3308_v49  ;;  %v783_v51 = vmul.f32 %v3308_v49, %v769_v11  ;;  %v877_v46 = vadd.f32 %v874_v50, %v867_v28  ;;  %v2804_v62 = vpop.permute.xlu0 %2803 }
  0xfa   : > { %4491 = vst [vmem:[#allocation10_spill] sm:$0xff] %v3321_v45  ;;  %v3329_v22 = vpop.permute.xlu1 %1064  ;;  %v782_v61 = vmul.f32 %v3321_v45, %v768_v52  ;;  %v878_v52 = vadd.f32 %v875_v56, %v868_v10  ;;  %v886_v45 = vmul.f32 %v3210_v54, %v3168_v48  ;;  %v3360_v50 = vunpack.i.h.bf16 %v2804_v62 }
  0xfb   : > { %787 = vrot.lane.b32.xlu1 %v781_v4, %s2930_s18  ;;  %v924_v4 = vmul.f32 %v3202_v44, %v3145_v30  ;;  %v887_v3 = vadd.f32 %v884_v19, %v877_v46  ;;  %v943_v44 = vadd.f32 %v940_v17, %v933_v38  ;;  %v995_v43 = vmul.f32 %v3216_v8, %v3123_v6 }
  0xfc   : > { %789 = vrot.lane.b32.xlu0 %v782_v61, %s2930_s18  ;;  %v888_v56 = vadd.f32 %v885_v13, %v878_v52  ;;  %v3372_v11 = vunpack.i.l.bf16 %v2804_v62  ;;  %v952_v38 = vadd.f32 %v949_v14, %v942_v41  ;;  %v987_v36 = vmul.f32 %v3214_v63, %v3129_v16 }
  0xfd   : > { %v934_v10 = vadd.f32 %v931_v35, %v924_v4  ;;  %v988_v19 = vmul.f32 %v3214_v63, %v3120_v5  ;;  %v889_v35 = vadd.f32 %v886_v45, %v879_v2  ;;  %v951_v25 = vmul.f32 %v3224_v20, %v3168_v48 }
  0xfe   : > { %v2799_v37 = vpop.permute.xlu1 %2798  ;;  %v953_v62 = vadd.f32 %v950_v27, %v943_v44  ;;  %v996_v14 = vmul.f32 %v3216_v8, %v3149_v32  ;;  %v997_v13 = vadd.f32 %v994_v55, %v987_v36  ;;  %v964_v46 = vmul.f32 %v3372_v11, %v952_v38 }
  0xff   : > { %v3355_v31 = vunpack.i.h.bf16 %v2799_v37  ;;  %v3357_v61 = vunpack.i.l.bf16 %v2799_v37  ;;  %791 = vrot.lane.b32.xlu1 %v783_v51, %s2930_s18  ;;  %v944_v21 = vadd.f32 %v941_v0, %v934_v10  ;;  %v998_v17 = vadd.f32 %v995_v43, %v988_v19 }
 0x100   : > { %v3390_v2 = vsel %vm959_vm11, %v3372_v11, %v3360_v50  ;;  %v1004_v20 = vmul.f32 %v3287_v29, %v3138_v26  ;;  %v1005_v27 = vmul.f32 %v3287_v29, %v3135_v24  ;;  %v989_v8 = vmul.f32 %v3214_v63, %v3145_v30 }
 0x101   : > { %4492 = vst [vmem:[#allocation11_spill] sm:$0xff] %v3355_v31  ;;  %v899_v54 = vmul.f32 %v3357_v61, %v887_v3  ;;  %v3370_v28 = vsel %vm894_vm10, %v3357_v61, %v3355_v31  ;;  %v901_v51 = vmul.f32 %v3355_v31, %v889_v35  ;;  %4493 = vst [vmem:[#allocation12_spill] sm:$0xff] %v3390_v2  ;;  %vm1113_vm9 = vcmp.eq.s32.totalorder %v3064_v23, 0  ;;  %v1200_v23 = vld [vmem:[%s4403_s5] sm:$0xf] }
 0x102   : > { %v900_v53 = vmul.f32 %v3370_v28, %v888_v56  ;;  %v954_v45 = vadd.f32 %v951_v25, %v944_v21  ;;  %v1047_v52 = vmul.f32 %v3238_v47, %v3132_v18  ;;  %v999_v4 = vadd.f32 %v996_v14, %v989_v8  ;;  %v2809_v43 = vpop.permute.xlu1 %2808 }
 0x103   : > { %905 = vrot.lane.b32.xlu1 %v899_v54, %s2931_s21  ;;  %v965_v0 = vmul.f32 %v3390_v2, %v953_v62  ;;  %v1007_v41 = vadd.f32 %v1004_v20, %v997_v13  ;;  %v1008_v37 = vadd.f32 %v1005_v27, %v998_v17  ;;  %v1040_v3 = vmul.f32 %v3248_v9, %v3129_v16 }
 0x104   : > { %907 = vrot.lane.b32.xlu0 %v900_v53, %s2931_s21  ;;  %v1041_v10 = vmul.f32 %v3248_v9, %v3120_v5  ;;  %v1057_v63 = vmul.f32 %v3280_v15, %v3138_v26  ;;  %v966_v44 = vmul.f32 %v3360_v50, %v954_v45  ;;  %v1006_v18 = vmul.f32 %v3287_v29, %v3162_v42 }
 0x105   : > { %v1014_v56 = vmul.f32 %v3315_v12, %v3156_v39  ;;  %v1015_v55 = vmul.f32 %v3315_v12, %v3159_v40  ;;  %v1048_v16 = vmul.f32 %v3238_v47, %v3123_v6  ;;  %v1042_v5 = vmul.f32 %v3248_v9, %v3145_v30 }
 0x106   : > { %v1049_v26 = vmul.f32 %v3238_v47, %v3149_v32  ;;  %v1050_v54 = vadd.f32 %v1047_v52, %v1040_v3  ;;  %v1067_v29 = vmul.f32 %v3329_v22, %v3156_v39  ;;  %v1058_v21 = vmul.f32 %v3280_v15, %v3135_v24  ;;  %v482_v17 = vpop.permute.xlu1 %481  ;;  %v500_v3 = vld [vmem:[#allocation2 + $0x2] ss:$8 sm:$0x3] }
 0x107   : > { %909 = vrot.lane.b32.xlu1 %v901_v51, %s2931_s21  ;;  %v1017_v53 = vadd.f32 %v1014_v56, %v1007_v41  ;;  %v1018_v6 = vadd.f32 %v1015_v55, %v1008_v37  ;;  %v1009_v38 = vadd.f32 %v1006_v18, %v999_v4  ;;  %v1059_v36 = vmul.f32 %v3280_v15, %v3162_v42  ;;  %v524_v51 = vpop.permute.xlu0 %523  ;;  %v458_v37 = vld [vmem:[#allocation2] ss:$8 sm:$0x3] }
 0x108   : > { %970 = vrot.lane.b32.xlu0 %v964_v46, %s2932_s22  ;;  %v1060_v19 = vadd.f32 %v1057_v63, %v1050_v54  ;;  %v3430_v30 = vunpack.i.h.bf16 %v2809_v43  ;;  %v3432_v9 = vunpack.i.l.bf16 %v2809_v43  ;;  %v1016_v32 = vmul.f32 %v3315_v12, %v3168_v48 }
 0x109   : > { %v1051_v39 = vadd.f32 %v1048_v16, %v1041_v10  ;;  %v1068_v47 = vmul.f32 %v3329_v22, %v3159_v40  ;;  %v1052_v24 = vadd.f32 %v1049_v26, %v1042_v5  ;;  %v1069_v35 = vmul.f32 %v3329_v22, %v3168_v48 }
 0x10a   : > { %4494 = vst [vmem:[#allocation13_spill] sm:$0xff] %v3430_v30  ;;  %4495 = vst [vmem:[#allocation14_spill] sm:$0xff] %v3432_v9  ;;  %v1070_v15 = vadd.f32 %v1067_v29, %v1060_v19  ;;  %v1019_v25 = vadd.f32 %v1016_v32, %v1009_v38  ;;  %v3446_v12 = vsel %vm391_vm0, %v3432_v9, %v3430_v30 }
 0x10b   : > { %972 = vrot.lane.b32.xlu1 %v965_v0, %s2932_s22  ;;  %v1061_v42 = vadd.f32 %v1058_v21, %v1051_v39  ;;  %v1062_v62 = vadd.f32 %v1059_v36, %v1052_v24  ;;  %4496 = vst [vmem:[#allocation15_spill] sm:$0xff] %v3446_v12  ;;  %v503_v46 = vpop.permute.xlu1 %502  ;;  %v463_v45 = vpop.permute.xlu0 %462  ;;  %v479_v0 = vld [vmem:[#allocation2 + $0x1] ss:$8 sm:$0x3]  ;;  %v469_v56 = vrot.slane %v458_v37, %v3110_v59 }
 0x10c   : > { %974 = vrot.lane.b32.xlu0 %v966_v44, %s2932_s22  ;;  %v1081_v14 = vmul.f32 %v3432_v9, %v1070_v15  ;;  %v488_v10 = vrot.slane %v479_v0, %v3110_v59  ;;  %v492_v44 = vrot.slane %v479_v0, %v3113_v60  ;;  %v509_v16 = vrot.slane %v500_v3, %v3110_v59 }
 0x10d   : > { %v1071_v40 = vadd.f32 %v1068_v47, %v1061_v42  ;;  %v1072_v48 = vadd.f32 %v1069_v35, %v1062_v62  ;;  %v473_v43 = vrot.slane %v458_v37, %v3113_v60  ;;  %v513_v26 = vrot.slane %v500_v3, %v3113_v60 }
 0x10e   : > { %v495_v55 = vmul.f32 %v488_v10, %v482_v17  ;;  %v496_v5 = vmul.f32 %v492_v44, %v482_v17  ;;  %v476_v54 = vmul.f32 %v469_v56, %v463_v45  ;;  %v516_v29 = vmul.f32 %v509_v16, %v503_v46 }
 0x10f   : > { %1023 = vrot.lane.b32.xlu1 %v1017_v53, %s2933_s23  ;;  %v1082_v22 = vmul.f32 %v3446_v12, %v1071_v40  ;;  %v1083_v13 = vmul.f32 %v3430_v30, %v1072_v48  ;;  %v521_v53 = vld [vmem:[#allocation2 + $0x3] ss:$8 sm:$0x3]  ;;  %v517_v38 = vmul.f32 %v513_v26, %v503_v46 }
 0x110   : > { %1025 = vrot.lane.b32.xlu0 %v1018_v6, %s2933_s23  ;;  %v456_v20 = vpop.permute.xlu1 %455  ;;  %v477_v6 = vmul.f32 %v473_v43, %v463_v45  ;;  %v497_v36 = vadd.f32 %v495_v55, %v476_v54  ;;  %v530_v39 = vrot.slane %v521_v53, %v3110_v59  ;;  %v534_v35 = vrot.slane %v521_v53, %v3113_v60 }
 0x112   : > { %v498_v19 = vadd.f32 %v496_v5, %v477_v6  ;;  %v518_v47 = vadd.f32 %v516_v29, %v497_v36  ;;  %v537_v42 = vmul.f32 %v530_v39, %v524_v51 }
 0x113   : > { %1027 = vrot.lane.b32.xlu1 %v1019_v25, %s2933_s23  ;;  %v538_v25 = vmul.f32 %v534_v35, %v524_v51 }
 0x114   : > { %1087 = vrot.lane.b32.xlu0 %v1081_v14, %s2934_s24  ;;  %v519_v15 = vadd.f32 %v517_v38, %v498_v19  ;;  %v539_v62 = vadd.f32 %v537_v42, %v518_v47 }
 0x116   : > { %v540_v40 = vadd.f32 %v538_v25, %v519_v15 }
 0x117   : > { %1089 = vrot.lane.b32.xlu1 %v1082_v22, %s2934_s24  ;;  %v541_v22 = vmul.f32 %v3075_v33, %v539_v62 }
 0x118   : > { %1091 = vrot.lane.b32.xlu0 %v1083_v13, %s2934_s24  ;;  %v542_v17 = vmul.f32 %v3078_v34, %v540_v40 }
 0x119   : > { %v543_v0 = vadd.f32 %v541_v22, %v456_v20 }
 0x11a   : > { %v544_v51 = vadd.f32 %v542_v17, %v456_v20 }
 0x11d   : > { %v656_v27 = vpop.permute.xlu0 %655  ;;  %v654_v8 = vpop.permute.xlu1 %653 }
 0x11e   : > { %v660_v45 = vsel %vm659_vm12, %v654_v8, %v656_v27 }
 0x11f   : > { %v664_v56 = vadd.f32 %v660_v45, %v543_v0 }
 0x121   : > { %v658_v4 = vpop.permute.xlu1 %657 }
 0x122   : > { %v661_v37 = vsel %vm659_vm12, %v656_v27, %v658_v4 }
 0x123   : > { %v665_v16 = vadd.f32 %v661_v37, %v544_v51 }
 0x140   : > { %v3454_v52 = vpop.permute.xlu0 %840  ;;  %v843_v63 = vpop.permute.xlu1 %842 }
 0x144   : > { %v3456_v41 = vpop.permute.xlu0 %844 }
 0x145   : > { %v848_v6 = vsel %vm846_vm15, %v843_v63, %v3456_v41 }
 0x165   : > { %v721_v18 = vpop.permute.xlu0 %720 }
 0x166   : > { %v723_v21 = vpop.permute.xlu1 %722 }
 0x167   : > { %v727_v10 = vsel %vm726_vm13, %v721_v18, %v723_v21  ;;  %v847_v18 = vsel %vm846_vm15, %v3454_v52, %v843_v63 }
 0x168   : > { %v731_v5 = vadd.f32 %v727_v10, %v664_v56  ;;  %v1201_v10 = vld [vmem:[%s4404_s6] sm:$0xf] }
 0x169   : > { %v725_v32 = vpop.permute.xlu0 %724  ;;  %v1116_v56 = vld [vmem:[%s4402_s4] sm:$0xf] }
 0x16a   : > { %v728_v55 = vsel %vm726_vm13, %v723_v21, %v725_v32 }
 0x16b   : > { %v732_v8 = vadd.f32 %v728_v55, %v665_v16  ;;  %v3507_v55 = vld [vmem:[%s4405_s7 + $0x8] sm:$0xff]  ;;  %v4497_v16 = vmov 3  }
 0x16d   : > { %v788_v24 = vpop.permute.xlu1 %787 }
 0x16e   : > { %v790_v48 = vpop.permute.xlu0 %789 }
 0x16f   : > { %v794_v43 = vsel %vm793_vm14, %v788_v24, %v790_v48 }
 0x170   : > { %v798_v27 = vadd.f32 %v794_v43, %v731_v5 }
 0x171   : > { %v792_v14 = vpop.permute.xlu1 %791 }
 0x172   : > { %v795_v26 = vsel %vm793_vm14, %v790_v48, %v792_v14  ;;  %v851_v38 = vadd.f32 %v847_v18, %v798_v27 }
 0x173   : > { %v799_v4 = vadd.f32 %v795_v26, %v732_v8 }
 0x175   : > { %v906_v13 = vpop.permute.xlu1 %905  ;;  %v852_v19 = vadd.f32 %v848_v6, %v799_v4  ;;  %v4499_v6 = vmov 5  }
 0x176   : > { %v908_v46 = vpop.permute.xlu0 %907 }
 0x177   : > { %v912_v21 = vsel %vm911_vm1, %v906_v13, %v908_v46 }
 0x178   : > { %v916_v39 = vadd.f32 %v912_v21, %v851_v38  ;;  %v3523_v21 = vld [vmem:[%s4405_s7] sm:$0xff]  ;;  %v4500_v38 = vmov 7  }
 0x179   : > { %v910_v3 = vpop.permute.xlu1 %909 }
 0x17a   : > { %v971_v44 = vpop.permute.xlu0 %970  ;;  %v913_v36 = vsel %vm911_vm1, %v908_v46, %v910_v3 }
 0x17b   : > { %v917_v35 = vadd.f32 %v913_v36, %v852_v19  ;;  %v4501_v36 = vmov 8   ;;  %v4502_v19 = vmov 10  }
 0x17d   : > { %v973_v54 = vpop.permute.xlu1 %972 }
 0x17e   : > { %v975_v29 = vpop.permute.xlu0 %974  ;;  %v977_v32 = vsel %vm976_vm2, %v971_v44, %v973_v54  ;;  %v2875_v44 = vld [vmem:[#allocation2 + $0x18] sm:$0xff] }
 0x17f   : > { %v978_v47 = vsel %vm976_vm2, %v973_v54, %v975_v29  ;;  %v981_v42 = vadd.f32 %v977_v32, %v916_v39  ;;  %2686 = vmatprep.mubr.msk.f32.mxu0 %vm2935_vm7, %v2875_v44  ;;  %2691 = vmatprep.mubr.msk.f32.mxu1 %vm2935_vm7, %v2875_v44  ;;  %v1115_v54 = vld [vmem:[%s4401_s3] sm:$0xf]  ;;  %vm1122_vm7 = vcmask 31744   ;;  %v4503_v32 = vmov 11  }
 0x180   : > { %v982_v41 = vadd.f32 %v978_v47, %v917_v35  ;;  %v4504_v39 = vmov 13   ;;  %v4505_v47 = vmov 14   ;;  %v4507_v35 = vmov 17  }
 0x181   : > { %v1024_v20 = vpop.permute.xlu1 %1023  ;;  %v4513_v44 = vmov 12  }
 0x182   : > { %v1026_v53 = vpop.permute.xlu0 %1025 }
 0x183   : > { %v1030_v52 = vsel %vm1029_vm3, %v1024_v20, %v1026_v53 }
 0x184   : > { %v1034_v63 = vadd.f32 %v1030_v52, %v981_v42  ;;  %v4508_v52 = vmov 1  }
 0x185   : > { %v1028_v24 = vpop.permute.xlu1 %1027 }
 0x186   : > { %v1088_v15 = vpop.permute.xlu0 %1087  ;;  %v1031_v25 = vsel %vm1029_vm3, %v1026_v53, %v1028_v24  ;;  %v4498_v53 = vmov 4   ;;  %v4506_v24 = vmov 16  }
 0x187   : > { %v1035_v14 = vadd.f32 %v1031_v25, %v982_v41 }
 0x189   : > { %v1090_v62 = vpop.permute.xlu1 %1089 }
 0x18a   : > { %v1094_v40 = vsel %vm4484_vm4, %v1088_v15, %v1090_v62  ;;  %v1092_v48 = vpop.permute.xlu0 %1091 }
 0x18b   : > { %v3485_v22 = vadd.f32 %v1094_v40, %v1034_v63  ;;  %v1095_v13 = vsel %vm4484_vm4, %v1090_v62, %v1092_v48  ;;  %v1384_v63 = vld [vmem:[%s4406_s8] sm:$0xff]  ;;  %v1385_v62 = vld [vmem:[%s4406_s8 + $0x8] sm:$0xff]  ;;  %v4510_v40 = vmov 0  }
 0x18c   : > { %v3488_v17 = vadd.f32 %v1095_v13, %v1035_v14  ;;  %v4509_v14 = vmov 2  }
 0x18d   : > { %v1108_v46 = vsel %vm1100_vm5, %v3485_v22, -inf  ;;  %v1101_v45 = vsel %vm1100_vm5, %v3485_v22, 0.0 }
 0x18e   : > { %v1109_v0 = vsel %vm1100_vm5, %v3488_v17, -inf  ;;  %v1102_v37 = vsel %vm1100_vm5, %v3488_v17, 0.0 }
 0x18f   : > { %v1110_v3 = vmax.f32 %v1108_v46, %v1109_v0  ;;  %v1103_v51 = vadd.f32 %v1102_v37, %v1101_v45 }
 0x191   : > { %1111 = vmax.xlane.f32.xlu0 %v1110_v3  ;;  %1104 = vadd.xlane.f32.xlu1 %v1103_v51  ;;  %v4511_v51 = vmov 6  }
 0x1a2   : > { %1204 = vperm.xlu1 %2816, %v1201_v10   ;;  %v4512_v10 = vmov 9  }
 0x1a7   : > { %1119 = vperm.xlu0 %2815, %v1116_v56   ;;  %v4514_v56 = vmov 15  }
 0x1ab   : > { %1407 = vperm.xlu0 %2815, %v3507_v55  }
 0x1af   : > { %2819 = vset.pattern.permute.xlu0 %v4497_v16 }
 0x1b0   : > { %1493 = vperm.xlu0 %2819, %v3523_v21  }
 0x1b4   : > { %2821 = vset.pattern.permute.xlu0 %v4498_v53 }
 0x1b5   : > { %1559 = vperm.xlu0 %2821, %v3523_v21  }
 0x1b9   : > { %2825 = vset.pattern.permute.xlu0 %v4499_v6 }
 0x1ba   : > { %1577 = vperm.xlu0 %2825, %v3507_v55  }
 0x1be   : > { %2827 = vset.pattern.permute.xlu0 %v4500_v38 }
 0x1bf   : > { %1643 = vperm.xlu0 %2827, %v3523_v21  }
 0x1c3   : > { %2830 = vset.pattern.permute.xlu0 %v4501_v36 }
 0x1c4   : > { %1703 = vperm.xlu0 %2830, %v3507_v55  }
 0x1c8   : > { %2832 = vset.pattern.permute.xlu0 %v4502_v19 }
 0x1c9   : > { %1763 = vperm.xlu0 %2832, %v3523_v21  }
 0x1cd   : > { %2835 = vset.pattern.permute.xlu0 %v4503_v32 }
 0x1ce   : > { %1781 = vperm.xlu0 %2835, %v3507_v55  }
 0x1d2   : > { %2837 = vset.pattern.permute.xlu0 %v4504_v39 }
 0x1d3   : > { %1847 = vperm.xlu0 %2837, %v3523_v21  }
 0x1d7   : > { %2840 = vset.pattern.permute.xlu0 %v4505_v47 }
 0x1d8   : > { %1907 = vperm.xlu0 %2840, %v3507_v55  }
 0x1dc   : > { %2842 = vset.pattern.permute.xlu0 %v4506_v24 }
 0x1dd   : > { %1967 = vperm.xlu0 %2842, %v3523_v21  }
 0x1e1   : > { %2845 = vset.pattern.permute.xlu0 %v4507_v35 }
 0x1e2   : > { %1985 = vperm.xlu0 %2845, %v3507_v55  }
 0x1e6   : > { %2846 = vset.pattern.permute.xlu0 %v4508_v52 }
 0x1e7   : > { %1430 = vperm.xlu0 %2846, %v3507_v55  }
 0x21e   : > { %v1105_v43 = vpop.xlane.xlu1 %1104  ;;  %v1112_v26 = vpop.xlane.xlu0 %1111 }
 0x21f   : > { %v1107_v5 = vmul.f32 0.00390625, %v1105_v43 }
 0x221   : > { %v1114_v8 = vsel %vm1113_vm9, %v1107_v5, %v1112_v26 }
 0x222   : > { %2685 = vmatpush3.msk.msra.mxu0 %vm1100_vm5, %v1114_v8  ;;  %v1205_v15 = vpop.permute.xlu1 %1204 }
 0x223   : > { %2687 = vmatmul.mubr.msk.f32.vlgmr.msra.gmra.mrb[0].mxu0 %vm1122_vm7, %v1115_v54 }
 0x226   : > { %v1120_v29 = vpop.permute.xlu0 %1119 }
 0x2f6   : > { %v1195_v27 = vpop.f32.mrb[0].mxu0 }
 0x2f7   : > { %v1196_v4 = vadd.f32 %v1195_v27, %v1120_v29  ;;  %v2688_v20 = vpop.f32.mrb[1].mxu0 }
 0x2f9   : > { %v1199_v18 = vmax.f32 %v1196_v4, 0.0 }
 0x2fb   : > { %2690 = vmatpush3.msk.msra.mxu1 %vm1100_vm5, %v1199_v18 }
 0x2fc   : > { %2692 = vmatmul.mubr.msk.f32.vlgmr.msra.gmra.mrb[0].mxu1 %vm1122_vm7, %v1200_v23 }
 0x3cf   : > { %v1279_v42 = vpop.f32.mrb[0].mxu1 }
 0x3d0   : > { %v1280_v25 = vadd.f32 %v1279_v42, %v1205_v15  ;;  %v2693_v41 = vpop.f32.mrb[1].mxu1 }
 0x3d2   : > { %1284 = vrot.lane.b32.xlu1 %v1280_v25, %s2927_s15 }
 0x3d6   : > { %1388 = vperm.xlu1 %2816, %v1384_v63  }
 0x3da   : > { %1393 = vperm.xlu1 %2816, %v1385_v62  }
 0x3de   : > { %1402 = vperm.xlu1 %2816, %v3523_v21  }
 0x3e2   : > { %2817 = vset.pattern.permute.xlu1 %v4508_v52 }
 0x3e3   : > { %1426 = vperm.xlu1 %2817, %v3523_v21  }
 0x3e7   : > { %2818 = vset.pattern.permute.xlu1 %v4509_v14 }
 0x3e8   : > { %1463 = vperm.xlu1 %2818, %v3523_v21  }
 0x3ec   : > { %1467 = vperm.xlu1 %2818, %v3507_v55  }
 0x3f0   : > { %2820 = vset.pattern.permute.xlu1 %v4497_v16 }
 0x3f1   : > { %1497 = vperm.xlu1 %2820, %v3507_v55  }
 0x3f5   : > { %2822 = vset.pattern.permute.xlu1 %v4510_v40 }
 0x444   : > { %v1285_v48 = vpop.permute.xlu1 %1284 }
 0x445   : > { %v1287_v13 = vadd.f32 %v1285_v48, %v1280_v25 }
 0x447   : > { %v1288_v46 = vsub.f32 0.0, %v1287_v13 }
 0x449   : > { %v1289_v45 = vmul.f32 1.442695, %v1288_v46 }
 0x44b   : > { %2863 = vpow2.f32 %v1289_v45 }
 0x455   : > { %v2864_v0 = vpop.eup %2863  ;;  %v3596_v43 = vpop.permute.xlu1 %1388 }
 0x456   : > { %v1291_v37 = vadd.f32 1.0, %v2864_v0  ;;  %4515 = vst [vmem:[#allocation16_spill] sm:$0xff] %v3596_v43 }
 0x458   : > { %2865 = vrcp.f32 %v1291_v37 }
 0x459   : > { %v3599_v5 = vpop.permute.xlu1 %1393 }
 0x45a   : > { %4516 = vst [vmem:[#allocation17_spill] sm:$0xff] %v3599_v5 }
 0x45d   : > { %v3601_v26 = vpop.permute.xlu1 %1402 }
 0x45e   : > { %4517 = vst [vmem:[#allocation18_spill] sm:$0xff] %v3601_v26 }
 0x462   : > { %v2866_v3 = vpop.eup %2865  ;;  %v3603_v54 = vpop.permute.xlu1 %1426 }
 0x463   : > { %1296 = vperm.xlu1 %2822, %v2866_v3   ;;  %4518 = vst [vmem:[#allocation19_spill] sm:$0xff] %v3603_v54 }
 0x467   : > { %2823 = vset.pattern.permute.xlu1 %v4498_v53  ;;  %v3605_v8 = vpop.permute.xlu1 %1463 }
 0x468   : > { %1563 = vperm.xlu1 %2823, %v3507_v55  }
 0x46b   : > { %v3607_v29 = vpop.permute.xlu1 %1467 }
 0x46c   : > { %2824 = vset.pattern.permute.xlu1 %v4499_v6 }
 0x46d   : > { %1573 = vperm.xlu1 %2824, %v3523_v21  }
 0x470   : > { %v3609_v27 = vpop.permute.xlu1 %1497 }
 0x471   : > { %2826 = vset.pattern.permute.xlu1 %v4511_v51 }
 0x472   : > { %1629 = vperm.xlu1 %2826, %v3523_v21  }
 0x476   : > { %1633 = vperm.xlu1 %2826, %v3507_v55  }
 0x47a   : > { %2828 = vset.pattern.permute.xlu1 %v4500_v38 }
 0x47b   : > { %1647 = vperm.xlu1 %2828, %v3507_v55  }
 0x47f   : > { %2829 = vset.pattern.permute.xlu1 %v4501_v36 }
 0x480   : > { %1699 = vperm.xlu1 %2829, %v3523_v21  }
 0x484   : > { %2831 = vset.pattern.permute.xlu1 %v4512_v10 }
 0x485   : > { %1713 = vperm.xlu1 %2831, %v3523_v21  }
 0x489   : > { %1717 = vperm.xlu1 %2831, %v3507_v55  }
 0x48d   : > { %2833 = vset.pattern.permute.xlu1 %v4502_v19 }
 0x48e   : > { %1767 = vperm.xlu1 %2833, %v3507_v55  }
 0x492   : > { %2834 = vset.pattern.permute.xlu1 %v4503_v32 }
 0x493   : > { %1777 = vperm.xlu1 %2834, %v3523_v21  }
 0x497   : > { %2836 = vset.pattern.permute.xlu1 %v4513_v44 }
 0x498   : > { %1833 = vperm.xlu1 %2836, %v3523_v21  }
 0x49c   : > { %1837 = vperm.xlu1 %2836, %v3507_v55  }
 0x4a0   : > { %2838 = vset.pattern.permute.xlu1 %v4504_v39 }
 0x4a1   : > { %1851 = vperm.xlu1 %2838, %v3507_v55  }
 0x4a5   : > { %2839 = vset.pattern.permute.xlu1 %v4505_v47 }
 0x4a6   : > { %1903 = vperm.xlu1 %2839, %v3523_v21  }
 0x4aa   : > { %2841 = vset.pattern.permute.xlu1 %v4514_v56 }
 0x4ab   : > { %1917 = vperm.xlu1 %2841, %v3523_v21  }
 0x4af   : > { %1921 = vperm.xlu1 %2841, %v3507_v55  }
 0x4b3   : > { %2843 = vset.pattern.permute.xlu1 %v4506_v24  ;;  %v2936_v24 = vmov 1966171168  }
 0x4b4   : > { %1971 = vperm.xlu1 %2843, %v3507_v55  }
 0x4b8   : > { %2844 = vset.pattern.permute.xlu1 %v4507_v35  ;;  %v1336_v35 = vunpack.c.l.s4 %v2936_v24 }
 0x4b9   : > { %1981 = vperm.xlu1 %2844, %v3523_v21  }
 0x4ba   : > { %v1337_v48 = vunpack.c.0.s8 %v1336_v35 }
 0x4bc   : > { %v1340_v56 = vsub.s32 %v1337_v48, %v3107_v58 }
 0x4bd   : > { %2847 = vset.pattern.permute.xlu1 %v4508_v52 }
 0x4e2   : > { %v1297_v55 = vpop.permute.xlu1 %1296 }
 0x4e3   : > { %v3612_v4 = vmul.f32 %v1297_v55, %v3485_v22  ;;  %v3615_v20 = vmul.f32 %v1297_v55, %v3488_v17 }
 0x4e5   : > { %4519 = vst [vmem:[#allocation20_spill] sm:$0xff] %v3612_v4  ;;  %4520 = vst [vmem:[#allocation21_spill] sm:$0xff] %v3615_v20  ;;  %v1301_v18 = vsel %vm1100_vm5, %v3612_v4, 0.0  ;;  %v1308_v23 = vsel %vm1100_vm5, %v3615_v20, 0.0  ;;  %v1318_v21 = vsel %vm1100_vm5, %v3612_v4, -inf  ;;  %v1325_v19 = vsel %vm1100_vm5, %v3615_v20, -inf }
 0x4e6   : > { %v1302_v32 = vrot.slane %v1301_v18, 4  ;;  %v1309_v39 = vrot.slane %v1308_v23, 4  ;;  %v1319_v47 = vrot.slane %v1318_v21, 4  ;;  %v1326_v22 = vrot.slane %v1325_v19, 4 }
 0x4e8   : > { %v1303_v17 = vadd.f32 %v1302_v32, %v1301_v18  ;;  %v1310_v52 = vadd.f32 %v1309_v39, %v1308_v23  ;;  %v1320_v15 = vmax.f32 %v1318_v21, %v1319_v47  ;;  %v1327_v42 = vmax.f32 %v1325_v19, %v1326_v22 }
 0x4ea   : > { %v1304_v25 = vrot.slane %v1303_v17, 2  ;;  %v1311_v41 = vrot.slane %v1310_v52, 2  ;;  %v1321_v63 = vrot.slane %v1320_v15, 2  ;;  %v1328_v62 = vrot.slane %v1327_v42, 2 }
 0x4ec   : > { %v1305_v13 = vadd.f32 %v1304_v25, %v1303_v17  ;;  %v1312_v46 = vadd.f32 %v1311_v41, %v1310_v52  ;;  %v1322_v45 = vmax.f32 %v1320_v15, %v1321_v63  ;;  %v1329_v0 = vmax.f32 %v1327_v42, %v1328_v62  ;;  %v3628_v52 = vpop.permute.xlu1 %1563 }
 0x4ee   : > { %v1306_v37 = vrot.slane %v1305_v13, 1  ;;  %v1313_v3 = vrot.slane %v1312_v46, 1  ;;  %v1323_v10 = vrot.slane %v1322_v45, 1  ;;  %v1330_v44 = vrot.slane %v1329_v0, 1 }
 0x4f0   : > { %v1307_v55 = vadd.f32 %v1306_v37, %v1305_v13  ;;  %v1314_v18 = vadd.f32 %v1313_v3, %v1312_v46  ;;  %v1324_v23 = vmax.f32 %v1322_v45, %v1323_v10  ;;  %v1331_v21 = vmax.f32 %v1329_v0, %v1330_v44  ;;  %v3630_v15 = vpop.permute.xlu1 %1573  ;;  %v3648_v46 = vpop.permute.xlu0 %1407 }
 0x4f1   : > { %4521 = vst [vmem:[#allocation22_spill] sm:$0xff] %v3648_v46 }
 0x4f2   : > { %v1362_v19 = vcombine.low %v1324_v23, %v1331_v21  ;;  %v1316_v32 = vmul.f32 0.25, %v1307_v55  ;;  %v1317_v39 = vmul.f32 0.25, %v1314_v18 }
 0x4f4   : > { %v1369_v47 = vrot.slane %v1362_v19, %v1340_v56  ;;  %v1334_v22 = vcombine.low %v1316_v32, %v1317_v39  ;;  %v3632_v58 = vpop.permute.xlu1 %1629  ;;  %v3652_v0 = vpop.permute.xlu0 %1493 }
 0x4f6   : > { %v1376_v24 = vrot.slane %v1369_v47, %v1340_v56  ;;  %v1341_v35 = vrot.slane %v1334_v22, %v1340_v56 }
 0x4f8   : > { %1377 = vrot.lane.b32.xlu1 %v1376_v24, %s2887_s26  ;;  %v1348_v17 = vrot.slane %v1341_v35, %v1340_v56  ;;  %v3634_v42 = vpop.permute.xlu1 %1633  ;;  %v3656_v3 = vpop.permute.xlu0 %1559  ;;  %v4522_v24 = vlaneseq }
 0x4fa   : > { %vm1355_vm9 = vcmp.ge.s32.totalorder %v4522_v24, 17  ;;  %vm1356_vm5 = vcmp.lt.s32.totalorder %v4522_v24, 273 }
 0x4fb   : > { %vm1357_vm7 = vmand %vm1355_vm9, %vm1356_vm5  ;;  %vm2060_vm9 = vcmask 1047688   ;;  %vm2135_vm5 = vcmask 1047560  }
 0x4fc   : > { %1349 = vrot.lane.b32.xlu1 %v1348_v17, %s2887_s26  ;;  %v3636_v25 = vpop.permute.xlu1 %1647  ;;  %v3660_v44 = vpop.permute.xlu0 %1577 }
 0x500   : > { %v3638_v41 = vpop.permute.xlu1 %1699  ;;  %v3664_v55 = vpop.permute.xlu0 %1643 }
 0x504   : > { %v3640_v63 = vpop.permute.xlu1 %1713  ;;  %v3668_v23 = vpop.permute.xlu0 %1703 }
 0x508   : > { %v3642_v62 = vpop.permute.xlu1 %1717  ;;  %v3672_v19 = vpop.permute.xlu0 %1763 }
 0x50c   : > { %v3674_v39 = vpop.permute.xlu0 %1781 }
 0x50d   : > { %v3644_v48 = vpop.permute.xlu1 %1767 }
 0x510   : > { %v3676_v22 = vpop.permute.xlu0 %1847 }
 0x512   : > { %v3646_v13 = vpop.permute.xlu1 %1777 }
 0x514   : > { %v3681_v4 = vpop.permute.xlu0 %1907 }
 0x517   : > { %v3650_v45 = vpop.permute.xlu1 %1833 }
 0x518   : > { %v1968_v51 = vpop.permute.xlu0 %1967 }
 0x51b   : > { %v3654_v37 = vpop.permute.xlu1 %1837 }
 0x520   : > { %v3658_v10 = vpop.permute.xlu1 %1851 }
 0x525   : > { %v3662_v56 = vpop.permute.xlu1 %1903 }
 0x52a   : > { %v3666_v18 = vpop.permute.xlu1 %1917 }
 0x52e   : > { %v3670_v21 = vpop.permute.xlu1 %1921 }
 0x533   : > { %v1972_v32 = vpop.permute.xlu1 %1971 }
 0x538   : > { %v1982_v47 = vpop.permute.xlu1 %1981 }
 0x56a   : > { %v1378_v35 = vpop.permute.xlu1 %1377 }
 0x56b   : > { %v1379_v17 = vrot.slane %v1378_v35, 7 }
 0x56d   : > { %v1380_v20 = vsel %vm442_vm6, %v1379_v17, %v1378_v35 }
 0x56e   : > { %1382 = vst.msk [vmem:[#allocation2 + $0x1] ss:$8 sm:$0x7] %vm1357_vm7, %v1380_v20  ;;  %v1350_v36 = vpop.permute.xlu1 %1349 }
 0x56f   : > { %v1351_v40 = vrot.slane %v1350_v36, 7 }
 0x571   : > { %v1352_v38 = vsel %vm442_vm6, %v1351_v40, %v1350_v36  ;;  %v1986_v36 = vpop.permute.xlu0 %1985 }
 0x572   : > { %1358 = vst.msk [vmem:[#allocation2] ss:$8 sm:$0x7] %vm1357_vm7, %v1352_v38  ;;  %vm2152_vm7 = vcmask 7168  }
 0x575   : > { %v1461_v43 = vld [vmem:[#allocation2 + $0x1] ss:$8 sm:$0x7] }
 0x576   : > { %v3685_v54 = vrot.slane %v1461_v43, %v3110_v59  ;;  %v3688_v24 = vrot.slane %v1461_v43, %v3113_v60  ;;  %v3691_v26 = vrot.slane %v1461_v43, %v3126_v7 }
 0x578   : > { %v1988_v40 = vmul.f32 %v1982_v47, %v3685_v54  ;;  %v1989_v5 = vmul.f32 %v1982_v47, %v3688_v24  ;;  %v1990_v34 = vmul.f32 %v1982_v47, %v3691_v26  ;;  %v1991_v43 = vmul.f32 %v1986_v36, %v3685_v54 }
 0x579   : > { %v1460_v35 = vld [vmem:[#allocation2] ss:$8 sm:$0x7]  ;;  %v1992_v6 = vmul.f32 %v1986_v36, %v3688_v24  ;;  %v1993_v14 = vmul.f32 %v1986_v36, %v3691_v26 }
 0x57a   : > { %v3694_v20 = vrot.slane %v1460_v35, %v3110_v59  ;;  %v3697_v17 = vrot.slane %v1460_v35, %v3113_v60  ;;  %v3700_v38 = vrot.slane %v1460_v35, %v3126_v7 }
 0x57c   : > { %v1974_v33 = vmul.f32 %v1968_v51, %v3694_v20  ;;  %v1975_v46 = vmul.f32 %v1968_v51, %v3697_v17  ;;  %v1976_v59 = vmul.f32 %v1968_v51, %v3700_v38  ;;  %v1977_v60 = vmul.f32 %v1972_v32, %v3694_v20 }
 0x57d   : > { %v1978_v7 = vmul.f32 %v1972_v32, %v3697_v17  ;;  %v1979_v35 = vmul.f32 %v1972_v32, %v3700_v38  ;;  %v1489_v12 = vmul.f32 %v3694_v20, %v3607_v29  ;;  %v1519_v32 = vmul.f32 %v3685_v54, %v3609_v27 }
 0x57e   : > { %v3714_v53 = vadd.f32 %v1988_v40, %v1974_v33  ;;  %v3716_v47 = vadd.f32 %v1989_v5, %v1975_v46  ;;  %v3718_v16 = vadd.f32 %v1990_v34, %v1976_v59  ;;  %v3720_v30 = vadd.f32 %v1991_v43, %v1977_v60 }
 0x57f   : > { %v3722_v9 = vadd.f32 %v1992_v6, %v1978_v7  ;;  %v3724_v51 = vadd.f32 %v1993_v14, %v1979_v35  ;;  %v1486_v33 = vmul.f32 %v3694_v20, %v3605_v8  ;;  %v1516_v5 = vmul.f32 %v3685_v54, %v3652_v0 }
 0x580   : > { %v1525_v34 = vadd.f32 %v1519_v32, %v1489_v12  ;;  %v1491_v59 = vmul.f32 %v3700_v38, %v3607_v29  ;;  %v1487_v6 = vmul.f32 %v3697_v17, %v3605_v8  ;;  %v1521_v14 = vmul.f32 %v3691_v26, %v3609_v27 }
 0x581   : > { %v1522_v60 = vadd.f32 %v1516_v5, %v1486_v33  ;;  %v1517_v46 = vmul.f32 %v3688_v24, %v3652_v0  ;;  %v1707_v12 = vmul.f32 %v3638_v41, %v3697_v17  ;;  %v1488_v43 = vmul.f32 %v3700_v38, %v3605_v8 }
 0x582   : > { %1540 = vrot.lane.b32.xlu0 %v1525_v34, %s2927_s15  ;;  %v1527_v36 = vadd.f32 %v1521_v14, %v1491_v59  ;;  %v1721_v7 = vmul.f32 %v3640_v63, %v3688_v24  ;;  %v1518_v35 = vmul.f32 %v3691_v26, %v3652_v0  ;;  %v1709_v33 = vmul.f32 %v3668_v23, %v3694_v20 }
 0x583   : > { %1534 = vrot.lane.b32.xlu1 %v1522_v60, %s2927_s15  ;;  %v1523_v40 = vadd.f32 %v1517_v46, %v1487_v6  ;;  %v1490_v34 = vmul.f32 %v3697_v17, %v3607_v29  ;;  %v1723_v8 = vmul.f32 %v3642_v62, %v3685_v54  ;;  %v1520_v59 = vmul.f32 %v3688_v24, %v3609_v27 }
 0x584   : > { %v1727_v32 = vadd.f32 %v1721_v7, %v1707_v12  ;;  %v1524_v5 = vadd.f32 %v1518_v35, %v1488_v43  ;;  %v1711_v0 = vmul.f32 %v3668_v23, %v3700_v38  ;;  %v1706_v14 = vmul.f32 %v3638_v41, %v3694_v20 }
 0x585   : > { %v1729_v60 = vadd.f32 %v1723_v8, %v1709_v33  ;;  %v1526_v6 = vadd.f32 %v1520_v59, %v1490_v34  ;;  %v1725_v29 = vmul.f32 %v3642_v62, %v3691_v26  ;;  %v1720_v46 = vmul.f32 %v3640_v63, %v3685_v54 }
 0x586   : > { %1544 = vrot.lane.b32.xlu0 %v1527_v36, %s2927_s15  ;;  %v1911_v27 = vmul.f32 %v3662_v56, %v3697_v17  ;;  %v1925_v43 = vmul.f32 %v3666_v18, %v3688_v24  ;;  %v1722_v7 = vmul.f32 %v3640_v63, %v3691_v26  ;;  %v1724_v34 = vmul.f32 %v3642_v62, %v3688_v24 }
 0x587   : > { %1536 = vrot.lane.b32.xlu1 %v1523_v40, %s2927_s15  ;;  %v1731_v36 = vadd.f32 %v1725_v29, %v1711_v0  ;;  %v1726_v12 = vadd.f32 %v1720_v46, %v1706_v14  ;;  %v1708_v40 = vmul.f32 %v3638_v41, %v3700_v38  ;;  %v1927_v41 = vmul.f32 %v3670_v21, %v3685_v54 }
 0x588   : > { %v1931_v35 = vadd.f32 %v1925_v43, %v1911_v27  ;;  %v1915_v63 = vmul.f32 %v3681_v4, %v3700_v38  ;;  %v1567_v8 = vmul.f32 %v3656_v3, %v3697_v17  ;;  %v1910_v0 = vmul.f32 %v3662_v56, %v3694_v20 }
 0x589   : > { %v1728_v33 = vadd.f32 %v1722_v7, %v1708_v40  ;;  %v1569_v62 = vmul.f32 %v3628_v52, %v3694_v20  ;;  %v1770_v14 = vmul.f32 %v3672_v19, %v3694_v20  ;;  %v1784_v29 = vmul.f32 %v3646_v13, %v3685_v54 }
 0x58a   : > { %1740 = vrot.lane.b32.xlu0 %v1727_v32, %s2928_s16  ;;  %v1913_v32 = vmul.f32 %v3681_v4, %v3694_v20  ;;  %v1926_v40 = vmul.f32 %v3666_v18, %v3691_v26  ;;  %v1583_v43 = vmul.f32 %v3660_v44, %v3685_v54 }
 0x58b   : > { %1538 = vrot.lane.b32.xlu1 %v1524_v5, %s2927_s15  ;;  %v1710_v5 = vmul.f32 %v3668_v23, %v3697_v17  ;;  %v1929_v23 = vmul.f32 %v3670_v21, %v3691_v26  ;;  %v3820_v7 = vadd.f32 %v1784_v29, %v1770_v14  ;;  %v1854_v14 = vmul.f32 %v3676_v22, %v3685_v54 }
 0x58c   : > { %v1933_v59 = vadd.f32 %v1927_v41, %v1913_v32  ;;  %v1571_v41 = vmul.f32 %v3628_v52, %v3700_v38 }
 0x58d   : > { %v1935_v46 = vadd.f32 %v1929_v23, %v1915_v63  ;;  %v1788_v63 = vmul.f32 %v3674_v39, %v3688_v24  ;;  %v1845_v23 = vmul.f32 %v3654_v37, %v3700_v38 }
 0x58e   : > { %1744 = vrot.lane.b32.xlu0 %v1729_v60, %s2928_s16  ;;  %v1730_v60 = vadd.f32 %v1724_v34, %v1710_v5  ;;  %v1843_v5 = vmul.f32 %v3654_v37, %v3694_v20  ;;  %v1774_v34 = vmul.f32 %v3644_v48, %v3697_v17 }
 0x58f   : > { %1542 = vrot.lane.b32.xlu1 %v1526_v6, %s2927_s15  ;;  %v1581_v6 = vmul.f32 %v3630_v15, %v3688_v24 }
 0x591   : > { %v1587_v27 = vadd.f32 %v1581_v6, %v1567_v8  ;;  %v1859_v6 = vmul.f32 %v3658_v10, %v3691_v26 }
 0x592   : > { %1748 = vrot.lane.b32.xlu0 %v1731_v36, %s2928_s16  ;;  %v1924_v36 = vmul.f32 %v3666_v18, %v3685_v54  ;;  %v1589_v18 = vadd.f32 %v1583_v43, %v1569_v62  ;;  %v1840_v62 = vmul.f32 %v3650_v45, %v3694_v20  ;;  %v1585_v43 = vmul.f32 %v3660_v44, %v3691_v26 }
 0x593   : > { %1738 = vrot.lane.b32.xlu1 %v1726_v12, %s2928_s16  ;;  %v1912_v12 = vmul.f32 %v3662_v56, %v3700_v38  ;;  %v1857_v56 = vmul.f32 %v3658_v10, %v3685_v54  ;;  %v1593_v8 = vmul.f32 %v1587_v27, %v3274_v57  ;;  %v1842_v27 = vmul.f32 %v3650_v45, %v3700_v38 }
 0x594   : > { %v1930_v32 = vadd.f32 %v1924_v36, %v1910_v0  ;;  %v3845_v0 = vadd.f32 %v1788_v63, %v1774_v34  ;;  %v1566_v36 = vmul.f32 %v3656_v3, %v3694_v20  ;;  %v1591_v34 = vadd.f32 %v1585_v43, %v1571_v41  ;;  %v4524_v43 = vld [vmem:[#allocation10_spill] sm:$0xff] }
 0x595   : > { %v1932_v29 = vadd.f32 %v1926_v40, %v1912_v12  ;;  %v1856_v12 = vmul.f32 %v3676_v22, %v3691_v26  ;;  %v1580_v40 = vmul.f32 %v3630_v15, %v3685_v54  ;;  %v1637_v63 = vmul.f32 %v3632_v58, %v3697_v17 }
 0x596   : > { %1944 = vrot.lane.b32.xlu0 %v1931_v35, %s2933_s23  ;;  %v1772_v35 = vmul.f32 %v3672_v19, %v3700_v38 }
 0x597   : > { %1742 = vrot.lane.b32.xlu1 %v1728_v33, %s2928_s16  ;;  %v1786_v33 = vmul.f32 %v3646_v13, %v3691_v26 }
 0x59a   : > { %1948 = vrot.lane.b32.xlu0 %v1933_v59, %s2933_s23  ;;  %v3839_v59 = vadd.f32 %v1786_v33, %v1772_v35  ;;  %v3862_v35 = vadd.f32 %v1859_v6, %v1845_v23  ;;  %v1844_v33 = vmul.f32 %v3654_v37, %v3697_v17  ;;  %v1586_v6 = vadd.f32 %v1580_v40, %v1566_v36 }
 0x59b   : > { %1746 = vrot.lane.b32.xlu1 %v1730_v60, %s2928_s16  ;;  %v3841_v60 = vadd.f32 %v1857_v56, %v1843_v5  ;;  %v1858_v5 = vmul.f32 %v3658_v10, %v3688_v24  ;;  %v1595_v56 = vmul.f32 %v3262_v1, %v1589_v18  ;;  %v1651_v37 = vmul.f32 %v3664_v55, %v3688_v24  ;;  %v4523_v18 = vld [vmem:[#allocation8_spill] sm:$0xff] }
 0x59c   : > { %v1582_v10 = vmul.f32 %v3630_v15, %v3691_v26  ;;  %v1597_v41 = vmul.f32 %v4523_v18, %v1591_v34  ;;  %v1570_v36 = vmul.f32 %v3628_v52, %v3697_v17  ;;  %v1584_v15 = vmul.f32 %v3660_v44, %v3688_v24  ;;  %v4525_v34 = vld [vmem:[#allocation9_spill] sm:$0xff] }
 0x59d   : > { %v1641_v40 = vmul.f32 %v3634_v42, %v3700_v38  ;;  %v1636_v52 = vmul.f32 %v3632_v58, %v3694_v20  ;;  %v1650_v44 = vmul.f32 %v3664_v55, %v3685_v54 }
 0x59e   : > { %1952 = vrot.lane.b32.xlu0 %v1935_v46, %s2933_s23  ;;  %v1914_v46 = vmul.f32 %v3681_v4, %v3697_v17  ;;  %v1928_v4 = vmul.f32 %v3670_v21, %v3688_v24  ;;  %v1568_v21 = vmul.f32 %v3656_v3, %v3700_v38  ;;  %v1592_v3 = vmul.f32 %v3262_v1, %v1586_v6 }
 0x59f   : > { %1942 = vrot.lane.b32.xlu1 %v1930_v32, %s2933_s23  ;;  %v3864_v32 = vadd.f32 %v1854_v14, %v1840_v62  ;;  %v3884_v62 = vadd.f32 %v1858_v5, %v1844_v33  ;;  %v1657_v14 = vadd.f32 %v1651_v37, %v1637_v63  ;;  %v1590_v5 = vadd.f32 %v1584_v15, %v1570_v36 }
 0x5a0   : > { %v1934_v23 = vadd.f32 %v1928_v4, %v1914_v46  ;;  %v1588_v46 = vadd.f32 %v1582_v10, %v1568_v21  ;;  %v1771_v6 = vmul.f32 %v3672_v19, %v3697_v17  ;;  %v1656_v37 = vadd.f32 %v1650_v44, %v1636_v52  ;;  %v4527_v52 = vld [vmem:[#allocation14_spill] sm:$0xff] }
 0x5a1   : > { %v1596_v21 = vmul.f32 %v1590_v5, %v3274_v57  ;;  %v1638_v10 = vmul.f32 %v3632_v58, %v3700_v38  ;;  %v1773_v19 = vmul.f32 %v3644_v48, %v3694_v20  ;;  %v1640_v58 = vmul.f32 %v3634_v42, %v3697_v17  ;;  %v4526_v5 = vld [vmem:[#allocation15_spill] sm:$0xff] }
 0x5a2   : > { %1606 = vrot.lane.b32.xlu0 %v1593_v8, %s2929_s17  ;;  %v3880_v8 = vadd.f32 %v1856_v12, %v1842_v27  ;;  %v1653_v27 = vmul.f32 %v3636_v25, %v3685_v54  ;;  %v1663_v12 = vmul.f32 %v1657_v14, %v4524_v43  ;;  %v1594_v33 = vmul.f32 %v4523_v18, %v1588_v46 }
 0x5a3   : > { %1946 = vrot.lane.b32.xlu1 %v1932_v29, %s2933_s23  ;;  %v1639_v29 = vmul.f32 %v3634_v42, %v3694_v20  ;;  %v1652_v14 = vmul.f32 %v3664_v55, %v3691_v26  ;;  %v1662_v46 = vmul.f32 %v4525_v34, %v1656_v37  ;;  %v1654_v55 = vmul.f32 %v3636_v25, %v3688_v24 }
 0x5a4   : > { %v1775_v20 = vmul.f32 %v3644_v48, %v3700_v38  ;;  %v1789_v42 = vmul.f32 %v3674_v39, %v3691_v26  ;;  %v1855_v48 = vmul.f32 %v3676_v22, %v3688_v24  ;;  %v1869_v22 = vmul.f32 %v3372_v11, %v3841_v60 }
 0x5a5   : > { %v1659_v4 = vadd.f32 %v1653_v27, %v1639_v29  ;;  %v1658_v36 = vadd.f32 %v1652_v14, %v1638_v10  ;;  %v2001_v60 = vmul.f32 %v3716_v47, %v4526_v5  ;;  %v4529_v44 = vmov 3  }
 0x5a6   : > { %1610 = vrot.lane.b32.xlu0 %v1595_v56, %s2929_s17  ;;  %v1655_v56 = vmul.f32 %v3636_v25, %v3691_v26  ;;  %v1841_v25 = vmul.f32 %v3650_v45, %v3697_v17  ;;  %v1798_v17 = vmul.f32 %v3355_v31, %v3839_v59  ;;  %v1866_v59 = vmul.f32 %v3372_v11, %v3864_v32 }
 0x5a7   : > { %1950 = vrot.lane.b32.xlu1 %v1934_v23, %s2933_s23  ;;  %v1665_v63 = vmul.f32 %v4525_v34, %v1659_v4  ;;  %v1660_v4 = vadd.f32 %v1654_v55, %v1640_v58  ;;  %v1870_v32 = vmul.f32 %v3884_v62, %v3390_v2  ;;  %v4532_v14 = vmov 5  }
 0x5a8   : > { %v1661_v23 = vadd.f32 %v1655_v56, %v1641_v40  ;;  %v1795_v40 = vadd.f32 %v1789_v42, %v1775_v20  ;;  %v1861_v26 = vadd.f32 %v1855_v48, %v1841_v25  ;;  %v4528_v56 = vld [vmem:[#allocation13_spill] sm:$0xff] }
 0x5a9   : > { %v2005_v47 = vmul.f32 %v4528_v56, %v3724_v51  ;;  %v2002_v62 = vmul.f32 %v4528_v56, %v3718_v16  ;;  %v2004_v51 = vmul.f32 %v3722_v9, %v4526_v5  ;;  %v4530_v16 = vmov 4   ;;  %v1431_v9 = vpop.permute.xlu0 %1430  ;;  %v4540_v5 = vld [vmem:[#allocation19_spill] sm:$0xff] }
 0x5aa   : > { %1614 = vrot.lane.b32.xlu0 %v1597_v41, %s2929_s17  ;;  %v1785_v41 = vmul.f32 %v3646_v13, %v3688_v24  ;;  %v1667_v29 = vmul.f32 %v3308_v49, %v1661_v23  ;;  %v1787_v13 = vmul.f32 %v3674_v39, %v3685_v54  ;;  %v1801_v38 = vmul.f32 %v3355_v31, %v1795_v40 }
 0x5ab   : > { %1604 = vrot.lane.b32.xlu1 %v1592_v3, %s2929_s17  ;;  %v1796_v39 = vmul.f32 %v3357_v61, %v3820_v7  ;;  %v1867_v45 = vmul.f32 %v1861_v26, %v3390_v2  ;;  %v1800_v24 = vmul.f32 %v3845_v0, %v3370_v28  ;;  %v1871_v7 = vmul.f32 %v3360_v50, %v3862_v35  ;;  %v1396_v26 = vld [vmem:[#allocation2] ss:$8 sm:$0x3] }
 0x5ac   : > { %v1791_v3 = vadd.f32 %v1785_v41, %v1771_v6  ;;  %v1793_v15 = vadd.f32 %v1787_v13, %v1773_v19  ;;  %v1868_v0 = vmul.f32 %v3360_v50, %v3880_v8  ;;  %v2003_v35 = vmul.f32 %v4527_v52, %v3720_v30  ;;  %v3999_v30 = vld [vmem:[%s4407_s9 + $0x8] sm:$0xff] }
 0x5ad   : > { %v2000_v8 = vmul.f32 %v4527_v52, %v3714_v53  ;;  %v4010_v53 = vld [vmem:[%s4407_s9] sm:$0xff] }
 0x5ae   : > { %1676 = vrot.lane.b32.xlu0 %v1663_v12, %s2930_s18  ;;  %v1797_v27 = vmul.f32 %v1791_v3, %v3370_v28  ;;  %v1664_v12 = vmul.f32 %v3308_v49, %v1658_v36  ;;  %v1799_v54 = vmul.f32 %v3357_v61, %v1793_v15 }
 0x5af   : > { %1608 = vrot.lane.b32.xlu1 %v1594_v33, %s2929_s17  ;;  %v1666_v33 = vmul.f32 %v1660_v4, %v4524_v43 }
 0x5b2   : > { %1680 = vrot.lane.b32.xlu0 %v1665_v63, %s2930_s18  ;;  %v4531_v63 = vmov 2  }
 0x5b3   : > { %1612 = vrot.lane.b32.xlu1 %v1596_v21, %s2929_s17 }
 0x5b6   : > { %1684 = vrot.lane.b32.xlu0 %v1667_v29, %s2930_s18 }
 0x5b7   : > { %1674 = vrot.lane.b32.xlu1 %v1662_v46, %s2930_s18 }
 0x5ba   : > { %1810 = vrot.lane.b32.xlu0 %v1797_v27, %s2931_s21 }
 0x5bb   : > { %1678 = vrot.lane.b32.xlu1 %v1664_v12, %s2930_s18 }
 0x5be   : > { %1814 = vrot.lane.b32.xlu0 %v1799_v54, %s2931_s21 }
 0x5bf   : > { %1682 = vrot.lane.b32.xlu1 %v1666_v33, %s2930_s18 }
 0x5c2   : > { %1818 = vrot.lane.b32.xlu0 %v1801_v38, %s2931_s21 }
 0x5c3   : > { %1808 = vrot.lane.b32.xlu1 %v1796_v39, %s2931_s21  ;;  %v1397_v39 = vld [vmem:[#allocation2 + $0x1] ss:$8 sm:$0x3] }
 0x5c6   : > { %1880 = vrot.lane.b32.xlu0 %v1867_v45, %s2932_s22 }
 0x5c7   : > { %1812 = vrot.lane.b32.xlu1 %v1798_v17, %s2931_s21  ;;  %v4533_v17 = vld [vmem:[#allocation6_spill] sm:$0xff] }
 0x5ca   : > { %1884 = vrot.lane.b32.xlu0 %v1869_v22, %s2932_s22  ;;  %v1414_v22 = vrot.slane %v1396_v26, %v4533_v17 }
 0x5cb   : > { %1816 = vrot.lane.b32.xlu1 %v1800_v24, %s2931_s21  ;;  %v4534_v24 = vld [vmem:[#allocation7_spill] sm:$0xff] }
 0x5ce   : > { %1888 = vrot.lane.b32.xlu0 %v1871_v7, %s2932_s22  ;;  %v1418_v7 = vrot.slane %v1396_v26, %v4534_v24 }
 0x5cf   : > { %1878 = vrot.lane.b32.xlu1 %v1866_v59, %s2932_s22 }
 0x5d2   : > { %2014 = vrot.lane.b32.xlu0 %v2001_v60, %s2934_s24  ;;  %v1437_v60 = vrot.slane %v1397_v39, %v4533_v17  ;;  %v4539_v17 = vld [vmem:[#allocation18_spill] sm:$0xff] }
 0x5d3   : > { %1882 = vrot.lane.b32.xlu1 %v1868_v0, %s2932_s22  ;;  %v1441_v0 = vrot.slane %v1397_v39, %v4534_v24 }
 0x5d6   : > { %2018 = vrot.lane.b32.xlu0 %v2003_v35, %s2934_s24 }
 0x5d7   : > { %1886 = vrot.lane.b32.xlu1 %v1870_v32, %s2932_s22  ;;  %v4535_v32 = vld [vmem:[#allocation22_spill] sm:$0xff] }
 0x5da   : > { %2022 = vrot.lane.b32.xlu0 %v2005_v47, %s2934_s24  ;;  %v1423_v47 = vmul.f32 %v1414_v22, %v4535_v32 }
 0x5db   : > { %2012 = vrot.lane.b32.xlu1 %v2000_v8, %s2934_s24  ;;  %v1424_v8 = vmul.f32 %v1418_v7, %v4535_v32 }
 0x5de   : > { %2126 = vperm.xlu0 %2846, %v3999_v30  }
 0x5df   : > { %2016 = vrot.lane.b32.xlu1 %v2002_v62, %s2934_s24 }
 0x5e2   : > { %2849 = vset.pattern.permute.xlu0 %v4529_v44 }
 0x5e3   : > { %2020 = vrot.lane.b32.xlu1 %v2004_v51, %s2934_s24  ;;  %2236 = vperm.xlu0 %2849, %v4010_v53   ;;  %v1446_v51 = vmul.f32 %v1437_v60, %v1431_v9 }
 0x5e7   : > { %2122 = vperm.xlu1 %2847, %v4010_v53   ;;  %2852 = vset.pattern.permute.xlu0 %v4530_v16 }
 0x5eb   : > { %2848 = vset.pattern.permute.xlu1 %v4531_v63  ;;  %v1450_v63 = vadd.f32 %v1446_v51, %v1423_v47  ;;  %v1421_v47 = vmul.f32 %v1414_v22, %v4539_v17  ;;  %v1445_v22 = vmul.f32 %v1441_v0, %v4540_v5 }
 0x5ec   : > { %2178 = vperm.xlu1 %2848, %v4010_v53  }
 0x5f0   : > { %2182 = vperm.xlu1 %2848, %v3999_v30  }
 0x5f4   : > { %v1541_v23 = vpop.permute.xlu0 %1540  ;;  %2850 = vset.pattern.permute.xlu1 %v4529_v44  ;;  %v1447_v44 = vmul.f32 %v1441_v0, %v1431_v9 }
 0x5f5   : > { %v4021_v6 = vpop.permute.xlu1 %1534  ;;  %2240 = vperm.xlu1 %2850, %v3999_v30  }
 0x5f8   : > { %v1545_v21 = vpop.permute.xlu0 %1544 }
 0x5f9   : > { %v4024_v37 = vpop.permute.xlu1 %1536  ;;  %2851 = vset.pattern.permute.xlu1 %v4530_v16 }
 0x5fa   : > { %2294 = vperm.xlu1 %2851, %v4010_v53  }
 0x5fc   : > { %v1741_v10 = vpop.permute.xlu0 %1740 }
 0x5fd   : > { %v4028_v41 = vpop.permute.xlu1 %1538 }
 0x5fe   : > { %2853 = vset.pattern.permute.xlu1 %v4532_v14  ;;  %v4536_v14 = vld [vmem:[#allocation4_spill] sm:$0xff] }
 0x600   : > { %v1745_v29 = vpop.permute.xlu0 %1744 }
 0x601   : > { %v1543_v3 = vpop.permute.xlu1 %1542 }
 0x602   : > { %v1548_v19 = vsel %vm659_vm12, %v1541_v23, %v1543_v3  ;;  %v1549_v46 = vsel %vm659_vm12, %v1543_v3, %v1545_v21  ;;  %v1451_v23 = vadd.f32 %v1447_v44, %v1424_v8  ;;  %v4537_v3 = vld [vmem:[#allocation5_spill] sm:$0xff] }
 0x604   : > { %v1749_v36 = vpop.permute.xlu0 %1748 }
 0x605   : > { %v1739_v58 = vpop.permute.xlu1 %1738 }
 0x606   : > { %v4034_v13 = vsel %vm846_vm15, %v1739_v58, %v1741_v10 }
 0x608   : > { %v4036_v55 = vpop.permute.xlu0 %1944 }
 0x609   : > { %v1743_v27 = vpop.permute.xlu1 %1742 }
 0x60a   : > { %v4039_v15 = vsel %vm846_vm15, %v1741_v10, %v1743_v27 }
 0x60c   : > { %v4041_v20 = vpop.permute.xlu0 %1948 }
 0x60d   : > { %v1747_v12 = vpop.permute.xlu1 %1746 }
 0x60e   : > { %v1752_v4 = vsel %vm846_vm15, %v1745_v29, %v1747_v12  ;;  %v1753_v42 = vsel %vm846_vm15, %v1747_v12, %v1749_v36  ;;  %v1454_v29 = vmul.f32 %v4536_v14, %v1450_v63  ;;  %v1455_v36 = vmul.f32 %v4537_v3, %v1451_v23  ;;  %v4538_v12 = vld [vmem:[#allocation17_spill] sm:$0xff] }
 0x60f   : > { %v1444_v63 = vmul.f32 %v1437_v60, %v4540_v5 }
 0x610   : > { %v4045_v54 = vpop.permute.xlu0 %1952  ;;  %v1458_v26 = vadd.f32 %v1454_v29, %v4538_v12  ;;  %v1459_v39 = vadd.f32 %v1455_v36, %v4538_v12  ;;  %v1422_v36 = vmul.f32 %v1418_v7, %v4539_v17 }
 0x611   : > { %v4047_v40 = vpop.permute.xlu1 %1942  ;;  %v1448_v12 = vadd.f32 %v1444_v63, %v1421_v47 }
 0x612   : > { %v1556_v8 = vadd.f32 %v1548_v19, %v1458_v26  ;;  %v1557_v51 = vadd.f32 %v1549_v46, %v1459_v39  ;;  %v1449_v26 = vadd.f32 %v1445_v22, %v1422_v36 }
 0x613   : > { %v1452_v60 = vmul.f32 %v4536_v14, %v1448_v12 }
 0x614   : > { %v4049_v25 = vpop.permute.xlu0 %1606 }
 0x615   : > { %v4051_v33 = vpop.permute.xlu1 %1946 }
 0x618   : > { %v1611_v48 = vpop.permute.xlu0 %1610 }
 0x619   : > { %v4053_v38 = vpop.permute.xlu1 %1950 }
 0x61c   : > { %v1615_v45 = vpop.permute.xlu0 %1614 }
 0x61d   : > { %v1605_v59 = vpop.permute.xlu1 %1604 }
 0x620   : > { %v1677_v35 = vpop.permute.xlu0 %1676 }
 0x621   : > { %v1609_v62 = vpop.permute.xlu1 %1608 }
 0x624   : > { %v1681_v16 = vpop.permute.xlu0 %1680 }
 0x625   : > { %v1613_v21 = vpop.permute.xlu1 %1612 }
 0x626   : > { %v1618_v32 = vsel %vm726_vm13, %v1611_v48, %v1613_v21  ;;  %v1619_v9 = vsel %vm726_vm13, %v1613_v21, %v1615_v45 }
 0x627   : > { %v1626_v2 = vadd.f32 %v1618_v32, %v1556_v8  ;;  %v1627_v23 = vadd.f32 %v1619_v9, %v1557_v51 }
 0x628   : > { %v1685_v10 = vpop.permute.xlu0 %1684 }
 0x629   : > { %v1675_v58 = vpop.permute.xlu1 %1674 }
 0x62c   : > { %v1811_v27 = vpop.permute.xlu0 %1810 }
 0x62d   : > { %v1679_v24 = vpop.permute.xlu1 %1678 }
 0x630   : > { %v1815_v44 = vpop.permute.xlu0 %1814 }
 0x631   : > { %v1683_v56 = vpop.permute.xlu1 %1682 }
 0x632   : > { %v1688_v31 = vsel %vm793_vm14, %v1681_v16, %v1683_v56  ;;  %v1689_v29 = vsel %vm793_vm14, %v1683_v56, %v1685_v10  ;;  %v1546_v56 = vsel %vm659_vm12, %v4021_v6, %v4024_v37  ;;  %v4541_v16 = vld [vmem:[#allocation16_spill] sm:$0xff]  ;;  %v1617_v6 = vsel %vm726_vm13, %v4049_v25, %v1609_v62 }
 0x633   : > { %v1696_v48 = vadd.f32 %v1688_v31, %v1626_v2  ;;  %v1697_v52 = vadd.f32 %v1689_v29, %v1627_v23  ;;  %v1456_v17 = vadd.f32 %v1452_v60, %v4541_v16  ;;  %v1453_v31 = vmul.f32 %v4537_v3, %v1449_v26 }
 0x634   : > { %v1819_v45 = vpop.permute.xlu0 %1818  ;;  %v1616_v2 = vsel %vm726_vm13, %v1605_v59, %v4049_v25  ;;  %v1687_v59 = vsel %vm793_vm14, %v1677_v35, %v1679_v24 }
 0x635   : > { %v1809_v19 = vpop.permute.xlu1 %1808  ;;  %v1760_v46 = vadd.f32 %v1752_v4, %v1696_v48  ;;  %v1761_v21 = vadd.f32 %v1753_v42, %v1697_v52  ;;  %v1554_v5 = vadd.f32 %v1546_v56, %v1456_v17  ;;  %v1547_v52 = vsel %vm659_vm12, %v4024_v37, %v4028_v41 }
 0x636   : > { %v1686_v42 = vsel %vm793_vm14, %v1675_v58, %v1677_v35  ;;  %v1457_v0 = vadd.f32 %v1453_v31, %v4541_v16  ;;  %v1820_v23 = vsel %vm911_vm1, %v1809_v19, %v1811_v27  ;;  %v1954_v19 = vsel %vm1029_vm3, %v4047_v40, %v4036_v55 }
 0x637   : > { %v1624_v10 = vadd.f32 %v1616_v2, %v1554_v5  ;;  %v1955_v40 = vsel %vm1029_vm3, %v4036_v55, %v4051_v33 }
 0x638   : > { %v1881_v39 = vpop.permute.xlu0 %1880  ;;  %v1555_v9 = vadd.f32 %v1547_v52, %v1457_v0 }
 0x639   : > { %v1813_v32 = vpop.permute.xlu1 %1812  ;;  %v1694_v47 = vadd.f32 %v1686_v42, %v1624_v10 }
 0x63a   : > { %v1625_v51 = vadd.f32 %v1617_v6, %v1555_v9  ;;  %v1821_v12 = vsel %vm911_vm1, %v1811_v27, %v1813_v32 }
 0x63b   : > { %v1758_v37 = vadd.f32 %v4034_v13, %v1694_v47 }
 0x63c   : > { %v1885_v7 = vpop.permute.xlu0 %1884  ;;  %v1695_v29 = vadd.f32 %v1687_v59, %v1625_v51 }
 0x63d   : > { %v1817_v4 = vpop.permute.xlu1 %1816  ;;  %v1828_v36 = vadd.f32 %v1820_v23, %v1758_v37  ;;  %v4545_v23 = vmov 8  }
 0x63e   : > { %v1759_v25 = vadd.f32 %v4039_v15, %v1695_v29  ;;  %v1822_v13 = vsel %vm911_vm1, %v1815_v44, %v1817_v4  ;;  %v1823_v26 = vsel %vm911_vm1, %v1817_v4, %v1819_v45  ;;  %v2067_v29 = vld [vmem:[#allocation3] sm:$0x1] }
 0x63f   : > { %v1830_v17 = vadd.f32 %v1822_v13, %v1760_v46  ;;  %v1956_v46 = vsel %vm1029_vm3, %v4041_v20, %v4053_v38  ;;  %v4542_v20 = vmov 6  }
 0x640   : > { %v1889_v63 = vpop.permute.xlu0 %1888  ;;  %v1829_v24 = vadd.f32 %v1821_v12, %v1759_v25 }
 0x641   : > { %v1879_v8 = vpop.permute.xlu1 %1878 }
 0x642   : > { %v1890_v58 = vsel %vm976_vm2, %v1879_v8, %v1881_v39 }
 0x643   : > { %v1898_v62 = vadd.f32 %v1890_v58, %v1828_v36 }
 0x644   : > { %v2015_v48 = vpop.permute.xlu0 %2014 }
 0x645   : > { %v1883_v41 = vpop.permute.xlu1 %1882  ;;  %v1962_v16 = vadd.f32 %v1954_v19, %v1898_v62 }
 0x646   : > { %v1891_v35 = vsel %vm976_vm2, %v1881_v39, %v1883_v41  ;;  %v1831_v39 = vadd.f32 %v1823_v26, %v1761_v21  ;;  %v1957_v21 = vsel %vm1029_vm3, %v4053_v38, %v4045_v54  ;;  %v4543_v54 = vmov 7  }
 0x647   : > { %v1899_v60 = vadd.f32 %v1891_v35, %v1829_v24  ;;  %v4544_v38 = vmov 0  }
 0x648   : > { %v2019_v31 = vpop.permute.xlu0 %2018 }
 0x649   : > { %v1887_v22 = vpop.permute.xlu1 %1886  ;;  %v1963_v52 = vadd.f32 %v1955_v40, %v1899_v60 }
 0x64a   : > { %v1892_v27 = vsel %vm976_vm2, %v1885_v7, %v1887_v22  ;;  %v1893_v15 = vsel %vm976_vm2, %v1887_v22, %v1889_v63 }
 0x64b   : > { %v1900_v44 = vadd.f32 %v1892_v27, %v1830_v17  ;;  %v1901_v5 = vadd.f32 %v1893_v15, %v1831_v39 }
 0x64c   : > { %v2023_v0 = vpop.permute.xlu0 %2022 }
 0x64d   : > { %v2013_v56 = vpop.permute.xlu1 %2012  ;;  %v1964_v10 = vadd.f32 %v1956_v46, %v1900_v44  ;;  %v1965_v6 = vadd.f32 %v1957_v21, %v1901_v5 }
 0x64e   : > { %v2024_v32 = vsel %vm4484_vm4, %v2013_v56, %v2015_v48 }
 0x64f   : > { %v2032_v2 = vadd.f32 %v2024_v32, %v1962_v16 }
 0x651   : > { %v2036_v45 = vmax.f32 %v2032_v2, 0.0  ;;  %v2017_v4 = vpop.permute.xlu1 %2016 }
 0x652   : > { %v2025_v42 = vsel %vm4484_vm4, %v2015_v48, %v2017_v4 }
 0x653   : > { %v2033_v7 = vadd.f32 %v2025_v42, %v1963_v52  ;;  %2044 = vrot.lane.b32.xlu1 %v2036_v45, %s2887_s26 }
 0x655   : > { %v2037_v55 = vmax.f32 %v2033_v7, 0.0  ;;  %v2021_v33 = vpop.permute.xlu1 %2020 }
 0x656   : > { %v2026_v9 = vsel %vm4484_vm4, %v2019_v31, %v2021_v33  ;;  %v2027_v47 = vsel %vm4484_vm4, %v2021_v33, %v2023_v0  ;;  %vm2191_vm4 = vcmask 1047568  }
 0x657   : > { %v2034_v8 = vadd.f32 %v2026_v9, %v1964_v10  ;;  %v2035_v59 = vadd.f32 %v2027_v47, %v1965_v6  ;;  %2046 = vrot.lane.b32.xlu0 %v2037_v55, %s2887_s26 }
 0x659   : > { %v2038_v51 = vmax.f32 %v2034_v8, 0.0  ;;  %v2039_v63 = vmax.f32 %v2035_v59, 0.0 }
 0x65b   : > { %2050 = vrot.lane.b32.xlu0 %v2039_v63, %s2887_s26  ;;  %2048 = vrot.lane.b32.xlu1 %v2038_v51, %s2887_s26 }
 0x65d   : > { %v2127_v12 = vpop.permute.xlu0 %2126 }
 0x65f   : > { %2298 = vperm.xlu0 %2852, %v3999_v30   ;;  %2348 = vperm.xlu1 %2853, %v4010_v53  }
 0x663   : > { %2854 = vset.pattern.permute.xlu0 %v4542_v20  ;;  %2352 = vperm.xlu1 %2853, %v3999_v30  }
 0x664   : > { %2406 = vperm.xlu0 %2854, %v4010_v53  }
 0x666   : > { %v2123_v37 = vpop.permute.xlu1 %2122 }
 0x667   : > { %2855 = vset.pattern.permute.xlu1 %v4542_v20 }
 0x668   : > { %2857 = vset.pattern.permute.xlu0 %v4543_v54  ;;  %2410 = vperm.xlu1 %2855, %v3999_v30  }
 0x669   : > { %2468 = vperm.xlu0 %2857, %v3999_v30  }
 0x66b   : > { %v4138_v41 = vpop.permute.xlu1 %2178 }
 0x66c   : > { %2856 = vset.pattern.permute.xlu1 %v4543_v54 }
 0x66d   : > { %2859 = vset.pattern.permute.xlu0 %v4544_v38  ;;  %2464 = vperm.xlu1 %2856, %v4010_v53  }
 0x66e   : > { %2085 = vperm.xlu0 %2859, %v4010_v53  }
 0x66f   : > { %v2183_v58 = vpop.permute.xlu1 %2182 }
 0x671   : > { %2858 = vset.pattern.permute.xlu1 %v4545_v23 }
 0x672   : > { %2520 = vperm.xlu1 %2858, %v4010_v53   ;;  %2861 = vset.pattern.permute.xlu0 %v4545_v23  ;;  %v4144_v53 = vpop.permute.xlu0 %2236 }
 0x674   : > { %v4140_v36 = vpop.permute.xlu1 %2240 }
 0x676   : > { %2524 = vperm.xlu1 %2858, %v3999_v30  }
 0x679   : > { %v4142_v25 = vpop.permute.xlu1 %2294 }
 0x67a   : > { %2860 = vset.pattern.permute.xlu1 %v4544_v38 }
 0x67b   : > { %2090 = vperm.xlu1 %2860, %v3999_v30  }
 0x67f   : > { %2070 = vperm.xlu1 %2860, %v2067_v29  }
 0x6c5   : > { %v2045_v62 = vpop.permute.xlu1 %2044 }
 0x6c6   : > { %2061 = vst.msk [vmem:[#allocation2] sm:$0xff] %vm2060_vm9, %v2045_v62 }
 0x6c9   : > { %v2047_v48 = vpop.permute.xlu0 %2046 }
 0x6ca   : > { %v4148_v30 = vsel %vm442_vm6, %v2045_v62, %v2047_v48  ;;  %2063 = vst.msk [vmem:[#allocation2 + $0x10] sm:$0xff] %vm442_vm6, %v2047_v48 }
 0x6cb   : > { %2062 = vst [vmem:[#allocation2 + $0x8] sm:$0xff] %v4148_v30  ;;  %v2130_v19 = vmul.f32 %v2123_v37, %v4148_v30  ;;  %v2186_v16 = vmul.f32 %v4138_v41, %v4148_v30  ;;  %v2244_v39 = vmul.f32 %v4144_v53, %v4148_v30 }
 0x6cd   : > { %v2051_v22 = vpop.permute.xlu0 %2050  ;;  %v2049_v35 = vpop.permute.xlu1 %2048  ;;  %v4160_v60 = vld [vmem:[#allocation2] sm:$0xff] }
 0x6ce   : > { %2066 = vst.msk [vmem:[#allocation2 + $0x28] sm:$0xff] %vm442_vm6, %v2051_v22  ;;  %v4154_v24 = vsel %vm442_vm6, %v2049_v35, %v2051_v22  ;;  %v2129_v32 = vmul.f32 %v2123_v37, %v4160_v60  ;;  %v2301_v59 = vmul.f32 %v4142_v25, %v4160_v60  ;;  %v2185_v29 = vmul.f32 %v4138_v41, %v4160_v60 }
 0x6cf   : > { %2064 = vst.msk [vmem:[#allocation2 + $0x18] sm:$0xff] %vm2060_vm9, %v2049_v35  ;;  %v2133_v13 = vmul.f32 %v2127_v12, %v4154_v24  ;;  %v2189_v26 = vmul.f32 %v2183_v58, %v4154_v24  ;;  %v2247_v27 = vmul.f32 %v4140_v36, %v4154_v24 }
 0x6d0   : > { %v2136_v52 = vsel %vm2135_vm5, %v2129_v32, 0.0 }
 0x6d1   : > { %v2145_v56 = vadd.f32 %v2133_v13, %v2130_v19  ;;  %v2201_v17 = vadd.f32 %v2189_v26, %v2186_v16  ;;  %v2259_v5 = vadd.f32 %v2247_v27, %v2244_v39  ;;  %v4174_v45 = vld [vmem:[#allocation2 + $0x10] sm:$0xff]  ;;  %v2307_v26 = vsel %vm2060_vm9, %v2301_v59, 0.0 }
 0x6d2   : > { %v2131_v55 = vmul.f32 %v2123_v37, %v4174_v45  ;;  %v2243_v27 = vmul.f32 %v4144_v53, %v4160_v60 }
 0x6d3   : > { %v2146_v15 = vrot.slane %v2145_v56, 4  ;;  %v2202_v46 = vrot.slane %v2201_v17, 4  ;;  %v2260_v33 = vrot.slane %v2259_v5, 4 }
 0x6d4   : > { %v2153_v23 = vsel %vm2152_vm7, %v2131_v55, 0.0 }
 0x6d5   : > { %v4169_v31 = vld [vmem:[#allocation2 + $0x28] sm:$0xff]  ;;  %v2147_v40 = vadd.f32 %v2146_v15, %v2145_v56  ;;  %v2203_v8 = vadd.f32 %v2202_v46, %v2201_v17  ;;  %v2261_v37 = vadd.f32 %v2260_v33, %v2259_v5  ;;  %v2303_v15 = vmul.f32 %v4142_v25, %v4174_v45 }
 0x6d6   : > { %v4171_v2 = vld [vmem:[#allocation2 + $0x18] sm:$0xff]  ;;  %v2134_v7 = vmul.f32 %v2127_v12, %v4169_v31  ;;  %v2190_v20 = vmul.f32 %v2183_v58, %v4169_v31  ;;  %v2192_v17 = vsel %vm2191_vm4, %v2185_v29, 0.0 }
 0x6d7   : > { %v2132_v44 = vmul.f32 %v2127_v12, %v4171_v2  ;;  %v2148_v4 = vrot.slane %v2147_v40, 2  ;;  %v2188_v47 = vmul.f32 %v2183_v58, %v4171_v2  ;;  %v2302_v12 = vmul.f32 %v4142_v25, %v4148_v30 }
 0x6d8   : > { %v2154_v9 = vsel %vm2152_vm7, %v2134_v7, 0.0  ;;  %v2187_v58 = vmul.f32 %v4138_v41, %v4174_v45  ;;  %v2204_v13 = vrot.slane %v2203_v8, 2  ;;  %v2209_v16 = vsel %vm709_vm8, %v2190_v20, 0.0 }
 0x6d9   : > { %v2137_v42 = vsel %vm2135_vm5, %v2132_v44, 0.0  ;;  %v2149_v0 = vadd.f32 %v2148_v4, %v2147_v40  ;;  %vm2249_vm5 = vcmask 1047680   ;;  %v2155_v48 = vadd.f32 %v2154_v9, %v2153_v23 }
 0x6da   : > { %v2138_v21 = vadd.f32 %v2137_v42, %v2136_v52  ;;  %v2193_v19 = vsel %vm2191_vm4, %v2188_v47, 0.0  ;;  %v2262_v39 = vrot.slane %v2261_v37, 2  ;;  %v2208_v5 = vsel %vm709_vm8, %v2187_v58, 0.0 }
 0x6db   : > { %v2150_v6 = vrot.slane %v2149_v0, 1  ;;  %v2156_v40 = vrot.slane %v2155_v48, 4  ;;  %v2194_v44 = vadd.f32 %v2193_v19, %v2192_v17  ;;  %v2246_v4 = vmul.f32 %v4140_v36, %v4171_v2 }
 0x6dc   : > { %v2139_v10 = vrot.slane %v2138_v21, 4  ;;  %v2210_v7 = vadd.f32 %v2209_v16, %v2208_v5  ;;  %v4207_v46 = vadd.f32 %v2204_v13, %v2203_v8  ;;  %v2323_v55 = vsel %vm442_vm6, %v2303_v15, 0.0 }
 0x6dd   : > { %v2151_v63 = vadd.f32 %v2150_v6, %v2149_v0  ;;  %vm2361_vm4 = vcmask 1047696   ;;  %v4212_v33 = vadd.f32 %v2262_v39, %v2261_v37  ;;  %vm2477_vm8 = vcmask 1047816  }
 0x6de   : > { %v2140_v51 = vadd.f32 %v2139_v10, %v2138_v21  ;;  %v2299_v54 = vpop.permute.xlu0 %2298  ;;  %v4182_v38 = vpop.permute.xlu1 %2348  ;;  %v2250_v10 = vsel %vm2249_vm5, %v2243_v27, 0.0  ;;  %v2157_v47 = vadd.f32 %v2156_v40, %v2155_v48  ;;  %v2251_v59 = vsel %vm2249_vm5, %v2246_v4, 0.0 }
 0x6df   : > { %v2304_v62 = vmul.f32 %v2299_v54, %v4171_v2  ;;  %2167 = vrot.lane.b32.xlu1 %v2151_v63, %s2927_s15  ;;  %v2305_v22 = vmul.f32 %v2299_v54, %v4154_v24  ;;  %v2306_v35 = vmul.f32 %v2299_v54, %v4169_v31  ;;  %v4218_v8 = vmul.f32 %v4144_v53, %v4174_v45 }
 0x6e0   : > { %v2141_v56 = vrot.slane %v2140_v51, 2  ;;  %v2211_v20 = vrot.slane %v2210_v7, 4  ;;  %v2206_v54 = vrot.slane %v4207_v46, 1  ;;  %v2355_v29 = vmul.f32 %v4182_v38, %v4160_v60 }
 0x6e1   : > { %v2308_v41 = vsel %vm2060_vm9, %v2304_v62, 0.0  ;;  %v2316_v52 = vadd.f32 %v2305_v22, %v2302_v12  ;;  %v2324_v42 = vsel %vm442_vm6, %v2306_v35, 0.0  ;;  %vm2494_vm9 = vcmask 269312  }
 0x6e2   : > { %v2353_v32 = vpop.permute.xlu1 %2352  ;;  %v2309_v25 = vadd.f32 %v2308_v41, %v2307_v26  ;;  %v2142_v0 = vadd.f32 %v2141_v56, %v2140_v51  ;;  %v2325_v6 = vadd.f32 %v2324_v42, %v2323_v55  ;;  %v2195_v51 = vrot.slane %v2194_v44, 4 }
 0x6e3   : > { %v4209_v21 = vpop.permute.xlu0 %2406  ;;  %v2317_v63 = vrot.slane %v2316_v52, 4  ;;  %v2359_v37 = vmul.f32 %v2353_v32, %v4154_v24  ;;  %vm2419_vm6 = vcmask 1047808   ;;  %v4228_v58 = vadd.f32 %v2251_v59, %v2250_v10 }
 0x6e4   : > { %v2310_v23 = vrot.slane %v2309_v25, 4  ;;  %v2143_v12 = vrot.slane %v2142_v0, 1  ;;  %v2414_v62 = vmul.f32 %v4209_v21, %v4148_v30  ;;  %v2326_v22 = vrot.slane %v2325_v6, 4 }
 0x6e5   : > { %v2356_v35 = vmul.f32 %v4182_v38, %v4148_v30  ;;  %v2158_v26 = vrot.slane %v2157_v47, 2  ;;  %v2318_v56 = vadd.f32 %v2317_v63, %v2316_v52  ;;  %v4234_v15 = vadd.f32 %v2195_v51, %v2194_v44 }
 0x6e6   : > { %v2144_v19 = vadd.f32 %v2143_v12, %v2142_v0  ;;  %v4236_v41 = vadd.f32 %v2211_v20, %v2210_v7  ;;  %v2311_v17 = vadd.f32 %v2310_v23, %v2309_v25  ;;  %v4240_v39 = vmul.f32 %v4182_v38, %v4174_v45 }
 0x6e7   : > { %v2411_v9 = vpop.permute.xlu1 %2410  ;;  %v4243_v40 = vsel %vm2361_vm4, %v2355_v29, 0.0  ;;  %v2371_v5 = vadd.f32 %v2359_v37, %v2356_v35  ;;  %v2358_v4 = vmul.f32 %v2353_v32, %v4171_v2  ;;  %v4248_v52 = vmul.f32 %v2353_v32, %v4169_v31 }
 0x6e8   : > { %v2417_v53 = vmul.f32 %v2411_v9, %v4154_v24  ;;  %v2469_v13 = vpop.permute.xlu0 %2468  ;;  %2165 = vrot.lane.b32.xlu0 %v2144_v19, %s2927_s15  ;;  %v2416_v44 = vmul.f32 %v2411_v9, %v4171_v2  ;;  %v2327_v7 = vadd.f32 %v2326_v22, %v2325_v6  ;;  %v2413_v38 = vmul.f32 %v4209_v21, %v4160_v60 }
 0x6e9   : > { %v2474_v42 = vmul.f32 %v2469_v13, %v4171_v2  ;;  %v2476_v25 = vmul.f32 %v2469_v13, %v4169_v31  ;;  %v2159_v0 = vadd.f32 %v2158_v26, %v2157_v47  ;;  %v2319_v55 = vrot.slane %v2318_v56, 2 }
 0x6ea   : > { %v4232_v16 = vadd.f32 %v2417_v53, %v2414_v62  ;;  %v2475_v10 = vmul.f32 %v2469_v13, %v4154_v24  ;;  %v2312_v32 = vrot.slane %v2311_v17, 2  ;;  %v2372_v51 = vrot.slane %v2371_v5, 4 }
 0x6eb   : > { %v2160_v20 = vrot.slane %v2159_v0, 1  ;;  %v2421_v6 = vsel %vm2419_vm6, %v2416_v44, 0.0  ;;  %v2479_v37 = vsel %vm2477_vm8, %v2474_v42, 0.0  ;;  %v2496_v62 = vsel %vm2494_vm9, %v2476_v25, 0.0 }
 0x6ec   : > { %v2465_v27 = vpop.permute.xlu1 %2464  ;;  %v2415_v19 = vmul.f32 %v4209_v21, %v4174_v45  ;;  %v2418_v13 = vmul.f32 %v2411_v9, %v4169_v31  ;;  %v2328_v48 = vrot.slane %v2327_v7, 2  ;;  %v2420_v44 = vsel %vm2419_vm6, %v2413_v38, 0.0 }
 0x6ed   : > { %v2471_v59 = vmul.f32 %v2465_v27, %v4160_v60  ;;  %v2472_v63 = vmul.f32 %v2465_v27, %v4148_v30  ;;  %v2473_v23 = vmul.f32 %v2465_v27, %v4174_v45  ;;  %v2161_v53 = vadd.f32 %v2160_v20, %v2159_v0  ;;  %v2086_v9 = vpop.permute.xlu0 %2085 }
 0x6ee   : > { %v2422_v25 = vadd.f32 %v2421_v6, %v2420_v44  ;;  %v2313_v20 = vadd.f32 %v2312_v32, %v2311_v17  ;;  %vm2533_vm7 = vcmask 1047824   ;;  %v2437_v38 = vsel %vm959_vm11, %v2418_v13, 0.0 }
 0x6ef   : > { %v2478_v47 = vsel %vm2477_vm8, %v2471_v59, 0.0  ;;  %v2487_v12 = vadd.f32 %v2475_v10, %v2472_v63  ;;  %v2495_v35 = vsel %vm2494_vm9, %v2473_v23, 0.0  ;;  %2169 = vrot.lane.b32.xlu0 %v2161_v53, %s2927_s15  ;;  %v2320_v10 = vadd.f32 %v2319_v55, %v2318_v56 }
 0x6f0   : > { %v2480_v22 = vadd.f32 %v2479_v37, %v2478_v47  ;;  %v2497_v27 = vadd.f32 %v2496_v62, %v2495_v35  ;;  %v2363_v23 = vsel %vm2361_vm4, %v2358_v4, 0.0  ;;  %v4272_v37 = vadd.f32 %v2372_v51, %v2371_v5 }
 0x6f1   : > { %v4259_v29 = vpop.permute.xlu1 %2520  ;;  %v2488_v26 = vrot.slane %v2487_v12, 4  ;;  %v2321_v47 = vrot.slane %v2320_v10, 1  ;;  %v2436_v62 = vsel %vm959_vm11, %v2415_v19, 0.0  ;;  %v2314_v35 = vrot.slane %v2313_v20, 1 }
 0x6f2   : > { %v2481_v42 = vrot.slane %v2480_v22, 4  ;;  %v2498_v63 = vrot.slane %v2497_v27, 4  ;;  %v2093_v17 = vmul.f32 %v4160_v60, %v2086_v9  ;;  %v2094_v5 = vmul.f32 %v2086_v9, %v4148_v30 }
 0x6f3   : > { %v2489_v0 = vadd.f32 %v2488_v26, %v2487_v12  ;;  %v2322_v6 = vadd.f32 %v2321_v47, %v2320_v10  ;;  %v2329_v12 = vadd.f32 %v2328_v48, %v2327_v7  ;;  %v2423_v26 = vrot.slane %v2422_v25, 4 }
 0x6f4   : > { %v2482_v21 = vadd.f32 %v2481_v42, %v2480_v22  ;;  %v2499_v55 = vadd.f32 %v2498_v63, %v2497_v27  ;;  %v2315_v4 = vadd.f32 %v2314_v35, %v2313_v20  ;;  %v2528_v51 = vmul.f32 %v4259_v29, %v4148_v30 }
 0x6f5   : > { %v2525_v59 = vpop.permute.xlu1 %2524  ;;  %v2490_v53 = vrot.slane %v2489_v0, 2  ;;  %2337 = vrot.lane.b32.xlu0 %v2322_v6, %s2928_s16  ;;  %v2330_v22 = vrot.slane %v2329_v12, 1  ;;  %v2438_v42 = vadd.f32 %v2437_v38, %v2436_v62  ;;  %v2527_v63 = vmul.f32 %v4259_v29, %v4160_v60 }
 0x6f6   : > { %v2483_v56 = vrot.slane %v2482_v21, 2  ;;  %v2531_v19 = vmul.f32 %v2525_v59, %v4154_v24  ;;  %2335 = vrot.lane.b32.xlu1 %v2315_v4, %s2928_s16  ;;  %v2530_v48 = vmul.f32 %v2525_v59, %v4171_v2  ;;  %v2500_v10 = vrot.slane %v2499_v55, 2 }
 0x6f7   : > { %v2491_v27 = vadd.f32 %v2490_v53, %v2489_v0  ;;  %v2331_v30 = vadd.f32 %v2330_v22, %v2329_v12  ;;  %v2364_v62 = vadd.f32 %v2363_v23, %v4243_v40  ;;  %v2379_v60 = vsel %vm894_vm10, %v4248_v52, 0.0 }
 0x6f8   : > { %v2484_v44 = vadd.f32 %v2483_v56, %v2482_v21  ;;  %v4288_v20 = vadd.f32 %v2531_v19, %v2528_v51  ;;  %v2197_v21 = vrot.slane %v4234_v15, 2  ;;  %v2535_v38 = vsel %vm2533_vm7, %v2530_v48, 0.0 }
 0x6f9   : > { %v2492_v35 = vrot.slane %v2491_v27, 1  ;;  %v2424_v56 = vadd.f32 %v2423_v26, %v2422_v25  ;;  %v2529_v6 = vmul.f32 %v4259_v29, %v4174_v45  ;;  %v2374_v12 = vrot.slane %v4272_v37, 2 }
 0x6fa   : > { %v2091_v32 = vpop.permute.xlu1 %2090  ;;  %v2485_v0 = vrot.slane %v2484_v44, 1  ;;  %2339 = vrot.lane.b32.xlu1 %v2331_v30, %s2928_s16  ;;  %v2534_v40 = vsel %vm2533_vm7, %v2527_v63, 0.0  ;;  %v2501_v23 = vadd.f32 %v2500_v10, %v2499_v55  ;;  %v2213_v25 = vrot.slane %v4236_v41, 2  ;;  %s388_s16 = scalar_lea.vmem %s4409_s11, %s2678_s10 }
 0x6fb   : > { %v2095_v13 = vmul.f32 %v4171_v2, %v2091_v32  ;;  %v2096_v7 = vmul.f32 %v2091_v32, %v4154_v24  ;;  %v2378_v2 = vsel %vm894_vm10, %v4240_v39, 0.0  ;;  %v2532_v24 = vmul.f32 %v2525_v59, %v4169_v31 }
 0x6fc   : > { %v2493_v53 = vadd.f32 %v2492_v35, %v2491_v27  ;;  %v2486_v39 = vadd.f32 %v2485_v0, %v2484_v44  ;;  %v2198_v59 = vadd.f32 %v2197_v21, %v4234_v15  ;;  %v2365_v26 = vrot.slane %v2364_v62, 4 }
 0x6fd   : > { %v4290_v9 = vadd.f32 %v2095_v13, %v2093_v17  ;;  %v4292_v47 = vadd.f32 %v2096_v7, %v2094_v5  ;;  %v2439_v17 = vrot.slane %v2438_v42, 4  ;;  %v2536_v5 = vadd.f32 %v2535_v38, %v2534_v40 }
 0x6fe   : > { %v2551_v52 = vsel %vm391_vm0, %v2532_v24, 0.0  ;;  %2507 = vrot.lane.b32.xlu0 %v2486_v39, %s2933_s23  ;;  %v2199_v4 = vrot.slane %v2198_v59, 1  ;;  %v2380_v32 = vadd.f32 %v2379_v60, %v2378_v2  ;;  %2509 = vrot.lane.b32.xlu1 %v2493_v53, %s2933_s23  ;;  %v2502_v45 = vrot.slane %v2501_v23, 1 }
 0x6ff   : > { %v2253_v15 = vrot.slane %v4228_v58, 4  ;;  %v2425_v29 = vrot.slane %v2424_v56, 2  ;;  %v2550_v51 = vsel %vm391_vm0, %v2529_v6, 0.0  ;;  %v2214_v55 = vadd.f32 %v2213_v25, %v4236_v41 }
 0x700   : > { %v2200_v22 = vadd.f32 %v2199_v4, %v2198_v59  ;;  %v2440_v19 = vadd.f32 %v2439_v17, %v2438_v42  ;;  %v2552_v13 = vadd.f32 %v2551_v52, %v2550_v51  ;;  %v2503_v48 = vadd.f32 %v2502_v45, %v2501_v23 }
 0x701   : > { %v2207_v7 = vadd.f32 %v2206_v54, %v4207_v46  ;;  %v2375_v27 = vadd.f32 %v2374_v12, %v4272_v37  ;;  %v2537_v44 = vrot.slane %v2536_v5, 4  ;;  %v2215_v63 = vrot.slane %v2214_v55, 1 }
 0x702   : > { %v2217_v10 = vmul.f32 %v3262_v1, %v2200_v22  ;;  %v2381_v30 = vrot.slane %v2380_v32, 4  ;;  %2511 = vrot.lane.b32.xlu0 %v2503_v48, %s2933_s23  ;;  %v4546_v35 = vrot.slane %v4212_v33, 1  ;;  %v2254_v42 = vadd.f32 %v2253_v15, %v4228_v58 }
 0x703   : > { %vm4547_vm0 = vcmask 130048   ;;  %v2366_v24 = vadd.f32 %v2365_v26, %v2364_v62  ;;  %v2426_v46 = vadd.f32 %v2425_v29, %v2424_v56  ;;  %v2216_v54 = vadd.f32 %v2215_v63, %v2214_v55 }
 0x704   : > { %v2265_v41 = vadd.f32 %v4546_v35, %v4212_v33  ;;  %v2266_v2 = vsel %vm4547_vm0, %v4218_v8, 0.0  ;;  %2223 = vrot.lane.b32.xlu1 %v2217_v10, %s2929_s17  ;;  %v2248_v1 = vmul.f32 %v4140_v36, %v4169_v31  ;;  %v2441_v37 = vrot.slane %v2440_v19, 2  ;;  %vm4548_vm10 = vmmov %vm4547_vm0 }
 0x705   : > { %v2553_v0 = vrot.slane %v2552_v13, 4  ;;  %v2218_v21 = vmul.f32 %v2207_v7, %v3274_v57  ;;  %v2255_v60 = vrot.slane %v2254_v42, 2  ;;  %v2538_v38 = vadd.f32 %v2537_v44, %v2536_v5 }
 0x706   : > { %v2219_v33 = vmul.f32 %v4523_v18, %v2216_v54  ;;  %v2376_v58 = vrot.slane %v2375_v27, 1  ;;  %v2267_v53 = vsel %vm4548_vm10, %v2248_v1, 0.0  ;;  %v2367_v56 = vrot.slane %v2366_v24, 2 }
 0x707   : > { %2225 = vrot.lane.b32.xlu0 %v2218_v21, %s2929_s17  ;;  %v2256_v8 = vadd.f32 %v2255_v60, %v2254_v42  ;;  %v2268_v62 = vadd.f32 %v2267_v53, %v2266_v2  ;;  %v2382_v6 = vadd.f32 %v2381_v30, %v2380_v32  ;;  %v2430_v39 = vrot.slane %v4232_v16, 4 }
 0x708   : > { %2227 = vrot.lane.b32.xlu1 %v2219_v33, %s2929_s17  ;;  %v2442_v36 = vadd.f32 %v2441_v37, %v2440_v19  ;;  %v2554_v31 = vadd.f32 %v2553_v0, %v2552_v13  ;;  %v2539_v12 = vrot.slane %v2538_v38, 2  ;;  %v2276_v18 = vmul.f32 %v2265_v41, %v4524_v43  ;;  %v4549_v37 = vld [vmem:[#allocation14_spill] sm:$0xff]  ;;  %v4551_v33 = vld [vmem:[#allocation13_spill] sm:$0xff] }
 0x709   : > { %v2257_v57 = vrot.slane %v2256_v8, 1  ;;  %v2269_v59 = vrot.slane %v2268_v62, 4  ;;  %v2377_v17 = vadd.f32 %v2376_v58, %v2375_v27  ;;  %v2427_v40 = vrot.slane %v2426_v46, 1 }
 0x70a   : > { %v2368_v52 = vadd.f32 %v2367_v56, %v2366_v24  ;;  %v2383_v4 = vrot.slane %v2382_v6, 2  ;;  %v2431_v25 = vadd.f32 %v2430_v39, %v4232_v16  ;;  %v2544_v26 = vrot.slane %v4288_v20, 4 }
 0x70b   : > { %v2258_v23 = vadd.f32 %v2257_v57, %v2256_v8  ;;  %v2270_v5 = vadd.f32 %v2269_v59, %v2268_v62  ;;  %v2555_v32 = vrot.slane %v2554_v31, 2  ;;  %v2540_v29 = vadd.f32 %v2539_v12, %v2538_v38  ;;  %v4553_v62 = vld [vmem:[#allocation15_spill] sm:$0xff] }
 0x70c   : > { %2283 = vrot.lane.b32.xlu1 %v2276_v18, %s2930_s18  ;;  %v2388_v51 = vmul.f32 %v2377_v17, %v3370_v28  ;;  %v2428_v43 = vadd.f32 %v2427_v40, %v2426_v46  ;;  %v2443_v22 = vrot.slane %v2442_v36, 1  ;;  %v2432_v19 = vrot.slane %v2431_v25, 2 }
 0x70d   : > { %v2275_v45 = vmul.f32 %v4525_v34, %v2258_v23  ;;  %v2271_v15 = vrot.slane %v2270_v5, 2  ;;  %v2384_v16 = vadd.f32 %v2383_v4, %v2382_v6  ;;  %v2545_v13 = vadd.f32 %v2544_v26, %v4288_v20  ;;  %v2071_v6 = vpop.permute.xlu1 %2070 }
 0x70e   : > { %v2369_v7 = vrot.slane %v2368_v52, 1  ;;  %v2556_v27 = vadd.f32 %v2555_v32, %v2554_v31  ;;  %v2445_v34 = vmul.f32 %v3372_v11, %v2428_v43  ;;  %v2444_v44 = vadd.f32 %v2443_v22, %v2442_v36 }
 0x70f   : > { %2281 = vrot.lane.b32.xlu0 %v2275_v45, %s2930_s18  ;;  %v2272_v55 = vadd.f32 %v2271_v15, %v2270_v5  ;;  %v2541_v10 = vrot.slane %v2540_v29, 1  ;;  %v2433_v28 = vadd.f32 %v2432_v19, %v2431_v25  ;;  %v2546_v30 = vrot.slane %v2545_v13, 2 }
 0x710   : > { %2395 = vrot.lane.b32.xlu1 %v2388_v51, %s2931_s21  ;;  %v2370_v41 = vadd.f32 %v2369_v7, %v2368_v52  ;;  %v2385_v42 = vrot.slane %v2384_v16, 1  ;;  %v2447_v2 = vmul.f32 %v3360_v50, %v2444_v44  ;;  %v2557_v20 = vrot.slane %v2556_v27, 1  ;;  %v4554_v7 = vld [vmem:[#allocation6_spill] sm:$0xff] }
 0x711   : > { %v2273_v48 = vrot.slane %v2272_v55, 1  ;;  %v2542_v24 = vadd.f32 %v2541_v10, %v2540_v29  ;;  %v2547_v11 = vadd.f32 %v2546_v30, %v2545_v13  ;;  %v2434_v1 = vrot.slane %v2433_v28, 1 }
 0x712   : > { %v2387_v46 = vmul.f32 %v3357_v61, %v2370_v41  ;;  %v2386_v54 = vadd.f32 %v2385_v42, %v2384_v16  ;;  %v2558_v21 = vadd.f32 %v2557_v20, %v2556_v27  ;;  %v4552_v61 = vld [vmem:[#allocation12_spill] sm:$0xff]  ;;  %v2098_v59 = vrot.slane %v4290_v9, 4 }
 0x713   : > { %v2274_v63 = vadd.f32 %v2273_v48, %v2272_v55  ;;  %v2559_v0 = vmul.f32 %v4549_v37, %v2542_v24  ;;  %v2435_v60 = vadd.f32 %v2434_v1, %v2433_v28  ;;  %v2548_v38 = vrot.slane %v2547_v11, 1 }
 0x714   : > { %2451 = vrot.lane.b32.xlu1 %v2445_v34, %s2932_s22  ;;  %v2561_v58 = vmul.f32 %v4551_v33, %v2558_v21  ;;  %v2105_v12 = vrot.slane %v4292_v47, 4  ;;  %v2099_v40 = vadd.f32 %v2098_v59, %v4290_v9  ;;  %v2076_v27 = vrot.slane %v2071_v6, %v4554_v7 }
 0x715   : > { %v2277_v35 = vmul.f32 %v3308_v49, %v2274_v63  ;;  %v4550_v49 = vld [vmem:[#allocation11_spill] sm:$0xff]  ;;  %v2446_v53 = vmul.f32 %v2435_v60, %v4552_v61  ;;  %v2549_v8 = vadd.f32 %v2548_v38, %v2547_v11  ;;  %vm4555_vm11 = vcmask 769024  }
 0x716   : > { %v2389_v50 = vmul.f32 %v4550_v49, %v2386_v54  ;;  %v2106_v23 = vadd.f32 %v2105_v12, %v4292_v47  ;;  %v2100_v4 = vrot.slane %v2099_v40, 2 }
 0x717   : > { %2285 = vrot.lane.b32.xlu0 %v2277_v35, %s2930_s18  ;;  %v2560_v56 = vmul.f32 %v2549_v8, %v4553_v62 }
 0x718   : > { %2455 = vrot.lane.b32.xlu1 %v2447_v2, %s2932_s22  ;;  %v2107_v25 = vrot.slane %v2106_v23, 2  ;;  %v2101_v45 = vadd.f32 %v2100_v4, %v2099_v40 }
 0x71a   : > { %v2108_v15 = vadd.f32 %v2107_v25, %v2106_v23  ;;  %v2102_v51 = vrot.slane %v2101_v45, 1 }
 0x71b   : > { %2393 = vrot.lane.b32.xlu0 %v2387_v46, %s2931_s21 }
 0x71c   : > { %2565 = vrot.lane.b32.xlu1 %v2559_v0, %s2934_s24  ;;  %v2109_v43 = vrot.slane %v2108_v15, 1  ;;  %v2103_v19 = vadd.f32 %v2102_v51, %v2101_v45 }
 0x71e   : > { %v2110_v16 = vadd.f32 %v2109_v43, %v2108_v15  ;;  %v2111_v9 = vmul.f32 %v4536_v14, %v2103_v19 }
 0x71f   : > { %2397 = vrot.lane.b32.xlu0 %v2389_v50, %s2931_s21 }
 0x720   : > { %2569 = vrot.lane.b32.xlu1 %v2561_v58, %s2934_s24  ;;  %v2112_v47 = vmul.f32 %v4537_v3, %v2110_v16  ;;  %v2113_v63 = vadd.f32 %v2111_v9, %v2076_v27  ;;  %v4558_v16 = vld [vmem:[#allocation21_spill] sm:$0xff] }
 0x722   : > { %v2114_v28 = vadd.f32 %v2112_v47, %v2076_v27 }
 0x723   : > { %2453 = vrot.lane.b32.xlu0 %v2446_v53, %s2932_s22 }
 0x727   : > { %2567 = vrot.lane.b32.xlu0 %v2560_v56, %s2934_s24 }
 0x751   : > { %v2168_v36 = vpop.permute.xlu1 %2167 }
 0x75a   : > { %v2166_v39 = vpop.permute.xlu0 %2165 }
 0x75b   : > { %v2171_v44 = vsel %vm659_vm12, %v2166_v39, %v2168_v36 }
 0x75c   : > { %v2175_v42 = vadd.f32 %v2171_v44, %v2113_v63 }
 0x761   : > { %v2170_v31 = vpop.permute.xlu0 %2169 }
 0x762   : > { %v2172_v10 = vsel %vm659_vm12, %v2168_v36, %v2170_v31  ;;  %vm4556_vm12 = vmmov %vm4555_vm11 }
 0x763   : > { %v2176_v2 = vadd.f32 %v2172_v10, %v2114_v28 }
 0x767   : > { %v2338_v18 = vpop.permute.xlu0 %2337 }
 0x768   : > { %v2336_v57 = vpop.permute.xlu1 %2335 }
 0x769   : > { %v2341_v21 = vsel %vm846_vm15, %v2336_v57, %v2338_v18 }
 0x76c   : > { %v2340_v17 = vpop.permute.xlu1 %2339 }
 0x76d   : > { %v2342_v49 = vsel %vm846_vm15, %v2338_v18, %v2340_v17 }
 0x770   : > { %v2510_v5 = vpop.permute.xlu1 %2509  ;;  %v2508_v52 = vpop.permute.xlu0 %2507 }
 0x771   : > { %v2513_v36 = vsel %vm1029_vm3, %v2508_v52, %v2510_v5 }
 0x774   : > { %v2512_v32 = vpop.permute.xlu0 %2511 }
 0x775   : > { %v2514_v31 = vsel %vm1029_vm3, %v2510_v5, %v2512_v32 }
 0x776   : > { %v2224_v26 = vpop.permute.xlu1 %2223 }
 0x779   : > { %v2226_v22 = vpop.permute.xlu0 %2225 }
 0x77a   : > { %v2228_v29 = vpop.permute.xlu1 %2227  ;;  %v2229_v35 = vsel %vm726_vm13, %v2224_v26, %v2226_v22 }
 0x77b   : > { %v2230_v41 = vsel %vm726_vm13, %v2226_v22, %v2228_v29  ;;  %v2233_v20 = vadd.f32 %v2229_v35, %v2175_v42 }
 0x77c   : > { %v2234_v11 = vadd.f32 %v2230_v41, %v2176_v2 }
 0x77e   : > { %v2284_v55 = vpop.permute.xlu1 %2283 }
 0x781   : > { %v2282_v48 = vpop.permute.xlu0 %2281 }
 0x782   : > { %v2396_v13 = vpop.permute.xlu1 %2395  ;;  %v2287_v14 = vsel %vm793_vm14, %v2282_v48, %v2284_v55 }
 0x783   : > { %v2291_v54 = vadd.f32 %v2287_v14, %v2233_v20 }
 0x785   : > { %v2345_v38 = vadd.f32 %v2341_v21, %v2291_v54 }
 0x786   : > { %v2452_v34 = vpop.permute.xlu1 %2451 }
 0x789   : > { %v2286_v30 = vpop.permute.xlu0 %2285 }
 0x78a   : > { %v2456_v24 = vpop.permute.xlu1 %2455  ;;  %v2288_v3 = vsel %vm793_vm14, %v2284_v55, %v2286_v30  ;;  %v4557_v55 = vld [vmem:[#allocation20_spill] sm:$0xff] }
 0x78b   : > { %v2292_v1 = vadd.f32 %v2288_v3, %v2234_v11 }
 0x78d   : > { %v2394_v46 = vpop.permute.xlu0 %2393  ;;  %v2346_v33 = vadd.f32 %v2342_v49, %v2292_v1 }
 0x78e   : > { %v2566_v0 = vpop.permute.xlu1 %2565  ;;  %v2399_v50 = vsel %vm911_vm1, %v2394_v46, %v2396_v13 }
 0x78f   : > { %v2403_v58 = vadd.f32 %v2399_v50, %v2345_v38 }
 0x791   : > { %v2398_v37 = vpop.permute.xlu0 %2397 }
 0x792   : > { %v2400_v60 = vsel %vm911_vm1, %v2396_v13, %v2398_v37  ;;  %v2570_v39 = vpop.permute.xlu1 %2569 }
 0x793   : > { %v2404_v61 = vadd.f32 %v2400_v60, %v2346_v33 }
 0x795   : > { %v2454_v53 = vpop.permute.xlu0 %2453 }
 0x796   : > { %v2457_v8 = vsel %vm976_vm2, %v2452_v34, %v2454_v53  ;;  %v2458_v62 = vsel %vm976_vm2, %v2454_v53, %v2456_v24 }
 0x797   : > { %v2461_v56 = vadd.f32 %v2457_v8, %v2403_v58  ;;  %v2462_v6 = vadd.f32 %v2458_v62, %v2404_v61 }
 0x799   : > { %v2568_v57 = vpop.permute.xlu0 %2567  ;;  %v2517_v59 = vadd.f32 %v2513_v36, %v2461_v56  ;;  %v2518_v12 = vadd.f32 %v2514_v31, %v2462_v6 }
 0x79a   : > { %v2571_v18 = vsel %vm4555_vm11, %v2566_v0, %v2568_v57  ;;  %v2572_v17 = vsel %vm4556_vm12, %v2568_v57, %v2570_v39 }
 0x79b   : > { %v2575_v40 = vadd.f32 %v2571_v18, %v2517_v59  ;;  %v2576_v23 = vadd.f32 %v2572_v17, %v2518_v12 }
 0x79d   : > { %v2577_v4 = vsub.f32 0.0, %v2575_v40  ;;  %v2578_v25 = vsub.f32 0.0, %v2576_v23 }
 0x79f   : > { %v2579_v26 = vmul.f32 1.442695, %v2577_v4  ;;  %v2581_v45 = vmul.f32 1.442695, %v2578_v25 }
 0x7a1   : > { %2867 = vpow2.f32 %v2579_v26 }
 0x7a2   : > { %2869 = vpow2.f32 %v2581_v45 }
 0x7ab   : > { %v2868_v15 = vpop.eup %2867 }
 0x7ac   : > { %v2870_v52 = vpop.eup %2869  ;;  %v2583_v29 = vadd.f32 1.0, %v2868_v15 }
 0x7ad   : > { %v2584_v5 = vadd.f32 1.0, %v2870_v52 }
 0x7ae   : > { %2871 = vrcp.f32 %v2583_v29 }
 0x7af   : > { %2873 = vrcp.f32 %v2584_v5 }
 0x7b8   : > { %v2872_v32 = vpop.eup %2871 }
 0x7b9   : > { %v2874_v51 = vpop.eup %2873  ;;  %v2592_v43 = vrot.slane %v2872_v32, %v4554_v7 }
 0x7ba   : > { %v2596_v22 = vrot.slane %v2874_v51, %v4554_v7 }
 0x7bb   : > { %v2597_v19 = vmul.f32 %v2592_v43, %v4557_v55 }
 0x7bc   : > { %v2598_v13 = vmul.f32 %v2596_v22, %v4558_v16 }
 0x7be   : > { %v2601_v48 = vcombine.low %v2597_v19, %v2598_v13 }
 0x7c0   : > { %2603 = vst [vmem:[%s388_s16] sm:$0xff] %v2601_v48 }
 0x7c1 PF: > { %s23_s19 = sadd.s32 1, %s2882_s19  }
 0x7c2   : > { %p20_p4 = scmp.ge.s32.totalorder %s23_s19, 4  }
 0x7c4   :  { %22 = sbr.rel (!%p20_p4) target bundleno = 3 (0x3), region = 97 }

</bundles_post_ra>
